<compile_context>
chip_gen: v7x
topology: tpu7x:2x2x1
jax: 0.10.0
libtpu: 0.0.40
codegen_flags: <defaults>
</compile_context>

<pallas_src>
import functools

import jax
import jax.numpy as jnp
from jax.experimental import pallas as pl
from jax.experimental.pallas import tpu as pltpu

EPS = 1e-5
NEG_SLOPE = 0.01          # nn.LeakyReLU default
LANE = 128                # TPU lane width; channels are padded to this


def _round_up(x, m):
    return (x + m - 1) // m * m


def _lrelu(h):
    return jnp.where(h > 0, h, NEG_SLOPE * h)


def _residual_kernel(x_ref, m_ref, w1_ref, w2_ref, g1_ref, be1_ref, g2_ref,
                     be2_ref, o_ref, h1s_ref, h2s_ref, s1_ref, s2_ref,
                     *, inv_count, guard, wpad, tile, nt):
    """Grid = (4 phases, nt row tiles); all phases share persistent VMEM scratch.

    x_ref:   (tile, CP)    f32  padded-image rows (conv input AND residual)
    m_ref:   (tile, 1)     f32  1.0 on real-pixel rows, 0.0 on halo/pad rows
    w1_ref:  (CP, CrP)     mm   1x1 conv weights (channel-padded)
    w2_ref:  (9*CrP, CP)   mm   3x3 conv weights, tap-major (di*3+dj blocks)
    g*/be*:  (1, ch)       f32  BN affine params (padded lanes are zero)
    o_ref:   (tile, CP)    f32  output rows (halo rows hold junk, sliced away)
    h1s_ref: (S1, CrP)     mm   persistent scratch: layer-1 activation + halos
    h2s_ref: (NPH_pad, CP) mm   persistent scratch: raw layer-2 conv output
    s1_ref/s2_ref: (8, ch) f32  rows 0/1 = sum / sum-sq, rows 2/3 = scale/shift
    """
    p = pl.program_id(0)                               # phase
    t = pl.program_id(1)                               # row tile
    mmt = h1s_ref.dtype
    base = pl.multiple_of(guard + t * tile, 8)         # this tile's h1s row
    row0 = pl.multiple_of(t * tile, 8)                 # this tile's h2s row

    # ---------- phase 0: 1x1 conv + BN1 sum / sum-of-squares ----------------
    @pl.when(p == 0)
    def _():
        @pl.when(t == 0)
        def _():
            # Zero the stat accumulators and ONLY the scratch halo guard bands
            # (interior rows are fully overwritten below).
            s1_ref[0:2, :] = jnp.zeros((2, s1_ref.shape[1]), jnp.float32)
            s2_ref[0:2, :] = jnp.zeros((2, s2_ref.shape[1]), jnp.float32)
            h1s_ref[0:guard, :] = jnp.zeros((guard, h1s_ref.shape[1]), mmt)
            lo = guard + nt * tile
            tail = h1s_ref.shape[0] - lo
            h1s_ref[lo:lo + tail, :] = jnp.zeros((tail, h1s_ref.shape[1]), mmt)

        # Conv bias folded away: training-mode BN subtracts it exactly.
        h1 = jnp.dot(x_ref[...].astype(mmt), w1_ref[...],
                     preferred_element_type=jnp.float32)        # (tile, CrP)
        # Halo / pad rows of the raw 1x1 conv output are exactly zero, so the
        # stat sums need no mask; mean uses inv_count = 1/(N*H*W).
        s1_ref[0:1, :] += jnp.sum(h1, axis=0, keepdims=True)
        s1_ref[1:2, :] += jnp.sum(h1 * h1, axis=0, keepdims=True)
        h1s_ref[pl.ds(base, tile), :] = h1.astype(mmt)

        @pl.when(t == nt - 1)
        def _():
            mean = s1_ref[0:1, :] * inv_count
            var = s1_ref[1:2, :] * inv_count - mean * mean
            scale = g1_ref[...] * jax.lax.rsqrt(var + EPS)
            s1_ref[2:3, :] = scale
            s1_ref[3:4, :] = be1_ref[...] - mean * scale

    # ---------- phase 1: BN1 + LeakyReLU applied to h1 scratch in place -----
    @pl.when(p == 1)
    def _():
        h1 = h1s_ref[pl.ds(base, tile), :].astype(jnp.float32)
        h1 = _lrelu(h1 * s1_ref[2:3, :] + s1_ref[3:4, :])
        # Re-zero halo rows (3x3 conv padding must read zeros).
        h1s_ref[pl.ds(base, tile), :] = (h1 * m_ref[...]).astype(mmt)

    # ---------- phase 2: 3x3 conv (big-K per-tile taps matmul) + BN2 stats ---
    @pl.when(p == 2)
    def _():
        # Tap (di, dj) of output row s reads scratch row base + s +
        # (di-1)*wpad + (dj-1).  Per-tile concat only (a few hundred KiB).
        taps = jnp.concatenate(
            [h1s_ref[pl.ds(base + (di - 1) * wpad + (dj - 1), tile), :]
             for di in range(3) for dj in range(3)],
            axis=-1)                                            # (tile, 9*CrP)
        h2 = jnp.dot(taps, w2_ref[...], preferred_element_type=jnp.float32)
        hm = h2 * m_ref[...]       # layer-2 halo rows are NOT zero -> mask stats
        s2_ref[0:1, :] += jnp.sum(hm, axis=0, keepdims=True)
        s2_ref[1:2, :] += jnp.sum(hm * h2, axis=0, keepdims=True)
        h2s_ref[pl.ds(row0, tile), :] = h2.astype(mmt)

        @pl.when(t == nt - 1)
        def _():
            mean = s2_ref[0:1, :] * inv_count
            var = s2_ref[1:2, :] * inv_count - mean * mean
            scale = g2_ref[...] * jax.lax.rsqrt(var + EPS)
            s2_ref[2:3, :] = scale
            s2_ref[3:4, :] = be2_ref[...] - mean * scale

    # ---------- phase 3: BN2 + LeakyReLU + residual, write output -----------
    @pl.when(p == 3)
    def _():
        h2 = h2s_ref[pl.ds(row0, tile), :].astype(jnp.float32)
        h2 = _lrelu(h2 * s2_ref[2:3, :] + s2_ref[3:4, :])
        # Halo rows hold junk + x(=0); the wrapper slices them away, so no
        # extra mask multiply here.
        o_ref[...] = h2 + x_ref[...]


def residual_block(x_nchw, params, matmul_dtype=jnp.bfloat16, row_tile=512):
    """Pallas ResidualBlock.forward.  Accepts/returns NCHW (PyTorch layout).

    matmul_dtype: dtype of MXU operands and of the staged activations
    (bf16 recommended on all generations, mandatory-ish on v5e; accumulation
    and all BN / LeakyReLU math stay in f32).
    row_tile: rows per grid step (multiple of 8; 512-1024 for real shapes).
    """
    w1, b1, g1, be1, w2, b2, g2, be2 = params
    del b1, b2   # conv biases are cancelled exactly by training-mode BN mean.

    N, C, H, W = x_nchw.shape
    Cr = w1.shape[1]
    CP = _round_up(C, LANE)            # lane-dense channel padding
    CrP = _round_up(Cr, LANE)
    Hp = H + 2
    Wpad = _round_up(W + 2, 8)         # sublane-aligned padded row width
    extra = Wpad - (W + 2)
    NPH = N * Hp * Wpad                # rows in the padded-image layout
    R = N * H * W                      # real-pixel rows (BN count)

    T = max(8, min(_round_up(row_tile, 8), _round_up(NPH, 8)))
    NT = -(-NPH // T)
    NPH_pad = NT * T

    # NHWC + spatial halo (+ width alignment pad) + channel padding, flattened.
    x = jnp.transpose(x_nchw, (0, 2, 3, 1)).astype(jnp.float32)
    x_flat = jnp.pad(x, ((0, 0), (1, 1), (1, 1 + extra), (0, CP - C)))
    x_flat = x_flat.reshape(NPH, CP)
    x_flat = jnp.pad(x_flat, ((0, NPH_pad - NPH), (0, 0)))
    mask = jnp.pad(jnp.ones((N, H, W, 1), jnp.float32),
                   ((0, 0), (1, 1), (1, 1 + extra), (0, 0))).reshape(NPH, 1)
    mask = jnp.pad(mask, ((0, NPH_pad - NPH), (0, 0)))

    # Channel-padded weights / BN params.  Padded lanes are zero and stay zero
    # through conv/BN/LeakyReLU (var=0 -> scale=0, shift=0), so stats are intact.
    w1p = jnp.zeros((CP, CrP), matmul_dtype).at[:C, :Cr].set(
        w1.astype(matmul_dtype))
    w2p = jnp.zeros((3, 3, CrP, CP), matmul_dtype).at[:, :, :Cr, :C].set(
        w2.astype(matmul_dtype)).reshape(9 * CrP, CP)
    g1p = jnp.zeros((1, CrP), jnp.float32).at[0, :Cr].set(g1)
    be1p = jnp.zeros((1, CrP), jnp.float32).at[0, :Cr].set(be1)
    g2p = jnp.zeros((1, CP), jnp.float32).at[0, :C].set(g2)
    be2p = jnp.zeros((1, CP), jnp.float32).at[0, :C].set(be2)

    guard = _round_up(Wpad + 1, 8)                 # sublane-aligned lead halo
    s1_rows = guard + NPH_pad + _round_up(Wpad + 1, 8)

    # Derive the VMEM request from the actual working set (+ headroom).
    mm_bytes = jnp.dtype(matmul_dtype).itemsize
    vmem_est = (s1_rows * CrP * mm_bytes           # h1 scratch
                + NPH_pad * CP * mm_bytes          # h2 scratch
                + 4 * T * CP * 4                   # double-buffered x + out
                + 2 * 9 * CrP * CP * mm_bytes      # w2 (double-buffered)
                + 2 * CP * CrP * mm_bytes          # w1
                + T * 9 * CrP * mm_bytes           # per-tile taps temporary
                + 6 * T * CP * 4)                  # misc f32 temporaries
    vmem_limit = int(max(32 << 20, min(vmem_est + (16 << 20), 100 << 20)))

    kernel = functools.partial(_residual_kernel, inv_count=1.0 / R,
                               guard=guard, wpad=Wpad, tile=T, nt=NT)

    # Freeze block indices in phases where an operand is unused so Pallas does
    # not issue redundant DMAs (unchanged index => copy elided).
    def x_map(p, t):
        return (jnp.where((p == 0) | (p == 3), t, NT - 1), 0)

    def m_map(p, t):
        return (jnp.where(p == 0, 0, jnp.where(p == 3, NT - 1, t)), 0)

    def const_map(p, t):
        return (0, 0)

    def o_map(p, t):
        # Output only advances during phase 3; it stays resident (index 0) and
        # unwritten-back through phases 0-2.
        return (jnp.where(p == 3, t, 0), 0)

    out_flat = pl.pallas_call(
        kernel,
        out_shape=jax.ShapeDtypeStruct((NPH_pad, CP), jnp.float32),
        grid_spec=pltpu.PrefetchScalarGridSpec(
            num_scalar_prefetch=0,
            grid=(4, NT),
            in_specs=[
                pl.BlockSpec((T, CP), x_map),
                pl.BlockSpec((T, 1), m_map),
                pl.BlockSpec((CP, CrP), const_map),
                pl.BlockSpec((9 * CrP, CP), const_map),
                pl.BlockSpec((1, CrP), const_map),
                pl.BlockSpec((1, CrP), const_map),
                pl.BlockSpec((1, CP), const_map),
                pl.BlockSpec((1, CP), const_map),
            ],
            out_specs=pl.BlockSpec((T, CP), o_map),
            scratch_shapes=[
                pltpu.VMEM((s1_rows, CrP), matmul_dtype),   # h1 (+ halos)
                pltpu.VMEM((NPH_pad, CP), matmul_dtype),    # raw h2
                pltpu.VMEM((8, CrP), jnp.float32),          # BN1 stats/affine
                pltpu.VMEM((8, CP), jnp.float32),           # BN2 stats/affine
            ]),
        compiler_params=pltpu.CompilerParams(
            dimension_semantics=("arbitrary", "arbitrary"),
            vmem_limit_bytes=vmem_limit),
    )(x_flat, mask, w1p, w2p, g1p, be1p, g2p, be2p)

    out = out_flat[:NPH].reshape(N, Hp, Wpad, CP)[:, 1:H + 1, 1:W + 1, :C]
    return jnp.transpose(out, (0, 3, 1, 2))       # back to NCHW


def reference(x_nchw, params):
    """Pure-JAX reference mirroring the PyTorch forward (training-mode BN)."""
    w1, b1, g1, be1, w2, b2, g2, be2 = params
    x = jnp.transpose(x_nchw, (0, 2, 3, 1)).astype(jnp.float32)

    def bn(h, g, b):
        m = jnp.mean(h, axis=(0, 1, 2), keepdims=True)
        v = jnp.mean((h - m) ** 2, axis=(0, 1, 2), keepdims=True)
        return (h - m) * jax.lax.rsqrt(v + EPS) * g + b

    C, Cr = w1.shape
    h1 = jax.lax.conv_general_dilated(
        x, w1.reshape(1, 1, C, Cr), (1, 1), 'VALID',
        dimension_numbers=('NHWC', 'HWIO', 'NHWC')) + b1
    h1 = _lrelu(bn(h1, g1, be1))
    h2 = jax.lax.conv_general_dilated(
        h1, w2, (1, 1), 'SAME',
        dimension_numbers=('NHWC', 'HWIO', 'NHWC')) + b2
    h2 = _lrelu(bn(h2, g2, be2))
    return jnp.transpose(h2 + x, (0, 3, 1, 2))


def make_params(key, in_channels):
    """Deterministic synthetic parameters (shapes from the module __init__)."""
    C = in_channels
    Cr = C // 2
    ks = jax.random.split(key, 8)
    w1 = 0.2 * jax.random.normal(ks[0], (C, Cr), jnp.float32)        # 1x1 (IO)
    b1 = 0.1 * jax.random.normal(ks[1], (Cr,), jnp.float32)
    g1 = 1.0 + 0.1 * jax.random.normal(ks[2], (Cr,), jnp.float32)
    be1 = 0.1 * jax.random.normal(ks[3], (Cr,), jnp.float32)
    w2 = 0.2 * jax.random.normal(ks[4], (3, 3, Cr, C), jnp.float32)  # 3x3 HWIO
    b2 = 0.1 * jax.random.normal(ks[5], (C,), jnp.float32)
    g2 = 1.0 + 0.1 * jax.random.normal(ks[6], (C,), jnp.float32)
    be2 = 0.1 * jax.random.normal(ks[7], (C,), jnp.float32)
    return (w1, b1, g1, be1, w2, b2, g2, be2)


if __name__ == "__main__":
    key = jax.random.PRNGKey(0)
    kx, kp = jax.random.split(key)

    N, C, H, W = 2, 4, 16, 16          # small shapes consistent with the module
    x = jax.random.normal(kx, (N, C, H, W), jnp.float32)
    params = make_params(kp, C)

    fwd = jax.jit(residual_block, static_argnames=("matmul_dtype", "row_tile"))
    ref = jax.block_until_ready(reference(x, params))

    # f32 MXU path: tight check (one-pass E[h^2]-mean^2 variance, hence 1e-3).
    out_f32 = jax.block_until_ready(
        fwd(x, params, matmul_dtype=jnp.float32, row_tile=256))
    assert out_f32.shape == (N, C, H, W)
    assert jnp.allclose(out_f32, ref, rtol=1e-3, atol=1e-3), "f32 mismatch"

    # bf16 MXU path (default; activations staged in bf16): loose tolerance.
    out_bf16 = jax.block_until_ready(
        fwd(x, params, matmul_dtype=jnp.bfloat16, row_tile=256))
    assert out_bf16.shape == (N, C, H, W)
    assert jnp.allclose(out_bf16, ref, rtol=1e-1, atol=2.5e-1), "bf16 mismatch"

    print("KERNEL_OK")
</pallas_src>

<mosaic_0001>
module attributes {stable_mosaic.version = 11 : i64} {
  func.func @_residual_kernel(%arg0: i32, %arg1: i32, %arg2: memref<256x128xf32, #tpu.memory_space<vmem>>, %arg3: memref<256x1xf32, #tpu.memory_space<vmem>>, %arg4: memref<128x128xf32, #tpu.memory_space<vmem>>, %arg5: memref<1152x128xf32, #tpu.memory_space<vmem>>, %arg6: memref<1x128xf32, #tpu.memory_space<vmem>>, %arg7: memref<1x128xf32, #tpu.memory_space<vmem>>, %arg8: memref<1x128xf32, #tpu.memory_space<vmem>>, %arg9: memref<1x128xf32, #tpu.memory_space<vmem>>, %arg10: memref<256x128xf32, #tpu.memory_space<vmem>>, %arg11: memref<1088x128xf32, #tpu.memory_space<vmem>>, %arg12: memref<1024x128xf32, #tpu.memory_space<vmem>>, %arg13: memref<8x128xf32, #tpu.memory_space<vmem>>, %arg14: memref<8x128xf32, #tpu.memory_space<vmem>>) attributes {dimension_semantics = [#tpu.dimension_semantics<arbitrary>, #tpu.dimension_semantics<arbitrary>], iteration_bounds = array<i64: 4, 4>, scalar_prefetch = 0 : i64, scratch_operands = 4 : i64, tpu.core_type = #tpu.core_type<tc>, window_params = [{transform_indices = @transform_0, window_bounds = array<i64: 256, 128>}, {transform_indices = @transform_1, window_bounds = array<i64: 256, 1>}, {pipeline_mode = #tpu.pipeline_mode<synchronous>, transform_indices = @transform_2, window_bounds = array<i64: 128, 128>}, {pipeline_mode = #tpu.pipeline_mode<synchronous>, transform_indices = @transform_3, window_bounds = array<i64: 1152, 128>}, {pipeline_mode = #tpu.pipeline_mode<synchronous>, transform_indices = @transform_4, window_bounds = array<i64: 1, 128>}, {pipeline_mode = #tpu.pipeline_mode<synchronous>, transform_indices = @transform_5, window_bounds = array<i64: 1, 128>}, {pipeline_mode = #tpu.pipeline_mode<synchronous>, transform_indices = @transform_6, window_bounds = array<i64: 1, 128>}, {pipeline_mode = #tpu.pipeline_mode<synchronous>, transform_indices = @transform_7, window_bounds = array<i64: 1, 128>}, {transform_indices = @transform_8, window_bounds = array<i64: 256, 128>}]} {
    %c256_i32 = arith.constant 256 : i32
    %0 = arith.muli %arg1, %c256_i32 : i32
    %c32_i32 = arith.constant 32 : i32
    %1 = arith.addi %c32_i32, %0 : i32
    %2 = tpu.assume_multiple %1, 8 : i32
    %c256_i32_0 = arith.constant 256 : i32
    %3 = arith.muli %arg1, %c256_i32_0 : i32
    %4 = tpu.assume_multiple %3, 8 : i32
    %c0_i32 = arith.constant 0 : i32
    %5 = arith.cmpi eq, %arg0, %c0_i32 : i32
    %6 = arith.extui %5 : i1 to i32
    %c0_i32_1 = arith.constant 0 : i32
    %7 = arith.cmpi ne, %6, %c0_i32_1 : i32
    scf.if %7 {
      %c0_i32_5 = arith.constant 0 : i32
      %17 = arith.cmpi eq, %arg1, %c0_i32_5 : i32
      %18 = arith.extui %17 : i1 to i32
      %c0_i32_6 = arith.constant 0 : i32
      %19 = arith.cmpi ne, %18, %c0_i32_6 : i32
      scf.if %19 {
        %cst_22 = arith.constant 0.000000e+00 : f32
        %39 = vector.broadcast %cst_22 : f32 to vector<2x128xf32>
        %c0_23 = arith.constant 0 : index
        %c0_24 = arith.constant 0 : index
        %40 = vector.load %arg13[%c0_23, %c0_24] : memref<8x128xf32, #tpu.memory_space<vmem>>, vector<2x128xf32>
        tpu.vector_store %arg13[%c0_23, %c0_24], %39 {strides = array<i32>} : memref<8x128xf32, #tpu.memory_space<vmem>>, vector<2x128xf32>,
        %cst_25 = arith.constant 0.000000e+00 : f32
        %41 = vector.broadcast %cst_25 : f32 to vector<2x128xf32>
        %c0_26 = arith.constant 0 : index
        %c0_27 = arith.constant 0 : index
        %42 = vector.load %arg14[%c0_26, %c0_27] : memref<8x128xf32, #tpu.memory_space<vmem>>, vector<2x128xf32>
        tpu.vector_store %arg14[%c0_26, %c0_27], %41 {strides = array<i32>} : memref<8x128xf32, #tpu.memory_space<vmem>>, vector<2x128xf32>,
        %cst_28 = arith.constant 0.000000e+00 : f32
        %43 = vector.broadcast %cst_28 : f32 to vector<32x128xf32>
        %c0_29 = arith.constant 0 : index
        %c0_30 = arith.constant 0 : index
        %44 = vector.load %arg11[%c0_29, %c0_30] : memref<1088x128xf32, #tpu.memory_space<vmem>>, vector<32x128xf32>
        tpu.vector_store %arg11[%c0_29, %c0_30], %43 {strides = array<i32>} : memref<1088x128xf32, #tpu.memory_space<vmem>>, vector<32x128xf32>,
        %cst_31 = arith.constant 0.000000e+00 : f32
        %45 = vector.broadcast %cst_31 : f32 to vector<32x128xf32>
        %c1056 = arith.constant 1056 : index
        %c0_32 = arith.constant 0 : index
        %46 = vector.load %arg11[%c1056, %c0_32] : memref<1088x128xf32, #tpu.memory_space<vmem>>, vector<32x128xf32>
        tpu.vector_store %arg11[%c1056, %c0_32], %45 {strides = array<i32>} : memref<1088x128xf32, #tpu.memory_space<vmem>>, vector<32x128xf32>,
      } else {
      }
      %c0 = arith.constant 0 : index
      %c0_7 = arith.constant 0 : index
      %20 = vector.load %arg2[%c0, %c0_7] : memref<256x128xf32, #tpu.memory_space<vmem>>, vector<256x128xf32>
      %c0_8 = arith.constant 0 : index
      %c0_9 = arith.constant 0 : index
      %21 = vector.load %arg4[%c0_8, %c0_9] : memref<128x128xf32, #tpu.memory_space<vmem>>, vector<128x128xf32>
      %cst = arith.constant dense<0.000000e+00> : vector<256x128xf32>
      %22 = tpu.matmul %20, %21, %cst {dimension_numbers = #tpu.dot_dimension_numbers<[1], [0], [0], [1], [0, 0, 1, 1], [], []>} : vector<256x128xf32>, vector<128x128xf32>, vector<256x128xf32> -> vector<256x128xf32>
      %c0_10 = arith.constant 0 : index
      %c0_11 = arith.constant 0 : index
      %23 = vector.load %arg13[%c0_10, %c0_11] : memref<8x128xf32, #tpu.memory_space<vmem>>, vector<1x128xf32>
      %cst_12 = arith.constant dense<0.000000e+00> : vector<128xf32>
      %24 = vector.multi_reduction <add>, %22, %cst_12 [0] : vector<256x128xf32> to vector<128xf32>
      %25 = vector.shape_cast %24 : vector<128xf32> to vector<1x128xf32>
      %26 = arith.addf %23, %25 : vector<1x128xf32>
      %c0_13 = arith.constant 0 : index
      %c0_14 = arith.constant 0 : index
      %27 = vector.load %arg13[%c0_13, %c0_14] : memref<8x128xf32, #tpu.memory_space<vmem>>, vector<1x128xf32>
      tpu.vector_store %arg13[%c0_13, %c0_14], %26 {strides = array<i32>} : memref<8x128xf32, #tpu.memory_space<vmem>>, vector<1x128xf32>,
      %c1 = arith.constant 1 : index
      %c0_15 = arith.constant 0 : index
      %28 = vector.load %arg13[%c1, %c0_15] : memref<8x128xf32, #tpu.memory_space<vmem>>, vector<1x128xf32>
      %29 = arith.mulf %22, %22 : vector<256x128xf32>
      %cst_16 = arith.constant dense<0.000000e+00> : vector<128xf32>
      %30 = vector.multi_reduction <add>, %29, %cst_16 [0] : vector<256x128xf32> to vector<128xf32>
      %31 = vector.shape_cast %30 : vector<128xf32> to vector<1x128xf32>
      %32 = arith.addf %28, %31 : vector<1x128xf32>
      %c1_17 = arith.constant 1 : index
      %c0_18 = arith.constant 0 : index
      %33 = vector.load %arg13[%c1_17, %c0_18] : memref<8x128xf32, #tpu.memory_space<vmem>>, vector<1x128xf32>
      tpu.vector_store %arg13[%c1_17, %c0_18], %32 {strides = array<i32>} : memref<8x128xf32, #tpu.memory_space<vmem>>, vector<1x128xf32>,
      %34 = arith.index_cast %2 : i32 to index
      %c0_19 = arith.constant 0 : index
      %35 = vector.load %arg11[%34, %c0_19] : memref<1088x128xf32, #tpu.memory_space<vmem>>, vector<256x128xf32>
      tpu.vector_store %arg11[%34, %c0_19], %22 {strides = array<i32>} : memref<1088x128xf32, #tpu.memory_space<vmem>>, vector<256x128xf32>,
      %c3_i32_20 = arith.constant 3 : i32
      %36 = arith.cmpi eq, %arg1, %c3_i32_20 : i32
      %37 = arith.extui %36 : i1 to i32
      %c0_i32_21 = arith.constant 0 : i32
      %38 = arith.cmpi ne, %37, %c0_i32_21 : i32
      scf.if %38 {
        %c0_22 = arith.constant 0 : index
        %c0_23 = arith.constant 0 : index
        %39 = vector.load %arg13[%c0_22, %c0_23] : memref<8x128xf32, #tpu.memory_space<vmem>>, vector<1x128xf32>
        %cst_24 = arith.constant 0.001953125 : f32
        %40 = vector.broadcast %cst_24 : f32 to vector<1x128xf32>
        %41 = arith.mulf %39, %40 : vector<1x128xf32>
        %c1_25 = arith.constant 1 : index
        %c0_26 = arith.constant 0 : index
        %42 = vector.load %arg13[%c1_25, %c0_26] : memref<8x128xf32, #tpu.memory_space<vmem>>, vector<1x128xf32>
        %cst_27 = arith.constant 0.001953125 : f32
        %43 = vector.broadcast %cst_27 : f32 to vector<1x128xf32>
        %44 = arith.mulf %42, %43 : vector<1x128xf32>
        %45 = arith.mulf %41, %41 : vector<1x128xf32>
        %46 = arith.subf %44, %45 : vector<1x128xf32>
        %c0_28 = arith.constant 0 : index
        %c0_29 = arith.constant 0 : index
        %47 = vector.load %arg6[%c0_28, %c0_29] : memref<1x128xf32, #tpu.memory_space<vmem>>, vector<1x128xf32>
        %cst_30 = arith.constant 9.99999974E-6 : f32
        %48 = vector.broadcast %cst_30 : f32 to vector<1x128xf32>
        %49 = arith.addf %46, %48 : vector<1x128xf32>
        %50 = math.rsqrt %49 : vector<1x128xf32>
        %51 = arith.mulf %47, %50 : vector<1x128xf32>
        %c2 = arith.constant 2 : index
        %c0_31 = arith.constant 0 : index
        %52 = vector.load %arg13[%c2, %c0_31] : memref<8x128xf32, #tpu.memory_space<vmem>>, vector<1x128xf32>
        tpu.vector_store %arg13[%c2, %c0_31], %51 {strides = array<i32>} : memref<8x128xf32, #tpu.memory_space<vmem>>, vector<1x128xf32>,
        %c0_32 = arith.constant 0 : index
        %c0_33 = arith.constant 0 : index
        %53 = vector.load %arg7[%c0_32, %c0_33] : memref<1x128xf32, #tpu.memory_space<vmem>>, vector<1x128xf32>
        %54 = arith.mulf %41, %51 : vector<1x128xf32>
        %55 = arith.subf %53, %54 : vector<1x128xf32>
        %c3 = arith.constant 3 : index
        %c0_34 = arith.constant 0 : index
        %56 = vector.load %arg13[%c3, %c0_34] : memref<8x128xf32, #tpu.memory_space<vmem>>, vector<1x128xf32>
        tpu.vector_store %arg13[%c3, %c0_34], %55 {strides = array<i32>} : memref<8x128xf32, #tpu.memory_space<vmem>>, vector<1x128xf32>,
      } else {
      }
    } else {
    }
    %c1_i32 = arith.constant 1 : i32
    %8 = arith.cmpi eq, %arg0, %c1_i32 : i32
    %9 = arith.extui %8 : i1 to i32
    %c0_i32_2 = arith.constant 0 : i32
    %10 = arith.cmpi ne, %9, %c0_i32_2 : i32
    scf.if %10 {
      %17 = arith.index_cast %2 : i32 to index
      %c0 = arith.constant 0 : index
      %18 = vector.load %arg11[%17, %c0] : memref<1088x128xf32, #tpu.memory_space<vmem>>, vector<256x128xf32>
      %c2 = arith.constant 2 : index
      %c0_5 = arith.constant 0 : index
      %19 = vector.load %arg13[%c2, %c0_5] : memref<8x128xf32, #tpu.memory_space<vmem>>, vector<1x128xf32>
      %20 = vector.broadcast %19 : vector<1x128xf32> to vector<256x128xf32>
      %21 = arith.mulf %18, %20 : vector<256x128xf32>
      %c3 = arith.constant 3 : index
      %c0_6 = arith.constant 0 : index
      %22 = vector.load %arg13[%c3, %c0_6] : memref<8x128xf32, #tpu.memory_space<vmem>>, vector<1x128xf32>
      %23 = vector.broadcast %22 : vector<1x128xf32> to vector<256x128xf32>
      %24 = arith.addf %21, %23 : vector<256x128xf32>
      %cst = arith.constant 0.000000e+00 : f32
      %25 = vector.broadcast %cst : f32 to vector<256x128xf32>
      %26 = arith.cmpf ogt, %24, %25 : vector<256x128xf32>
      %cst_7 = arith.constant 0.00999999977 : f32
      %27 = vector.broadcast %cst_7 : f32 to vector<256x128xf32>
      %28 = arith.mulf %27, %24 : vector<256x128xf32>
      %29 = arith.select %26, %24, %28 : vector<256x128xi1>, vector<256x128xf32>
      %c0_8 = arith.constant 0 : index
      %c0_9 = arith.constant 0 : index
      %30 = vector.load %arg3[%c0_8, %c0_9] : memref<256x1xf32, #tpu.memory_space<vmem>>, vector<256x1xf32>
      %31 = vector.broadcast %30 : vector<256x1xf32> to vector<256x128xf32>
      %32 = arith.mulf %29, %31 : vector<256x128xf32>
      %33 = arith.index_cast %2 : i32 to index
      %c0_10 = arith.constant 0 : index
      %34 = vector.load %arg11[%33, %c0_10] : memref<1088x128xf32, #tpu.memory_space<vmem>>, vector<256x128xf32>
      tpu.vector_store %arg11[%33, %c0_10], %32 {strides = array<i32>} : memref<1088x128xf32, #tpu.memory_space<vmem>>, vector<256x128xf32>,
    } else {
    }
    %c2_i32 = arith.constant 2 : i32
    %11 = arith.cmpi eq, %arg0, %c2_i32 : i32
    %12 = arith.extui %11 : i1 to i32
    %c0_i32_3 = arith.constant 0 : i32
    %13 = arith.cmpi ne, %12, %c0_i32_3 : i32
    scf.if %13 {
      %c-24_i32 = arith.constant -24 : i32
      %17 = arith.addi %2, %c-24_i32 : i32
      %c-1_i32 = arith.constant -1 : i32
      %18 = arith.addi %17, %c-1_i32 : i32
      %19 = arith.index_cast %18 : i32 to index
      %c0 = arith.constant 0 : index
      %20 = vector.load %arg11[%19, %c0] : memref<1088x128xf32, #tpu.memory_space<vmem>>, vector<256x128xf32>
      %c-24_i32_5 = arith.constant -24 : i32
      %21 = arith.addi %2, %c-24_i32_5 : i32
      %c0_i32_6 = arith.constant 0 : i32
      %22 = arith.addi %21, %c0_i32_6 : i32
      %23 = arith.index_cast %22 : i32 to index
      %c0_7 = arith.constant 0 : index
      %24 = vector.load %arg11[%23, %c0_7] : memref<1088x128xf32, #tpu.memory_space<vmem>>, vector<256x128xf32>
      %c-24_i32_8 = arith.constant -24 : i32
      %25 = arith.addi %2, %c-24_i32_8 : i32
      %c1_i32_9 = arith.constant 1 : i32
      %26 = arith.addi %25, %c1_i32_9 : i32
      %27 = arith.index_cast %26 : i32 to index
      %c0_10 = arith.constant 0 : index
      %28 = vector.load %arg11[%27, %c0_10] : memref<1088x128xf32, #tpu.memory_space<vmem>>, vector<256x128xf32>
      %c0_i32_11 = arith.constant 0 : i32
      %29 = arith.addi %2, %c0_i32_11 : i32
      %c-1_i32_12 = arith.constant -1 : i32
      %30 = arith.addi %29, %c-1_i32_12 : i32
      %31 = arith.index_cast %30 : i32 to index
      %c0_13 = arith.constant 0 : index
      %32 = vector.load %arg11[%31, %c0_13] : memref<1088x128xf32, #tpu.memory_space<vmem>>, vector<256x128xf32>
      %c0_i32_14 = arith.constant 0 : i32
      %33 = arith.addi %2, %c0_i32_14 : i32
      %c0_i32_15 = arith.constant 0 : i32
      %34 = arith.addi %33, %c0_i32_15 : i32
      %35 = arith.index_cast %34 : i32 to index
      %c0_16 = arith.constant 0 : index
      %36 = vector.load %arg11[%35, %c0_16] : memref<1088x128xf32, #tpu.memory_space<vmem>>, vector<256x128xf32>
      %c0_i32_17 = arith.constant 0 : i32
      %37 = arith.addi %2, %c0_i32_17 : i32
      %c1_i32_18 = arith.constant 1 : i32
      %38 = arith.addi %37, %c1_i32_18 : i32
      %39 = arith.index_cast %38 : i32 to index
      %c0_19 = arith.constant 0 : index
      %40 = vector.load %arg11[%39, %c0_19] : memref<1088x128xf32, #tpu.memory_space<vmem>>, vector<256x128xf32>
      %c24_i32 = arith.constant 24 : i32
      %41 = arith.addi %2, %c24_i32 : i32
      %c-1_i32_20 = arith.constant -1 : i32
      %42 = arith.addi %41, %c-1_i32_20 : i32
      %43 = arith.index_cast %42 : i32 to index
      %c0_21 = arith.constant 0 : index
      %44 = vector.load %arg11[%43, %c0_21] : memref<1088x128xf32, #tpu.memory_space<vmem>>, vector<256x128xf32>
      %c24_i32_22 = arith.constant 24 : i32
      %45 = arith.addi %2, %c24_i32_22 : i32
      %c0_i32_23 = arith.constant 0 : i32
      %46 = arith.addi %45, %c0_i32_23 : i32
      %47 = arith.index_cast %46 : i32 to index
      %c0_24 = arith.constant 0 : index
      %48 = vector.load %arg11[%47, %c0_24] : memref<1088x128xf32, #tpu.memory_space<vmem>>, vector<256x128xf32>
      %c24_i32_25 = arith.constant 24 : i32
      %49 = arith.addi %2, %c24_i32_25 : i32
      %c1_i32_26 = arith.constant 1 : i32
      %50 = arith.addi %49, %c1_i32_26 : i32
      %51 = arith.index_cast %50 : i32 to index
      %c0_27 = arith.constant 0 : index
      %52 = vector.load %arg11[%51, %c0_27] : memref<1088x128xf32, #tpu.memory_space<vmem>>, vector<256x128xf32>
      %53 = tpu.concatenate %20, %24, %28, %32, %36, %40, %44, %48, %52 in 1 : vector<256x128xf32>, vector<256x128xf32>, vector<256x128xf32>, vector<256x128xf32>, vector<256x128xf32>, vector<256x128xf32>, vector<256x128xf32>, vector<256x128xf32>, vector<256x128xf32> -> vector<256x1152xf32>
      %c0_28 = arith.constant 0 : index
      %c0_29 = arith.constant 0 : index
      %54 = vector.load %arg5[%c0_28, %c0_29] : memref<1152x128xf32, #tpu.memory_space<vmem>>, vector<1152x128xf32>
      %cst = arith.constant dense<0.000000e+00> : vector<256x128xf32>
      %55 = tpu.matmul %53, %54, %cst {dimension_numbers = #tpu.dot_dimension_numbers<[1], [0], [0], [1], [0, 0, 1, 1], [], []>} : vector<256x1152xf32>, vector<1152x128xf32>, vector<256x128xf32> -> vector<256x128xf32>
      %c0_30 = arith.constant 0 : index
      %c0_31 = arith.constant 0 : index
      %56 = vector.load %arg3[%c0_30, %c0_31] : memref<256x1xf32, #tpu.memory_space<vmem>>, vector<256x1xf32>
      %57 = vector.broadcast %56 : vector<256x1xf32> to vector<256x128xf32>
      %58 = arith.mulf %55, %57 : vector<256x128xf32>
      %c0_32 = arith.constant 0 : index
      %c0_33 = arith.constant 0 : index
      %59 = vector.load %arg14[%c0_32, %c0_33] : memref<8x128xf32, #tpu.memory_space<vmem>>, vector<1x128xf32>
      %cst_34 = arith.constant dense<0.000000e+00> : vector<128xf32>
      %60 = vector.multi_reduction <add>, %58, %cst_34 [0] : vector<256x128xf32> to vector<128xf32>
      %61 = vector.shape_cast %60 : vector<128xf32> to vector<1x128xf32>
      %62 = arith.addf %59, %61 : vector<1x128xf32>
      %c0_35 = arith.constant 0 : index
      %c0_36 = arith.constant 0 : index
      %63 = vector.load %arg14[%c0_35, %c0_36] : memref<8x128xf32, #tpu.memory_space<vmem>>, vector<1x128xf32>
      tpu.vector_store %arg14[%c0_35, %c0_36], %62 {strides = array<i32>} : memref<8x128xf32, #tpu.memory_space<vmem>>, vector<1x128xf32>,
      %c1 = arith.constant 1 : index
      %c0_37 = arith.constant 0 : index
      %64 = vector.load %arg14[%c1, %c0_37] : memref<8x128xf32, #tpu.memory_space<vmem>>, vector<1x128xf32>
      %65 = arith.mulf %58, %55 : vector<256x128xf32>
      %cst_38 = arith.constant dense<0.000000e+00> : vector<128xf32>
      %66 = vector.multi_reduction <add>, %65, %cst_38 [0] : vector<256x128xf32> to vector<128xf32>
      %67 = vector.shape_cast %66 : vector<128xf32> to vector<1x128xf32>
      %68 = arith.addf %64, %67 : vector<1x128xf32>
      %c1_39 = arith.constant 1 : index
      %c0_40 = arith.constant 0 : index
      %69 = vector.load %arg14[%c1_39, %c0_40] : memref<8x128xf32, #tpu.memory_space<vmem>>, vector<1x128xf32>
      tpu.vector_store %arg14[%c1_39, %c0_40], %68 {strides = array<i32>} : memref<8x128xf32, #tpu.memory_space<vmem>>, vector<1x128xf32>,
      %70 = arith.index_cast %4 : i32 to index
      %c0_41 = arith.constant 0 : index
      %71 = vector.load %arg12[%70, %c0_41] : memref<1024x128xf32, #tpu.memory_space<vmem>>, vector<256x128xf32>
      tpu.vector_store %arg12[%70, %c0_41], %55 {strides = array<i32>} : memref<1024x128xf32, #tpu.memory_space<vmem>>, vector<256x128xf32>,
      %c3_i32_42 = arith.constant 3 : i32
      %72 = arith.cmpi eq, %arg1, %c3_i32_42 : i32
      %73 = arith.extui %72 : i1 to i32
      %c0_i32_43 = arith.constant 0 : i32
      %74 = arith.cmpi ne, %73, %c0_i32_43 : i32
      scf.if %74 {
        %c0_44 = arith.constant 0 : index
        %c0_45 = arith.constant 0 : index
        %75 = vector.load %arg14[%c0_44, %c0_45] : memref<8x128xf32, #tpu.memory_space<vmem>>, vector<1x128xf32>
        %cst_46 = arith.constant 0.001953125 : f32
        %76 = vector.broadcast %cst_46 : f32 to vector<1x128xf32>
        %77 = arith.mulf %75, %76 : vector<1x128xf32>
        %c1_47 = arith.constant 1 : index
        %c0_48 = arith.constant 0 : index
        %78 = vector.load %arg14[%c1_47, %c0_48] : memref<8x128xf32, #tpu.memory_space<vmem>>, vector<1x128xf32>
        %cst_49 = arith.constant 0.001953125 : f32
        %79 = vector.broadcast %cst_49 : f32 to vector<1x128xf32>
        %80 = arith.mulf %78, %79 : vector<1x128xf32>
        %81 = arith.mulf %77, %77 : vector<1x128xf32>
        %82 = arith.subf %80, %81 : vector<1x128xf32>
        %c0_50 = arith.constant 0 : index
        %c0_51 = arith.constant 0 : index
        %83 = vector.load %arg8[%c0_50, %c0_51] : memref<1x128xf32, #tpu.memory_space<vmem>>, vector<1x128xf32>
        %cst_52 = arith.constant 9.99999974E-6 : f32
        %84 = vector.broadcast %cst_52 : f32 to vector<1x128xf32>
        %85 = arith.addf %82, %84 : vector<1x128xf32>
        %86 = math.rsqrt %85 : vector<1x128xf32>
        %87 = arith.mulf %83, %86 : vector<1x128xf32>
        %c2 = arith.constant 2 : index
        %c0_53 = arith.constant 0 : index
        %88 = vector.load %arg14[%c2, %c0_53] : memref<8x128xf32, #tpu.memory_space<vmem>>, vector<1x128xf32>
        tpu.vector_store %arg14[%c2, %c0_53], %87 {strides = array<i32>} : memref<8x128xf32, #tpu.memory_space<vmem>>, vector<1x128xf32>,
        %c0_54 = arith.constant 0 : index
        %c0_55 = arith.constant 0 : index
        %89 = vector.load %arg9[%c0_54, %c0_55] : memref<1x128xf32, #tpu.memory_space<vmem>>, vector<1x128xf32>
        %90 = arith.mulf %77, %87 : vector<1x128xf32>
        %91 = arith.subf %89, %90 : vector<1x128xf32>
        %c3 = arith.constant 3 : index
        %c0_56 = arith.constant 0 : index
        %92 = vector.load %arg14[%c3, %c0_56] : memref<8x128xf32, #tpu.memory_space<vmem>>, vector<1x128xf32>
        tpu.vector_store %arg14[%c3, %c0_56], %91 {strides = array<i32>} : memref<8x128xf32, #tpu.memory_space<vmem>>, vector<1x128xf32>,
      } else {
      }
    } else {
    }
    %c3_i32 = arith.constant 3 : i32
    %14 = arith.cmpi eq, %arg0, %c3_i32 : i32
    %15 = arith.extui %14 : i1 to i32
    %c0_i32_4 = arith.constant 0 : i32
    %16 = arith.cmpi ne, %15, %c0_i32_4 : i32
    scf.if %16 {
      %17 = arith.index_cast %4 : i32 to index
      %c0 = arith.constant 0 : index
      %18 = vector.load %arg12[%17, %c0] : memref<1024x128xf32, #tpu.memory_space<vmem>>, vector<256x128xf32>
      %c2 = arith.constant 2 : index
      %c0_5 = arith.constant 0 : index
      %19 = vector.load %arg14[%c2, %c0_5] : memref<8x128xf32, #tpu.memory_space<vmem>>, vector<1x128xf32>
      %20 = vector.broadcast %19 : vector<1x128xf32> to vector<256x128xf32>
      %21 = arith.mulf %18, %20 : vector<256x128xf32>
      %c3 = arith.constant 3 : index
      %c0_6 = arith.constant 0 : index
      %22 = vector.load %arg14[%c3, %c0_6] : memref<8x128xf32, #tpu.memory_space<vmem>>, vector<1x128xf32>
      %23 = vector.broadcast %22 : vector<1x128xf32> to vector<256x128xf32>
      %24 = arith.addf %21, %23 : vector<256x128xf32>
      %cst = arith.constant 0.000000e+00 : f32
      %25 = vector.broadcast %cst : f32 to vector<256x128xf32>
      %26 = arith.cmpf ogt, %24, %25 : vector<256x128xf32>
      %cst_7 = arith.constant 0.00999999977 : f32
      %27 = vector.broadcast %cst_7 : f32 to vector<256x128xf32>
      %28 = arith.mulf %27, %24 : vector<256x128xf32>
      %29 = arith.select %26, %24, %28 : vector<256x128xi1>, vector<256x128xf32>
      %c0_8 = arith.constant 0 : index
      %c0_9 = arith.constant 0 : index
      %30 = vector.load %arg2[%c0_8, %c0_9] : memref<256x128xf32, #tpu.memory_space<vmem>>, vector<256x128xf32>
      %31 = arith.addf %29, %30 : vector<256x128xf32>
      %c0_10 = arith.constant 0 : index
      %c0_11 = arith.constant 0 : index
      %32 = vector.load %arg10[%c0_10, %c0_11] : memref<256x128xf32, #tpu.memory_space<vmem>>, vector<256x128xf32>
      tpu.vector_store %arg10[%c0_10, %c0_11], %31 {strides = array<i32>} : memref<256x128xf32, #tpu.memory_space<vmem>>, vector<256x128xf32>,
    } else {
    }
    return
  }
  func.func @transform_0(%arg0: i32, %arg1: i32) -> (i32, i32) {
    %c0_i32 = arith.constant 0 : i32
    %0 = arith.cmpi eq, %arg0, %c0_i32 : i32
    %c3_i32 = arith.constant 3 : i32
    %1 = arith.cmpi eq, %arg0, %c3_i32 : i32
    %2 = arith.ori %0, %1 : i1
    %c3_i32_0 = arith.constant 3 : i32
    %3 = arith.select %2, %arg1, %c3_i32_0 : i32
    %c0_i32_1 = arith.constant 0 : i32
    %c0_i32_2 = arith.constant 0 : i32
    return %3, %c0_i32_1 : i32, i32
  }
  func.func @transform_1(%arg0: i32, %arg1: i32) -> (i32, i32) {
    %c0_i32 = arith.constant 0 : i32
    %0 = arith.cmpi eq, %arg0, %c0_i32 : i32
    %c3_i32 = arith.constant 3 : i32
    %1 = arith.cmpi eq, %arg0, %c3_i32 : i32
    %c3_i32_0 = arith.constant 3 : i32
    %2 = arith.select %1, %c3_i32_0, %arg1 : i32
    %c0_i32_1 = arith.constant 0 : i32
    %3 = arith.select %0, %c0_i32_1, %2 : i32
    %c0_i32_2 = arith.constant 0 : i32
    %c0_i32_3 = arith.constant 0 : i32
    return %3, %c0_i32_2 : i32, i32
  }
  func.func @transform_2(%arg0: i32, %arg1: i32) -> (i32, i32) {
    %c0_i32 = arith.constant 0 : i32
    %c0_i32_0 = arith.constant 0 : i32
    %c0_i32_1 = arith.constant 0 : i32
    return %c0_i32, %c0_i32_0 : i32, i32
  }
  func.func @transform_3(%arg0: i32, %arg1: i32) -> (i32, i32) {
    %c0_i32 = arith.constant 0 : i32
    %c0_i32_0 = arith.constant 0 : i32
    %c0_i32_1 = arith.constant 0 : i32
    return %c0_i32, %c0_i32_0 : i32, i32
  }
  func.func @transform_4(%arg0: i32, %arg1: i32) -> (i32, i32) {
    %c0_i32 = arith.constant 0 : i32
    %c0_i32_0 = arith.constant 0 : i32
    %c0_i32_1 = arith.constant 0 : i32
    return %c0_i32, %c0_i32_0 : i32, i32
  }
  func.func @transform_5(%arg0: i32, %arg1: i32) -> (i32, i32) {
    %c0_i32 = arith.constant 0 : i32
    %c0_i32_0 = arith.constant 0 : i32
    %c0_i32_1 = arith.constant 0 : i32
    return %c0_i32, %c0_i32_0 : i32, i32
  }
  func.func @transform_6(%arg0: i32, %arg1: i32) -> (i32, i32) {
    %c0_i32 = arith.constant 0 : i32
    %c0_i32_0 = arith.constant 0 : i32
    %c0_i32_1 = arith.constant 0 : i32
    return %c0_i32, %c0_i32_0 : i32, i32
  }
  func.func @transform_7(%arg0: i32, %arg1: i32) -> (i32, i32) {
    %c0_i32 = arith.constant 0 : i32
    %c0_i32_0 = arith.constant 0 : i32
    %c0_i32_1 = arith.constant 0 : i32
    return %c0_i32, %c0_i32_0 : i32, i32
  }
  func.func @transform_8(%arg0: i32, %arg1: i32) -> (i32, i32) {
    %c3_i32 = arith.constant 3 : i32
    %0 = arith.cmpi eq, %arg0, %c3_i32 : i32
    %c0_i32 = arith.constant 0 : i32
    %1 = arith.select %0, %arg1, %c0_i32 : i32
    %c0_i32_0 = arith.constant 0 : i32
    %c0_i32_1 = arith.constant 0 : i32
    return %1, %c0_i32_0 : i32, i32
  }
}

</mosaic_0001>

<bundles_post_ra>
// kernel: residual_block.1
= control target key start
LH: loop header
LB: loop body
LE: loop exit
PB: predicated region body
PF: predicated region fallthrough
CT: control target
= control target key end

     0   :  { %s4978_s27 = smov 0   ;;  %s4980_s28 = smov 0   ;;  %s7192_s0 = inlined_call_operand.vmem [shape: f32[1024,128], index: 0, kind: input, shape index: {}]   ;;  %s7193_s1 = inlined_call_operand.vmem [shape: f32[1024,1], index: 1, kind: input, shape index: {}]   ;;  %s7194_s2 = inlined_call_operand.vmem [shape: f32[128,128], index: 2, kind: input, shape index: {}]   ;;  %s7195_s3 = inlined_call_operand.vmem [shape: f32[1152,128], index: 3, kind: input, shape index: {}]   ;;  %s7196_s4 = inlined_call_operand.vmem [shape: f32[1,128], index: 4, kind: input, shape index: {}]   ;;  %s7197_s5 = inlined_call_operand.vmem [shape: f32[1,128], index: 5, kind: input, shape index: {}]   ;;  %s7198_s6 = inlined_call_operand.vmem [shape: f32[1,128], index: 6, kind: input, shape index: {}]   ;;  %s7199_s7 = inlined_call_operand.vmem [shape: f32[1,128], index: 7, kind: input, shape index: {}]   ;;  %s7200_s8 = inlined_call_operand.vmem [shape: f32[1024,128], index: 8, kind: output, shape index: {}]  }
   0x1   :  { %s4982_s29 = smov 0   ;;  %s4984_s30 = smov 0  }
   0x2   :  { %s4986_s9 = smov 0  }
   0x3 LB: > { %s27_s10 = sadd.s32 1, %s4919_s29  ;;  %s30_s11 = sadd.s32 1, %s4923_s30  ;;  %s4927_s9 = sphi %s4986_s9, %s18_s9   ;;  %s4923_s30 = sphi %s4984_s30, %s7338_s30   ;;  %s4919_s29 = sphi %s4982_s29, %s7337_s29   ;;  %s4915_s28 = sphi %s4980_s28, %s7336_s28   ;;  %s4911_s27 = sphi %s4978_s27, %s7335_s27  }
   0x4   : > { %p28_p0 = scmp.ge.s32.totalorder %s27_s10, 4  ;;  %p3725_p1 = scmp.ge.s32.totalorder %s4927_s9, 1 }
   0x5   : > { %p322_p2 = scmp.lt.s32.totalorder %s4927_s9, 17 }
   0x6   : > { %s7340_s10 = smov (%p28_p0, %s27_s10), 0  ;;  %s7342_s11 = smov (!%p28_p0, %s30_s11), %s4923_s30 }
   0x7   : > { %p323_p3 = pnand %p3725_p1, %p322_p2  ;;  %p32_p4 = scmp.ge.s32.totalorder %s7342_s11, 4 }
   0x8   : > { %p371_p5 = scmp.eq.s32.totalorder (!%p323_p3), %s4915_s28, 0  ;;  %p372_p6 = scmp.eq.s32.totalorder (!%p323_p3), %s4915_s28, 3 }
   0x9   : > { %s7344_s11 = smov (%p32_p4, %s7342_s11), 0  ;;  %326 = sbr.rel (%p323_p3) target bundleno = 1326 (0x52e), region = 52 }
   0xa   : > { %7258 = sst [smem:[#allocation6_spill]] %s7344_s11  ;;  %s5015_s12 = sshll.u32 (!%p323_p3), %s4911_s27, 8 }
   0xb   : > { %p373_p7 = por (!%p323_p3), %p372_p6, %p371_p5  ;;  %p3733_p11 = scmp.ne.s32.totalorder (!%p323_p3), %s4915_s28, 0 }
  0x10   : > { %s387_s13 = scalar_select %p372_p6, 3, %s4911_s27 }
  0x11   : > { %s374_s14 = scalar_select %p373_p7, %s4911_s27, 3 }
  0x12   : > { %s7346_s13 = smov (%p371_p5, %s387_s13), 0  ;;  %p3734_p12 = scmp.ne.s32.totalorder (!%p3733_p11), %s4911_s27, 0 }
  0x13   : > { %s3726_s15 = sshll.u32 %s374_s14, 5  ;;  %s3728_s16 = sshll.u32 %s7346_s13, 5 }
  0x14   : > { %p376_p8 = scmp.lt.s32.totalorder %s3726_s15, 127  ;;  %p390_p9 = scmp.lt.s32.totalorder %s3728_s16, 127 }
  0x15   : > { %s400_s25 = scalar_select %p372_p6, %s4911_s27, 0 }
  0x16   : > { %s7348_s15 = smov (!%p376_p8, %s3726_s15), 127  ;;  %s7350_s16 = smov (!%p390_p9, %s3728_s16), 127 }
  0x17   : > { %s3727_s17 = sshll.u32 %s7348_s15, 3  ;;  %s3729_s21 = sshll.u32 %s7350_s16, 3 }
  0x18   : > { %s5026_s20 = scalar_lea.vmem %s7192_s0, %s3727_s17  ;;  %s5031_s24 = scalar_lea.vmem %s7193_s1, %s3729_s21 }
  0x19   : > { %s3730_s26 = sshll.u32 %s400_s25, 5  ;;  %414 = sbr.rel (%p3733_p11) target bundleno = 399 (0x18f), region = 56 }
  0x1a   : > { %p402_p10 = scmp.lt.s32.totalorder %s3730_s26, 127 }
  0x1c   : > { %s7352_s26 = smov (!%p402_p10, %s3730_s26), 127 }
  0x1d   : > { %s3731_s13 = sshll.u32 %s7352_s26, 3 }
  0x1e   : > { %s5039_s15 = scalar_lea.vmem %s7200_s8, %s3731_s13 }
  0x20   : > { %418 = sbr.rel (%p3734_p12) target bundleno = 39 (0x27), region = 60  ;;  %v4929_v0 = vmov (!%p3734_p12), 0.0  }
  0x21   : > { %419 = vst [vmem:[#allocation4] sm:$0x3] (!%p3734_p12), %v4929_v0  ;;  %420 = vst [vmem:[#allocation5] sm:$0x3] (!%p3734_p12), %v4929_v0 }
  0x22   : > { %421 = vst [vmem:[#allocation2] sm:$0xff] (!%p3734_p12), %v4929_v0  ;;  %422 = vst [vmem:[#allocation2 + $0x8] sm:$0xff] (!%p3734_p12), %v4929_v0 }
  0x23   : > { %423 = vst [vmem:[#allocation2 + $0x10] sm:$0xff] (!%p3734_p12), %v4929_v0  ;;  %424 = vst [vmem:[#allocation2 + $0x18] sm:$0xff] (!%p3734_p12), %v4929_v0 }
  0x24   : > { %425 = vst [vmem:[#allocation2 + $0x420] sm:$0xff] (!%p3734_p12), %v4929_v0  ;;  %426 = vst [vmem:[#allocation2 + $0x428] sm:$0xff] (!%p3734_p12), %v4929_v0 }
  0x25   : > { %427 = vst [vmem:[#allocation2 + $0x430] sm:$0xff] (!%p3734_p12), %v4929_v0  ;;  %428 = vst [vmem:[#allocation2 + $0x438] sm:$0xff] (!%p3734_p12), %v4929_v0 }
  0x27 PF: > { %v461_v1 = vld [vmem:[%s7194_s2] sm:$0xff]  ;;  %v462_v2 = vld [vmem:[%s7194_s2 + $0x8] sm:$0xff]  ;;  %v463_v3 = vld [vmem:[%s7194_s2 + $0x10] sm:$0xff]  ;;  %s5126_s25 = scalar_lea.vmem [#allocation2], %s5015_s12  ;;  %p3768_p13 = scmp.ne.s32.totalorder %s4911_s27, 3 }
  0x28   : > { %v4397_v4 = vpack.c.bf16 %v462_v2, %v461_v1  ;;  %v464_v5 = vld [vmem:[%s7194_s2 + $0x18] sm:$0xff]  ;;  %v465_v7 = vld [vmem:[%s7194_s2 + $0x20] sm:$0xff]  ;;  %v466_v8 = vld [vmem:[%s7194_s2 + $0x28] sm:$0xff] }
  0x29   : > { %v4401_v6 = vpack.c.bf16 %v464_v5, %v463_v3  ;;  %v4405_v9 = vpack.c.bf16 %v466_v8, %v465_v7  ;;  %v429_v10 = vld [vmem:[%s5026_s20] sm:$0xff]  ;;  %v467_v11 = vld [vmem:[%s7194_s2 + $0x30] sm:$0xff]  ;;  %v468_v12 = vld [vmem:[%s7194_s2 + $0x38] sm:$0xff] }
  0x2a   : > { %4398 = vmatprep.subr.bf16.mxu0 %v4397_v4  ;;  %4653 = vmatprep.subr.bf16.mxu1 %v4397_v4  ;;  %v4409_v13 = vpack.c.bf16 %v468_v12, %v467_v11  ;;  %v469_v14 = vld [vmem:[%s7194_s2 + $0x40] sm:$0xff]  ;;  %v470_v15 = vld [vmem:[%s7194_s2 + $0x48] sm:$0xff]  ;;  %v471_v18 = vld [vmem:[%s7194_s2 + $0x50] sm:$0xff] }
  0x2b   : > { %4400 = vmatpush3.bf16.msra.mxu0 %v4397_v4  ;;  %4661 = vmatpush3.bf16.msra.mxu1 %v4397_v4  ;;  %v445_v16 = vld [vmem:[%s5026_s20 + $0x80] sm:$0xff]  ;;  %v4413_v17 = vpack.c.bf16 %v470_v15, %v469_v14  ;;  %v472_v19 = vld [vmem:[%s7194_s2 + $0x58] sm:$0xff]  ;;  %v474_v22 = vld [vmem:[%s7194_s2 + $0x68] sm:$0xff] }
  0x2c   : > { %4402 = vmatprep.subr.bf16.mxu0 %v4401_v6  ;;  %4654 = vmatprep.subr.bf16.mxu1 %v4401_v6  ;;  %v4417_v20 = vpack.c.bf16 %v472_v19, %v471_v18  ;;  %v473_v21 = vld [vmem:[%s7194_s2 + $0x60] sm:$0xff]  ;;  %v475_v24 = vld [vmem:[%s7194_s2 + $0x70] sm:$0xff]  ;;  %v476_v25 = vld [vmem:[%s7194_s2 + $0x78] sm:$0xff] }
  0x2d   : > { %4269 = vmatprep.mubr.f32.mxu0 %v429_v10  ;;  %4293 = vmatprep.mubr.f32.mxu1 %v445_v16  ;;  %v4421_v23 = vpack.c.bf16 %v474_v22, %v473_v21  ;;  %v4425_v26 = vpack.c.bf16 %v476_v25, %v475_v24  ;;  %v430_v27 = vld [vmem:[%s5026_s20 + $0x8] sm:$0xff]  ;;  %v431_v29 = vld [vmem:[%s5026_s20 + $0x10] sm:$0xff]  ;;  %v432_v31 = vld [vmem:[%s5026_s20 + $0x18] sm:$0xff] }
  0x2e   : > { %v446_v28 = vld [vmem:[%s5026_s20 + $0x88] sm:$0xff]  ;;  %v447_v30 = vld [vmem:[%s5026_s20 + $0x90] sm:$0xff]  ;;  %v448_v32 = vld [vmem:[%s5026_s20 + $0x98] sm:$0xff] }
  0x2f   : > { %4404 = vmatpush3.bf16.msra.mxu0 %v4401_v6  ;;  %4662 = vmatpush3.bf16.msra.mxu1 %v4401_v6  ;;  %v433_v33 = vld [vmem:[%s5026_s20 + $0x20] sm:$0xff]  ;;  %v434_v35 = vld [vmem:[%s5026_s20 + $0x28] sm:$0xff]  ;;  %v435_v37 = vld [vmem:[%s5026_s20 + $0x30] sm:$0xff] }
  0x30   : > { %4406 = vmatprep.subr.bf16.mxu0 %v4405_v9  ;;  %4655 = vmatprep.subr.bf16.mxu1 %v4405_v9  ;;  %v449_v34 = vld [vmem:[%s5026_s20 + $0xa0] sm:$0xff]  ;;  %v450_v36 = vld [vmem:[%s5026_s20 + $0xa8] sm:$0xff]  ;;  %v451_v38 = vld [vmem:[%s5026_s20 + $0xb0] sm:$0xff] }
  0x31   : > { %v436_v39 = vld [vmem:[%s5026_s20 + $0x38] sm:$0xff]  ;;  %v437_v41 = vld [vmem:[%s5026_s20 + $0x40] sm:$0xff]  ;;  %v438_v43 = vld [vmem:[%s5026_s20 + $0x48] sm:$0xff] }
  0x32   : > { %v452_v40 = vld [vmem:[%s5026_s20 + $0xb8] sm:$0xff]  ;;  %v453_v42 = vld [vmem:[%s5026_s20 + $0xc0] sm:$0xff]  ;;  %v454_v44 = vld [vmem:[%s5026_s20 + $0xc8] sm:$0xff] }
  0x33   : > { %4408 = vmatpush3.bf16.msra.mxu0 %v4405_v9  ;;  %4663 = vmatpush3.bf16.msra.mxu1 %v4405_v9  ;;  %v439_v45 = vld [vmem:[%s5026_s20 + $0x50] sm:$0xff]  ;;  %v440_v47 = vld [vmem:[%s5026_s20 + $0x58] sm:$0xff]  ;;  %v441_v49 = vld [vmem:[%s5026_s20 + $0x60] sm:$0xff] }
  0x34   : > { %4410 = vmatprep.subr.bf16.mxu0 %v4409_v13  ;;  %4656 = vmatprep.subr.bf16.mxu1 %v4409_v13  ;;  %v455_v46 = vld [vmem:[%s5026_s20 + $0xd0] sm:$0xff]  ;;  %v456_v48 = vld [vmem:[%s5026_s20 + $0xd8] sm:$0xff]  ;;  %v457_v50 = vld [vmem:[%s5026_s20 + $0xe0] sm:$0xff] }
  0x35   : > { %v442_v51 = vld [vmem:[%s5026_s20 + $0x68] sm:$0xff]  ;;  %v443_v53 = vld [vmem:[%s5026_s20 + $0x70] sm:$0xff]  ;;  %v444_v55 = vld [vmem:[%s5026_s20 + $0x78] sm:$0xff] }
  0x36   : > { %v458_v52 = vld [vmem:[%s5026_s20 + $0xe8] sm:$0xff]  ;;  %v459_v54 = vld [vmem:[%s5026_s20 + $0xf0] sm:$0xff]  ;;  %v460_v56 = vld [vmem:[%s5026_s20 + $0xf8] sm:$0xff] }
  0x37   : > { %4412 = vmatpush3.bf16.msra.mxu0 %v4409_v13  ;;  %4664 = vmatpush3.bf16.msra.mxu1 %v4409_v13 }
  0x38   : > { %4414 = vmatprep.subr.bf16.mxu0 %v4413_v17  ;;  %4657 = vmatprep.subr.bf16.mxu1 %v4413_v17 }
  0x3b   : > { %4416 = vmatpush3.bf16.msra.mxu0 %v4413_v17  ;;  %4665 = vmatpush3.bf16.msra.mxu1 %v4413_v17 }
  0x3c   : > { %4418 = vmatprep.subr.bf16.mxu0 %v4417_v20  ;;  %4658 = vmatprep.subr.bf16.mxu1 %v4417_v20 }
  0x3f   : > { %4420 = vmatpush3.bf16.msra.mxu0 %v4417_v20  ;;  %4666 = vmatpush3.bf16.msra.mxu1 %v4417_v20 }
  0x40   : > { %4422 = vmatprep.subr.bf16.mxu0 %v4421_v23  ;;  %4659 = vmatprep.subr.bf16.mxu1 %v4421_v23 }
  0x43   : > { %4424 = vmatpush3.bf16.msra.mxu0 %v4421_v23  ;;  %4667 = vmatpush3.bf16.msra.mxu1 %v4421_v23 }
  0x44   : > { %4426 = vmatprep.subr.bf16.mxu0 %v4425_v26  ;;  %4660 = vmatprep.subr.bf16.mxu1 %v4425_v26 }
  0x47   : > { %4428 = vmatpush3.bf16.msra.mxu0 %v4425_v26  ;;  %4668 = vmatpush3.bf16.msra.mxu1 %v4425_v26 }
  0x4a   : > { %4270 = vmatmul.mubr.f32.vlgmr.msra.gmra.mrb[0].mxu0 %v430_v27  ;;  %4294 = vmatmul.mubr.f32.vlgmr.msra.gmra.mrb[0].mxu1 %v446_v28 }
  0x4b   : > { %4272 = vmatprep.mubr.f32.mxu0 %v431_v29  ;;  %4296 = vmatprep.mubr.f32.mxu1 %v447_v30 }
  0x4e   : > { %4273 = vmatmul.mubr.f32.gmra.mrb[2].mxu0 %v432_v31  ;;  %4297 = vmatmul.mubr.f32.gmra.mrb[2].mxu1 %v448_v32 }
  0x4f   : > { %4275 = vmatprep.mubr.f32.mxu0 %v433_v33  ;;  %4299 = vmatprep.mubr.f32.mxu1 %v449_v34 }
  0x52   : > { %4276 = vmatmul.mubr.f32.gmra.mrb[4].mxu0 %v434_v35  ;;  %4300 = vmatmul.mubr.f32.gmra.mrb[4].mxu1 %v450_v36 }
  0x53   : > { %4278 = vmatprep.mubr.f32.mxu0 %v435_v37  ;;  %4302 = vmatprep.mubr.f32.mxu1 %v451_v38 }
  0x56   : > { %4279 = vmatmul.mubr.f32.gmra.mrb[6].mxu0 %v436_v39  ;;  %4303 = vmatmul.mubr.f32.gmra.mrb[6].mxu1 %v452_v40 }
  0x57   : > { %4281 = vmatprep.mubr.f32.mxu0 %v437_v41  ;;  %4305 = vmatprep.mubr.f32.mxu1 %v453_v42 }
  0x5a   : > { %4282 = vmatmul.mubr.f32.gmra.mrb[8].mxu0 %v438_v43  ;;  %4306 = vmatmul.mubr.f32.gmra.mrb[8].mxu1 %v454_v44 }
  0x5b   : > { %4284 = vmatprep.mubr.f32.mxu0 %v439_v45  ;;  %4308 = vmatprep.mubr.f32.mxu1 %v455_v46 }
  0x5e   : > { %4285 = vmatmul.mubr.f32.gmra.mrb[10].mxu0 %v440_v47  ;;  %4309 = vmatmul.mubr.f32.gmra.mrb[10].mxu1 %v456_v48 }
  0x5f   : > { %4287 = vmatprep.mubr.f32.mxu0 %v441_v49  ;;  %4311 = vmatprep.mubr.f32.mxu1 %v457_v50 }
  0x62   : > { %4288 = vmatmul.mubr.f32.gmra.mrb[12].mxu0 %v442_v51  ;;  %4312 = vmatmul.mubr.f32.gmra.mrb[12].mxu1 %v458_v52 }
  0x63   : > { %4290 = vmatprep.mubr.f32.mxu0 %v443_v53  ;;  %4314 = vmatprep.mubr.f32.mxu1 %v459_v54 }
  0x66   : > { %4291 = vmatmul.mubr.f32.gmra.mrb[14].mxu0 %v444_v55  ;;  %4315 = vmatmul.mubr.f32.gmra.mrb[14].mxu1 %v460_v56 }
 0x11d   : > { %v4271_v57 = vpop.f32.mrb[0].mxu0  ;;  %v5123_v58 = vpop.f32.mrb[0].mxu1 }
 0x11e   : > { %v744_v59 = vmul.f32 %v4271_v57, %v4271_v57  ;;  %3737 = vst [vmem:[%s5126_s25 + $0x28] sm:$0xff] %v4271_v57  ;;  %v543_v60 = vpop.f32.mrb[1].mxu0  ;;  %3753 = vst [vmem:[%s5126_s25 + $0xa8] sm:$0xff] %v5123_v58  ;;  %v5131_v61 = vpop.f32.mrb[1].mxu1 }
 0x11f   : > { %v703_v62 = vadd.f32 %v4271_v57, %v543_v60  ;;  %v743_v63 = vmul.f32 %v543_v60, %v543_v60  ;;  %3736 = vst [vmem:[%s5126_s25 + $0x20] sm:$0xff] %v543_v60  ;;  %3752 = vst [vmem:[%s5126_s25 + $0xa0] sm:$0xff] %v5131_v61 }
 0x121   : > { %v775_v0 = vadd.f32 %v744_v59, %v743_v63  ;;  %v4274_v1 = vpop.f32.mrb[2].mxu0  ;;  %v5136_v2 = vpop.f32.mrb[2].mxu1 }
 0x122   : > { %3739 = vst [vmem:[%s5126_s25 + $0x38] sm:$0xff] %v4274_v1  ;;  %v553_v3 = vpop.f32.mrb[3].mxu0  ;;  %3755 = vst [vmem:[%s5126_s25 + $0xb8] sm:$0xff] %v5136_v2  ;;  %v5141_v4 = vpop.f32.mrb[3].mxu1  ;;  %v746_v7 = vmul.f32 %v4274_v1, %v4274_v1 }
 0x123   : > { %v704_v5 = vadd.f32 %v703_v62, %v553_v3  ;;  %v745_v6 = vmul.f32 %v553_v3, %v553_v3  ;;  %3738 = vst [vmem:[%s5126_s25 + $0x30] sm:$0xff] %v553_v3  ;;  %3754 = vst [vmem:[%s5126_s25 + $0xb0] sm:$0xff] %v5141_v4 }
 0x125   : > { %v776_v8 = vadd.f32 %v775_v0, %v745_v6  ;;  %v4277_v9 = vpop.f32.mrb[4].mxu0  ;;  %v705_v10 = vadd.f32 %v4274_v1, %v704_v5  ;;  %v5146_v11 = vpop.f32.mrb[4].mxu1 }
 0x126   : > { %3741 = vst [vmem:[%s5126_s25 + $0x48] sm:$0xff] %v4277_v9  ;;  %v563_v12 = vpop.f32.mrb[5].mxu0  ;;  %3757 = vst [vmem:[%s5126_s25 + $0xc8] sm:$0xff] %v5146_v11  ;;  %v5151_v13 = vpop.f32.mrb[5].mxu1  ;;  %v748_v17 = vmul.f32 %v4277_v9, %v4277_v9 }
 0x127   : > { %v706_v14 = vadd.f32 %v705_v10, %v563_v12  ;;  %v747_v15 = vmul.f32 %v563_v12, %v563_v12  ;;  %v777_v16 = vadd.f32 %v776_v8, %v746_v7  ;;  %3740 = vst [vmem:[%s5126_s25 + $0x40] sm:$0xff] %v563_v12  ;;  %3756 = vst [vmem:[%s5126_s25 + $0xc0] sm:$0xff] %v5151_v13 }
 0x128   : > { %v759_v10 = vmul.f32 %v5131_v61, %v5131_v61 }
 0x129   : > { %v778_v18 = vadd.f32 %v777_v16, %v747_v15  ;;  %v4280_v19 = vpop.f32.mrb[6].mxu0  ;;  %v707_v20 = vadd.f32 %v4277_v9, %v706_v14  ;;  %v5156_v21 = vpop.f32.mrb[6].mxu1  ;;  %v760_v15 = vmul.f32 %v5123_v58, %v5123_v58 }
 0x12a   : > { %3743 = vst [vmem:[%s5126_s25 + $0x58] sm:$0xff] %v4280_v19  ;;  %v573_v22 = vpop.f32.mrb[7].mxu0  ;;  %3759 = vst [vmem:[%s5126_s25 + $0xd8] sm:$0xff] %v5156_v21  ;;  %v5161_v23 = vpop.f32.mrb[7].mxu1  ;;  %v750_v27 = vmul.f32 %v4280_v19, %v4280_v19 }
 0x12b   : > { %v708_v24 = vadd.f32 %v707_v20, %v573_v22  ;;  %v749_v25 = vmul.f32 %v573_v22, %v573_v22  ;;  %v779_v26 = vadd.f32 %v778_v18, %v748_v17  ;;  %3742 = vst [vmem:[%s5126_s25 + $0x50] sm:$0xff] %v573_v22  ;;  %3758 = vst [vmem:[%s5126_s25 + $0xd0] sm:$0xff] %v5161_v23 }
 0x12c   : > { %v761_v18 = vmul.f32 %v5141_v4, %v5141_v4  ;;  %v762_v22 = vmul.f32 %v5136_v2, %v5136_v2 }
 0x12d   : > { %v780_v28 = vadd.f32 %v779_v26, %v749_v25  ;;  %v4283_v29 = vpop.f32.mrb[8].mxu0  ;;  %v709_v30 = vadd.f32 %v4280_v19, %v708_v24  ;;  %v5166_v31 = vpop.f32.mrb[8].mxu1 }
 0x12e   : > { %3745 = vst [vmem:[%s5126_s25 + $0x68] sm:$0xff] %v4283_v29  ;;  %v583_v32 = vpop.f32.mrb[9].mxu0  ;;  %3761 = vst [vmem:[%s5126_s25 + $0xe8] sm:$0xff] %v5166_v31  ;;  %v5171_v33 = vpop.f32.mrb[9].mxu1  ;;  %v752_v37 = vmul.f32 %v4283_v29, %v4283_v29 }
 0x12f   : > { %v710_v34 = vadd.f32 %v709_v30, %v583_v32  ;;  %v751_v35 = vmul.f32 %v583_v32, %v583_v32  ;;  %v781_v36 = vadd.f32 %v780_v28, %v750_v27  ;;  %3744 = vst [vmem:[%s5126_s25 + $0x60] sm:$0xff] %v583_v32  ;;  %3760 = vst [vmem:[%s5126_s25 + $0xe0] sm:$0xff] %v5171_v33 }
 0x131   : > { %v782_v38 = vadd.f32 %v781_v36, %v751_v35  ;;  %v4286_v39 = vpop.f32.mrb[10].mxu0  ;;  %v711_v40 = vadd.f32 %v4283_v29, %v710_v34  ;;  %v5176_v41 = vpop.f32.mrb[10].mxu1 }
 0x132   : > { %3747 = vst [vmem:[%s5126_s25 + $0x78] sm:$0xff] %v4286_v39  ;;  %v593_v42 = vpop.f32.mrb[11].mxu0  ;;  %3763 = vst [vmem:[%s5126_s25 + $0xf8] sm:$0xff] %v5176_v41  ;;  %v5181_v43 = vpop.f32.mrb[11].mxu1  ;;  %v754_v47 = vmul.f32 %v4286_v39, %v4286_v39 }
 0x133   : > { %v712_v44 = vadd.f32 %v711_v40, %v593_v42  ;;  %v753_v45 = vmul.f32 %v593_v42, %v593_v42  ;;  %v783_v46 = vadd.f32 %v782_v38, %v752_v37  ;;  %3746 = vst [vmem:[%s5126_s25 + $0x70] sm:$0xff] %v593_v42  ;;  %3762 = vst [vmem:[%s5126_s25 + $0xf0] sm:$0xff] %v5181_v43 }
 0x135   : > { %v784_v48 = vadd.f32 %v783_v46, %v753_v45  ;;  %v4289_v49 = vpop.f32.mrb[12].mxu0  ;;  %v713_v50 = vadd.f32 %v4286_v39, %v712_v44  ;;  %v5186_v51 = vpop.f32.mrb[12].mxu1 }
 0x136   : > { %3749 = vst [vmem:[%s5126_s25 + $0x88] sm:$0xff] %v4289_v49  ;;  %v603_v52 = vpop.f32.mrb[13].mxu0  ;;  %3765 = vst [vmem:[%s5126_s25 + $0x108] sm:$0xff] %v5186_v51  ;;  %v683_v53 = vpop.f32.mrb[13].mxu1  ;;  %v756_v57 = vmul.f32 %v4289_v49, %v4289_v49 }
 0x137   : > { %v714_v54 = vadd.f32 %v713_v50, %v603_v52  ;;  %v755_v55 = vmul.f32 %v603_v52, %v603_v52  ;;  %v785_v56 = vadd.f32 %v784_v48, %v754_v47  ;;  %3748 = vst [vmem:[%s5126_s25 + $0x80] sm:$0xff] %v603_v52  ;;  %3764 = vst [vmem:[%s5126_s25 + $0x100] sm:$0xff] %v683_v53 }
 0x138   : > { %v772_v48 = vmul.f32 %v5186_v51, %v5186_v51 }
 0x139   : > { %v786_v59 = vadd.f32 %v785_v56, %v755_v55  ;;  %v4292_v60 = vpop.f32.mrb[14].mxu0  ;;  %v715_v62 = vadd.f32 %v4289_v49, %v714_v54  ;;  %v4316_v63 = vpop.f32.mrb[14].mxu1 }
 0x13a   : > { %3751 = vst [vmem:[%s5126_s25 + $0x98] sm:$0xff] %v4292_v60  ;;  %v613_v0 = vpop.f32.mrb[15].mxu0  ;;  %3767 = vst [vmem:[%s5126_s25 + $0x118] sm:$0xff] %v4316_v63  ;;  %v693_v1 = vpop.f32.mrb[15].mxu1  ;;  %v758_v7 = vmul.f32 %v4292_v60, %v4292_v60 }
 0x13b   : > { %v716_v3 = vadd.f32 %v715_v62, %v613_v0  ;;  %v757_v5 = vmul.f32 %v613_v0, %v613_v0  ;;  %v787_v6 = vadd.f32 %v786_v59, %v756_v57  ;;  %3750 = vst [vmem:[%s5126_s25 + $0x90] sm:$0xff] %v613_v0  ;;  %3766 = vst [vmem:[%s5126_s25 + $0x110] sm:$0xff] %v693_v1 }
 0x13c   : > { %v773_v50 = vmul.f32 %v693_v1, %v693_v1 }
 0x13d   : > { %v717_v8 = vadd.f32 %v4292_v60, %v716_v3  ;;  %v788_v9 = vadd.f32 %v787_v6, %v757_v5 }
 0x13f   : > { %v789_v12 = vadd.f32 %v788_v9, %v758_v7  ;;  %v718_v14 = vadd.f32 %v717_v8, %v5131_v61  ;;  %v763_v61 = vmul.f32 %v5151_v13, %v5151_v13  ;;  %v702_v7 = vld [vmem:[#allocation4] sm:$0x1] }
 0x141   : > { %v790_v16 = vadd.f32 %v789_v12, %v759_v10  ;;  %v719_v17 = vadd.f32 %v5123_v58, %v718_v14  ;;  %v764_v58 = vmul.f32 %v5146_v11, %v5146_v11 }
 0x143   : > { %v720_v19 = vadd.f32 %v719_v17, %v5141_v4  ;;  %v791_v20 = vadd.f32 %v790_v16, %v760_v15  ;;  %v765_v4 = vmul.f32 %v5161_v23, %v5161_v23 }
 0x145   : > { %v792_v24 = vadd.f32 %v791_v20, %v761_v18  ;;  %v721_v25 = vadd.f32 %v5136_v2, %v720_v19  ;;  %v766_v2 = vmul.f32 %v5156_v21, %v5156_v21  ;;  %v857_v20 = vld [vmem:[%s7196_s4] sm:$0x1] (!%p3768_p13) }
 0x147   : > { %v722_v26 = vadd.f32 %v721_v25, %v5151_v13  ;;  %v793_v27 = vadd.f32 %v792_v24, %v762_v22  ;;  %v767_v13 = vmul.f32 %v5171_v33, %v5171_v33  ;;  %v862_v25 = vld [vmem:[%s7197_s5] sm:$0x1] (!%p3768_p13) }
 0x149   : > { %v794_v28 = vadd.f32 %v793_v27, %v763_v61  ;;  %v723_v29 = vadd.f32 %v5146_v11, %v722_v26  ;;  %v768_v11 = vmul.f32 %v5166_v31, %v5166_v31 }
 0x14b   : > { %v724_v30 = vadd.f32 %v723_v29, %v5161_v23  ;;  %v795_v32 = vadd.f32 %v794_v28, %v764_v58  ;;  %v769_v23 = vmul.f32 %v5181_v43, %v5181_v43 }
 0x14d   : > { %v796_v34 = vadd.f32 %v795_v32, %v765_v4  ;;  %v725_v35 = vadd.f32 %v5156_v21, %v724_v30  ;;  %v770_v21 = vmul.f32 %v5176_v41, %v5176_v41 }
 0x14f   : > { %v726_v36 = vadd.f32 %v725_v35, %v5171_v33  ;;  %v797_v37 = vadd.f32 %v796_v34, %v766_v2  ;;  %v771_v33 = vmul.f32 %v683_v53, %v683_v53 }
 0x151   : > { %v798_v38 = vadd.f32 %v797_v37, %v767_v13  ;;  %v727_v39 = vadd.f32 %v5166_v31, %v726_v36 }
 0x153   : > { %v728_v40 = vadd.f32 %v727_v39, %v5181_v43  ;;  %v799_v42 = vadd.f32 %v798_v38, %v768_v11  ;;  %v774_v43 = vmul.f32 %v4316_v63, %v4316_v63 }
 0x155   : > { %v800_v44 = vadd.f32 %v799_v42, %v769_v23  ;;  %v729_v45 = vadd.f32 %v5176_v41, %v728_v40 }
 0x157   : > { %v730_v46 = vadd.f32 %v729_v45, %v683_v53  ;;  %v801_v47 = vadd.f32 %v800_v44, %v770_v21 }
 0x159   : > { %v802_v49 = vadd.f32 %v801_v47, %v771_v33  ;;  %v731_v31 = vadd.f32 %v5186_v51, %v730_v46  ;;  %v742_v51 = vld [vmem:[#allocation4 + $0x1] sm:$0x1] }
 0x15b   : > { %v732_v52 = vadd.f32 %v731_v31, %v693_v1  ;;  %v803_v54 = vadd.f32 %v802_v49, %v772_v48 }
 0x15d   : > { %v733_v55 = vadd.f32 %v4316_v63, %v732_v52  ;;  %v804_v56 = vadd.f32 %v803_v54, %v773_v50 }
 0x15f   : > { %v734_v57 = vrot.slane %v733_v55, 4  ;;  %v805_v59 = vadd.f32 %v804_v56, %v774_v43 }
 0x161   : > { %v735_v60 = vadd.f32 %v734_v57, %v733_v55  ;;  %v806_v62 = vrot.slane %v805_v59, 4 }
 0x163   : > { %v736_v41 = vrot.slane %v735_v60, 2  ;;  %v807_v0 = vadd.f32 %v806_v62, %v805_v59 }
 0x165   : > { %v737_v53 = vadd.f32 %v736_v41, %v735_v60  ;;  %v808_v3 = vrot.slane %v807_v0, 2 }
 0x167   : > { %v738_v5 = vrot.slane %v737_v53, 1  ;;  %v809_v6 = vadd.f32 %v808_v3, %v807_v0 }
 0x169   : > { %v739_v8 = vadd.f32 %v738_v5, %v737_v53  ;;  %v810_v9 = vrot.slane %v809_v6, 1  ;;  %850 = sbr.rel (%p3768_p13) target bundleno = 399 (0x18f), region = 64 }
 0x16b   : > { %v740_v10 = vadd.f32 %v739_v8, %v702_v7  ;;  %v811_v1 = vadd.f32 %v810_v9, %v809_v6 }
 0x16d   : > { %741 = vst [vmem:[#allocation4] sm:$0x1] %v740_v10  ;;  %v812_v12 = vadd.f32 %v811_v1, %v742_v51 }
 0x16f   : > { %813 = vst [vmem:[#allocation4 + $0x1] sm:$0x1] %v812_v12 }
 0x174   : > { %v851_v63 = vld [vmem:[#allocation4] sm:$0x1] }
 0x175   : > { %v852_v15 = vmul.f32 0.001953125, %v851_v63 }
 0x176   : > { %v853_v14 = vld [vmem:[#allocation4 + $0x1] sm:$0x1] }
 0x177   : > { %v854_v16 = vmul.f32 0.001953125, %v853_v14  ;;  %v855_v17 = vmul.f32 %v852_v15, %v852_v15 }
 0x179   : > { %v856_v18 = vsub.f32 %v854_v16, %v855_v17 }
 0x17b   : > { %v858_v19 = vadd.f32 1e-05, %v856_v18 }
 0x17d   : > { %4881 = vrsqrt.f32 %v858_v19 }
 0x187   : > { %v4882_v22 = vpop.eup %4881 }
 0x188   : > { %v860_v24 = vmul.f32 %v4882_v22, %v857_v20 }
 0x18a   : > { %861 = vst [vmem:[#allocation4 + $0x2] sm:$0x1] %v860_v24  ;;  %v863_v61 = vmul.f32 %v860_v24, %v852_v15 }
 0x18c   : > { %v864_v26 = vsub.f32 %v862_v25, %v863_v61 }
 0x18e   : > { %865 = vst [vmem:[#allocation4 + $0x3] sm:$0x1] %v864_v26 }
 0x18f PF: > { %p3769_p0 = scmp.ne.s32.totalorder %s4915_s28, 1 }
 0x190   : > { %v1075_v27 = vld [vmem:[%s5031_s24 + $0x10] sm:$0xff] (!%p3769_p0)  ;;  %v1073_v58 = vld [vmem:[%s5031_s24] sm:$0xff] (!%p3769_p0)  ;;  %v4930_v28 = vmov (!%p3769_p0), 0   ;;  %v1076_v29 = vld [vmem:[%s5031_s24 + $0x18] sm:$0xff] (!%p3769_p0)  ;;  %s5277_s16 = scalar_lea.vmem (!%p3769_p0), [#allocation2], %s5015_s12 }
 0x191   : > { %869 = sbr.rel (%p3769_p0) target bundleno = 593 (0x251), region = 68  ;;  %4884 = vset.pattern.permute.xlu1 (!%p3769_p0), %v4930_v28  ;;  %4883 = vset.pattern.permute.xlu0 (!%p3769_p0), %v4930_v28  ;;  %v1074_v4 = vld [vmem:[%s5031_s24 + $0x8] sm:$0xff] (!%p3769_p0)  ;;  %v1077_v32 = vld [vmem:[%s5031_s24 + $0x20] sm:$0xff] (!%p3769_p0)  ;;  %v1080_v2 = vld [vmem:[%s5031_s24 + $0x38] sm:$0xff] (!%p3769_p0) }
 0x192   : > { %1117 = vperm.xlu1 (!%p3769_p0), %4884, %v1075_v27   ;;  %1107 = vperm.xlu0 (!%p3769_p0), %4883, %v1073_v58   ;;  %v1078_v30 = vld [vmem:[%s5031_s24 + $0x28] sm:$0xff] (!%p3769_p0)  ;;  %v1079_v34 = vld [vmem:[%s5031_s24 + $0x30] sm:$0xff] (!%p3769_p0)  ;;  %v1081_v13 = vld [vmem:[%s5031_s24 + $0x40] sm:$0xff] (!%p3769_p0) }
 0x193   : > { %v1082_v35 = vld [vmem:[%s5031_s24 + $0x48] sm:$0xff] (!%p3769_p0)  ;;  %v1084_v36 = vld [vmem:[%s5031_s24 + $0x58] sm:$0xff] (!%p3769_p0)  ;;  %v1083_v37 = vld [vmem:[%s5031_s24 + $0x50] sm:$0xff] (!%p3769_p0) }
 0x194   : > { %v1086_v11 = vld [vmem:[%s5031_s24 + $0x68] sm:$0xff] (!%p3769_p0)  ;;  %v1085_v38 = vld [vmem:[%s5031_s24 + $0x60] sm:$0xff] (!%p3769_p0)  ;;  %v1088_v39 = vld [vmem:[%s5031_s24 + $0x78] sm:$0xff] (!%p3769_p0) }
 0x195   : > { %v1087_v23 = vld [vmem:[%s5031_s24 + $0x70] sm:$0xff] (!%p3769_p0)  ;;  %v1090_v40 = vld [vmem:[%s5031_s24 + $0x88] sm:$0xff] (!%p3769_p0)  ;;  %v1089_v42 = vld [vmem:[%s5031_s24 + $0x80] sm:$0xff] (!%p3769_p0) }
 0x196   : > { %1122 = vperm.xlu1 (!%p3769_p0), %4884, %v1076_v29   ;;  %1112 = vperm.xlu0 (!%p3769_p0), %4883, %v1074_v4   ;;  %v1092_v21 = vld [vmem:[%s5031_s24 + $0x98] sm:$0xff] (!%p3769_p0)  ;;  %v1091_v44 = vld [vmem:[%s5031_s24 + $0x90] sm:$0xff] (!%p3769_p0)  ;;  %v1094_v45 = vld [vmem:[%s5031_s24 + $0xa8] sm:$0xff] (!%p3769_p0) }
 0x197   : > { %v1093_v33 = vld [vmem:[%s5031_s24 + $0xa0] sm:$0xff] (!%p3769_p0)  ;;  %v1096_v46 = vld [vmem:[%s5031_s24 + $0xb8] sm:$0xff] (!%p3769_p0)  ;;  %v1095_v47 = vld [vmem:[%s5031_s24 + $0xb0] sm:$0xff] (!%p3769_p0) }
 0x198   : > { %v1098_v48 = vld [vmem:[%s5031_s24 + $0xc8] sm:$0xff]  ;;  %v1097_v49 = vld [vmem:[%s5031_s24 + $0xc0] sm:$0xff]  ;;  %v1100_v31 = vld [vmem:[%s5031_s24 + $0xd8] sm:$0xff] }
 0x199   : > { %v1099_v50 = vld [vmem:[%s5031_s24 + $0xd0] sm:$0xff]  ;;  %v1102_v52 = vld [vmem:[%s5031_s24 + $0xe8] sm:$0xff]  ;;  %v1101_v54 = vld [vmem:[%s5031_s24 + $0xe0] sm:$0xff] }
 0x19a   : > { %1132 = vperm.xlu1 %4884, %v1078_v30   ;;  %1127 = vperm.xlu0 %4883, %v1077_v32   ;;  %v1104_v43 = vld [vmem:[%s5031_s24 + $0xf8] sm:$0xff]  ;;  %v1103_v55 = vld [vmem:[%s5031_s24 + $0xf0] sm:$0xff]  ;;  %v5280_v57 = vld [vmem:[#allocation4 + $0x2] ss:$0 sm:$0xff] }
 0x19b   : > { %v3773_v56 = vld [vmem:[%s5277_s16 + $0x30] sm:$0xff]  ;;  %v3771_v59 = vld [vmem:[%s5277_s16 + $0x20] sm:$0xff]  ;;  %v3774_v41 = vld [vmem:[%s5277_s16 + $0x38] sm:$0xff] }
 0x19c   : > { %v910_v60 = vmul.f32 %v5280_v57, %v3773_v56  ;;  %v908_v62 = vmul.f32 %v5280_v57, %v3771_v59  ;;  %v3772_v0 = vld [vmem:[%s5277_s16 + $0x28] sm:$0xff]  ;;  %v5287_v53 = vld [vmem:[#allocation4 + $0x3] ss:$0 sm:$0xff]  ;;  %v911_v3 = vmul.f32 %v5280_v57, %v3774_v41  ;;  %v3778_v15 = vld [vmem:[%s5277_s16 + $0x58] sm:$0xff] }
 0x19d   : > { %v909_v5 = vmul.f32 %v5280_v57, %v3772_v0  ;;  %v3776_v6 = vld [vmem:[%s5277_s16 + $0x48] sm:$0xff]  ;;  %v3775_v9 = vld [vmem:[%s5277_s16 + $0x40] sm:$0xff]  ;;  %v3777_v16 = vld [vmem:[%s5277_s16 + $0x50] sm:$0xff]  ;;  %v915_v22 = vmul.f32 %v5280_v57, %v3778_v15 }
 0x19e   : > { %1142 = vperm.xlu1 %4884, %v1080_v2   ;;  %1137 = vperm.xlu0 %4883, %v1079_v34   ;;  %v947_v7 = vadd.f32 %v5287_v53, %v910_v60  ;;  %v945_v8 = vadd.f32 %v5287_v53, %v908_v62  ;;  %v913_v51 = vmul.f32 %v5280_v57, %v3776_v6  ;;  %v3780_v18 = vld [vmem:[%s5277_s16 + $0x68] sm:$0xff]  ;;  %v3779_v24 = vld [vmem:[%s5277_s16 + $0x60] sm:$0xff]  ;;  %v3786_v6 = vld [vmem:[%s5277_s16 + $0x98] sm:$0xff] }
 0x19f   : > { %v948_v10 = vadd.f32 %v5287_v53, %v911_v3  ;;  %v946_v1 = vadd.f32 %v5287_v53, %v909_v5  ;;  %v912_v14 = vmul.f32 %v5280_v57, %v3775_v9  ;;  %v914_v27 = vmul.f32 %v5280_v57, %v3777_v16  ;;  %v3788_v16 = vld [vmem:[%s5277_s16 + $0xa8] sm:$0xff] }
 0x1a0   : > { %v1011_v12 = vmul.f32 0.01, %v947_v7  ;;  %v1009_v63 = vmul.f32 0.01, %v945_v8  ;;  %vm979_vm0 = vcmp.gt.f32.partialorder %v947_v7, 0.0  ;;  %vm977_vm1 = vcmp.gt.f32.partialorder %v945_v8, 0.0 }
 0x1a1   : > { %v950_v17 = vadd.f32 %v5287_v53, %v913_v51  ;;  %vm980_vm2 = vcmp.gt.f32.partialorder %v948_v10, 0.0  ;;  %v1012_v19 = vmul.f32 0.01, %v948_v10  ;;  %v1010_v20 = vmul.f32 0.01, %v946_v1 }
 0x1a2   : > { %1152 = vperm.xlu1 %4884, %v1082_v35   ;;  %1147 = vperm.xlu0 %4883, %v1081_v13   ;;  %v1043_v25 = vsel %vm979_vm0, %v947_v7, %v1011_v12  ;;  %v1041_v61 = vsel %vm977_vm1, %v945_v8, %v1009_v63  ;;  %v949_v26 = vadd.f32 %v5287_v53, %v912_v14  ;;  %vm978_vm3 = vcmp.gt.f32.partialorder %v946_v1, 0.0  ;;  %v3782_v35 = vld [vmem:[%s5277_s16 + $0x78] sm:$0xff]  ;;  %v3785_v7 = vld [vmem:[%s5277_s16 + $0x90] sm:$0xff] }
 0x1a3   : > { %v917_v58 = vmul.f32 %v5280_v57, %v3780_v18  ;;  %v916_v4 = vmul.f32 %v5280_v57, %v3779_v24  ;;  %v1044_v2 = vsel %vm980_vm2, %v948_v10, %v1012_v19  ;;  %v1014_v34 = vmul.f32 0.01, %v950_v17 }
 0x1a4   : > { %v1042_v13 = vsel %vm978_vm3, %v946_v1, %v1010_v20  ;;  %vm982_vm4 = vcmp.gt.f32.partialorder %v950_v17, 0.0  ;;  %vm981_vm5 = vcmp.gt.f32.partialorder %v949_v26, 0.0  ;;  %v923_v19 = vmul.f32 %v5280_v57, %v3786_v6 }
 0x1a5   : > { %v922_v20 = vmul.f32 %v5280_v57, %v3785_v7 }
 0x1a6   : > { %1162 = vperm.xlu1 %4884, %v1084_v36   ;;  %1157 = vperm.xlu0 %4883, %v1083_v37   ;;  %v1013_v36 = vmul.f32 0.01, %v949_v26  ;;  %v952_v37 = vadd.f32 %v5287_v53, %v915_v22 }
 0x1a8   : > { %vm984_vm6 = vcmp.gt.f32.partialorder %v952_v37, 0.0 }
 0x1aa   : > { %1172 = vperm.xlu1 %4884, %v1086_v11   ;;  %1167 = vperm.xlu0 %4883, %v1085_v38   ;;  %v951_v11 = vadd.f32 %v5287_v53, %v914_v27  ;;  %v3781_v38 = vld [vmem:[%s5277_s16 + $0x70] sm:$0xff] }
 0x1ac   : > { %vm983_vm7 = vcmp.gt.f32.partialorder %v951_v11, 0.0 }
 0x1ae   : > { %1182 = vperm.xlu1 %4884, %v1088_v39   ;;  %1177 = vperm.xlu0 %4883, %v1087_v23   ;;  %v954_v39 = vadd.f32 %v5287_v53, %v917_v58 }
 0x1b0   : > { %vm986_vm8 = vcmp.gt.f32.partialorder %v954_v39, 0.0 }
 0x1b2   : > { %1192 = vperm.xlu1 %4884, %v1090_v40   ;;  %1187 = vperm.xlu0 %4883, %v1089_v42   ;;  %v953_v42 = vadd.f32 %v5287_v53, %v916_v4  ;;  %v3790_v4 = vld [vmem:[%s5277_s16 + $0xb8] sm:$0xff] }
 0x1b4   : > { %vm985_vm9 = vcmp.gt.f32.partialorder %v953_v42, 0.0 }
 0x1b6   : > { %1202 = vperm.xlu1 %4884, %v1092_v21   ;;  %1197 = vperm.xlu0 %4883, %v1091_v44   ;;  %v919_v21 = vmul.f32 %v5280_v57, %v3782_v35 }
 0x1b8   : > { %v956_v56 = vadd.f32 %v5287_v53, %v919_v21 }
 0x1ba   : > { %1212 = vperm.xlu1 %4884, %v1094_v45   ;;  %1207 = vperm.xlu0 %4883, %v1093_v33   ;;  %v918_v33 = vmul.f32 %v5280_v57, %v3781_v38  ;;  %vm988_vm10 = vcmp.gt.f32.partialorder %v956_v56, 0.0  ;;  %v1020_v1 = vmul.f32 0.01, %v956_v56 }
 0x1bc   : > { %v955_v62 = vadd.f32 %v5287_v53, %v918_v33  ;;  %v3791_v33 = vld [vmem:[%s5277_s16 + $0xc0] sm:$0xff] }
 0x1be   : > { %1222 = vperm.xlu1 %4884, %v1096_v46   ;;  %1217 = vperm.xlu0 %4883, %v1095_v47   ;;  %v1046_v46 = vsel %vm982_vm4, %v950_v17, %v1014_v34  ;;  %v1045_v47 = vsel %vm981_vm5, %v949_v26, %v1013_v36  ;;  %v1019_v14 = vmul.f32 0.01, %v955_v62  ;;  %v3787_v17 = vld [vmem:[%s5277_s16 + $0xa0] sm:$0xff]  ;;  %vm987_vm11 = vcmp.gt.f32.partialorder %v955_v62, 0.0  ;;  %v3789_v34 = vld [vmem:[%s5277_s16 + $0xb0] sm:$0xff] }
 0x1bf   : > { %v924_v26 = vmul.f32 %v5280_v57, %v3787_v17 }
 0x1c2   : > { %1232 = vperm.xlu1 %4884, %v1098_v48   ;;  %1227 = vperm.xlu0 %4883, %v1097_v49   ;;  %v1016_v48 = vmul.f32 0.01, %v952_v37  ;;  %v1015_v49 = vmul.f32 0.01, %v951_v11 }
 0x1c4   : > { %v1048_v0 = vsel %vm984_vm6, %v952_v37, %v1016_v48  ;;  %v1047_v3 = vsel %vm983_vm7, %v951_v11, %v1015_v49  ;;  %v961_v37 = vadd.f32 %v5287_v53, %v924_v26  ;;  %v927_v11 = vmul.f32 %v5280_v57, %v3790_v4 }
 0x1c6   : > { %1242 = vperm.xlu1 %4884, %v1100_v31   ;;  %1237 = vperm.xlu0 %4883, %v1099_v50   ;;  %v3784_v31 = vld [vmem:[%s5277_s16 + $0x88] sm:$0xff]  ;;  %v3783_v50 = vld [vmem:[%s5277_s16 + $0x80] sm:$0xff]  ;;  %v1025_v49 = vmul.f32 0.01, %v961_v37  ;;  %vm993_vm1 = vcmp.gt.f32.partialorder %v961_v37, 0.0 }
 0x1c7   : > { %v921_v41 = vmul.f32 %v5280_v57, %v3784_v31  ;;  %v920_v5 = vmul.f32 %v5280_v57, %v3783_v50  ;;  %v964_v31 = vadd.f32 %v5287_v53, %v927_v11 }
 0x1c9   : > { %v958_v15 = vadd.f32 %v5287_v53, %v921_v41  ;;  %v957_v18 = vadd.f32 %v5287_v53, %v920_v5  ;;  %v1057_v5 = vsel %vm993_vm1, %v961_v37, %v1025_v49  ;;  %vm996_vm2 = vcmp.gt.f32.partialorder %v964_v31, 0.0 }
 0x1ca   : > { %1252 = vperm.xlu1 %4884, %v1102_v52   ;;  %1247 = vperm.xlu0 %4883, %v1101_v54  }
 0x1cb   : > { %vm990_vm12 = vcmp.gt.f32.partialorder %v958_v15, 0.0  ;;  %vm989_vm13 = vcmp.gt.f32.partialorder %v957_v18, 0.0 }
 0x1ce   : > { %1262 = vperm.xlu1 %4884, %v1104_v43   ;;  %1257 = vperm.xlu0 %4883, %v1103_v55   ;;  %v1018_v43 = vmul.f32 0.01, %v954_v39  ;;  %v1017_v55 = vmul.f32 0.01, %v953_v42 }
 0x1d0   : > { %v1050_v51 = vsel %vm986_vm8, %v954_v39, %v1018_v43  ;;  %v1049_v10 = vsel %vm985_vm9, %v953_v42, %v1017_v55 }
 0x211   : > { %v1118_v28 = vpop.permute.xlu1 %1117  ;;  %v1108_v29 = vpop.permute.xlu0 %1107 }
 0x212   : > { %v1267_v30 = vmul.f32 %v1118_v28, %v1043_v25  ;;  %v1265_v32 = vmul.f32 %v1108_v29, %v1041_v61  ;;  %v1052_v25 = vsel %vm988_vm10, %v956_v56, %v1020_v1  ;;  %v925_v61 = vmul.f32 %v5280_v57, %v3788_v16 }
 0x213   : > { %v1051_v28 = vsel %vm987_vm11, %v955_v62, %v1019_v14  ;;  %v1022_v29 = vmul.f32 0.01, %v958_v15  ;;  %v3793_v62 = vld [vmem:[%s5277_s16 + $0xd0] sm:$0xff] }
 0x214   : > { %3807 = vst [vmem:[%s5277_s16 + $0x30] sm:$0xff] %v1267_v30  ;;  %3805 = vst [vmem:[%s5277_s16 + $0x20] sm:$0xff] %v1265_v32  ;;  %v1021_v30 = vmul.f32 0.01, %v957_v18  ;;  %v960_v32 = vadd.f32 %v5287_v53, %v923_v19  ;;  %v962_v36 = vadd.f32 %v5287_v53, %v925_v61  ;;  %v930_v14 = vmul.f32 %v5280_v57, %v3793_v62  ;;  %v3797_v61 = vld [vmem:[%s5277_s16 + $0xf0] sm:$0xff] }
 0x215   : > { %v1123_v23 = vpop.permute.xlu1 %1122  ;;  %v1113_v40 = vpop.permute.xlu0 %1112 }
 0x216   : > { %v1268_v44 = vmul.f32 %v1123_v23, %v1044_v2  ;;  %v1266_v45 = vmul.f32 %v1113_v40, %v1042_v13  ;;  %v959_v2 = vadd.f32 %v5287_v53, %v922_v20  ;;  %v1054_v23 = vsel %vm990_vm12, %v958_v15, %v1022_v29 }
 0x217   : > { %v1053_v40 = vsel %vm989_vm13, %v957_v18, %v1021_v30  ;;  %v1024_v42 = vmul.f32 0.01, %v960_v32  ;;  %vm992_vm14 = vcmp.gt.f32.partialorder %v960_v32, 0.0  ;;  %vm994_vm0 = vcmp.gt.f32.partialorder %v962_v36, 0.0 }
 0x218   : > { %3808 = vst [vmem:[%s5277_s16 + $0x38] sm:$0xff] %v1268_v44  ;;  %3806 = vst [vmem:[%s5277_s16 + $0x28] sm:$0xff] %v1266_v45  ;;  %v1023_v21 = vmul.f32 0.01, %v959_v2  ;;  %v926_v44 = vmul.f32 %v5280_v57, %v3789_v34  ;;  %v3792_v45 = vld [vmem:[%s5277_s16 + $0xc8] sm:$0xff]  ;;  %vm991_vm15 = vcmp.gt.f32.partialorder %v959_v2, 0.0  ;;  %v934_v34 = vmul.f32 %v5280_v57, %v3797_v61 }
 0x219   : > { %v1133_v52 = vpop.permute.xlu1 %1132  ;;  %v1128_v54 = vpop.permute.xlu0 %1127  ;;  %v1026_v48 = vmul.f32 0.01, %v962_v36  ;;  %v1056_v43 = vsel %vm992_vm14, %v960_v32, %v1024_v42 }
 0x21a   : > { %v1270_v59 = vmul.f32 %v1133_v52, %v1046_v46  ;;  %v1269_v60 = vmul.f32 %v1128_v54, %v1045_v47  ;;  %v929_v54 = vmul.f32 %v5280_v57, %v3792_v45  ;;  %v1055_v55 = vsel %vm991_vm15, %v959_v2, %v1023_v21 }
 0x21b   : > { %v963_v56 = vadd.f32 %v5287_v53, %v926_v44 }
 0x21c   : > { %3810 = vst [vmem:[%s5277_s16 + $0x48] sm:$0xff] %v1270_v59  ;;  %3809 = vst [vmem:[%s5277_s16 + $0x40] sm:$0xff] %v1269_v60  ;;  %v928_v59 = vmul.f32 %v5280_v57, %v3791_v33  ;;  %v3794_v60 = vld [vmem:[%s5277_s16 + $0xd8] sm:$0xff]  ;;  %v971_v33 = vadd.f32 %v5287_v53, %v934_v34 }
 0x21d   : > { %v1143_v8 = vpop.permute.xlu1 %1142  ;;  %v1138_v9 = vpop.permute.xlu0 %1137  ;;  %v1027_v1 = vmul.f32 0.01, %v963_v56  ;;  %vm995_vm3 = vcmp.gt.f32.partialorder %v963_v56, 0.0 }
 0x21e   : > { %v1272_v12 = vmul.f32 %v1143_v8, %v1048_v0  ;;  %v1271_v63 = vmul.f32 %v1138_v9, %v1047_v3  ;;  %v1058_v3 = vsel %vm994_vm0, %v962_v36, %v1026_v48  ;;  %v1028_v8 = vmul.f32 0.01, %v964_v31 }
 0x21f   : > { %v966_v9 = vadd.f32 %v5287_v53, %v929_v54  ;;  %v1059_v26 = vsel %vm995_vm3, %v963_v56, %v1027_v1  ;;  %v3801_v54 = vld [vmem:[%s5277_s16 + $0x110] sm:$0xff]  ;;  %v1035_v62 = vmul.f32 0.01, %v971_v33  ;;  %vm1003_vm11 = vcmp.gt.f32.partialorder %v971_v33, 0.0 }
 0x220   : > { %3812 = vst [vmem:[%s5277_s16 + $0x58] sm:$0xff] %v1272_v12  ;;  %3811 = vst [vmem:[%s5277_s16 + $0x50] sm:$0xff] %v1271_v63  ;;  %v965_v12 = vadd.f32 %v5287_v53, %v928_v59  ;;  %v931_v63 = vmul.f32 %v5280_v57, %v3794_v60 }
 0x221   : > { %v1153_v22 = vpop.permute.xlu1 %1152  ;;  %v1148_v24 = vpop.permute.xlu0 %1147  ;;  %vm998_vm4 = vcmp.gt.f32.partialorder %v966_v9, 0.0 }
 0x222   : > { %v1274_v27 = vmul.f32 %v1153_v22, %v1050_v51  ;;  %v1273_v58 = vmul.f32 %v1148_v24, %v1049_v10  ;;  %v3796_v51 = vld [vmem:[%s5277_s16 + $0xe8] sm:$0xff]  ;;  %v3795_v10 = vld [vmem:[%s5277_s16 + $0xe0] sm:$0xff]  ;;  %v1060_v22 = vsel %vm996_vm2, %v964_v31, %v1028_v8  ;;  %v1030_v24 = vmul.f32 0.01, %v966_v9 }
 0x223   : > { %v933_v17 = vmul.f32 %v5280_v57, %v3796_v51  ;;  %v932_v18 = vmul.f32 %v5280_v57, %v3795_v10  ;;  %vm997_vm5 = vcmp.gt.f32.partialorder %v965_v12, 0.0 }
 0x224   : > { %3814 = vst [vmem:[%s5277_s16 + $0x68] sm:$0xff] %v1274_v27  ;;  %3813 = vst [vmem:[%s5277_s16 + $0x60] sm:$0xff] %v1273_v58  ;;  %v1029_v27 = vmul.f32 0.01, %v965_v12  ;;  %v968_v58 = vadd.f32 %v5287_v53, %v931_v63  ;;  %v1062_v36 = vsel %vm998_vm4, %v966_v9, %v1030_v24 }
 0x225   : > { %v1163_v35 = vpop.permute.xlu1 %1162  ;;  %v1158_v13 = vpop.permute.xlu0 %1157  ;;  %v970_v30 = vadd.f32 %v5287_v53, %v933_v17  ;;  %v969_v32 = vadd.f32 %v5287_v53, %v932_v18 }
 0x226   : > { %v1276_v38 = vmul.f32 %v1163_v35, %v1052_v25  ;;  %v1275_v39 = vmul.f32 %v1158_v13, %v1051_v28  ;;  %v3798_v25 = vld [vmem:[%s5277_s16 + $0xf8] sm:$0xff]  ;;  %v967_v28 = vadd.f32 %v5287_v53, %v930_v14  ;;  %v1061_v37 = vsel %vm997_vm5, %v965_v12, %v1029_v27 }
 0x227   : > { %v935_v2 = vmul.f32 %v5280_v57, %v3798_v25  ;;  %v1032_v11 = vmul.f32 0.01, %v968_v58  ;;  %vm1000_vm6 = vcmp.gt.f32.partialorder %v968_v58, 0.0  ;;  %v1034_v21 = vmul.f32 0.01, %v970_v30 }
 0x228   : > { %3816 = vst [vmem:[%s5277_s16 + $0x78] sm:$0xff] %v1276_v38  ;;  %3815 = vst [vmem:[%s5277_s16 + $0x70] sm:$0xff] %v1275_v39  ;;  %v1031_v38 = vmul.f32 0.01, %v967_v28  ;;  %vm999_vm7 = vcmp.gt.f32.partialorder %v967_v28, 0.0  ;;  %v3800_v39 = vld [vmem:[%s5277_s16 + $0x108] sm:$0xff]  ;;  %v1067_v12 = vsel %vm1003_vm11, %v971_v33, %v1035_v62 }
 0x229   : > { %v1173_v46 = vpop.permute.xlu1 %1172  ;;  %v1168_v47 = vpop.permute.xlu0 %1167  ;;  %v1033_v44 = vmul.f32 0.01, %v969_v32  ;;  %v972_v45 = vadd.f32 %v5287_v53, %v935_v2  ;;  %vm1002_vm8 = vcmp.gt.f32.partialorder %v970_v30, 0.0  ;;  %vm1001_vm9 = vcmp.gt.f32.partialorder %v969_v32, 0.0 }
 0x22a   : > { %v1278_v50 = vmul.f32 %v1173_v46, %v1054_v23  ;;  %v1277_v52 = vmul.f32 %v1168_v47, %v1053_v40  ;;  %v3799_v23 = vld [vmem:[%s5277_s16 + $0x100] sm:$0xff]  ;;  %v1064_v48 = vsel %vm1000_vm6, %v968_v58, %v1032_v11  ;;  %v1063_v49 = vsel %vm999_vm7, %v967_v28, %v1031_v38 }
 0x22b   : > { %v937_v31 = vmul.f32 %v5280_v57, %v3800_v39  ;;  %v1066_v56 = vsel %vm1002_vm8, %v970_v30, %v1034_v21  ;;  %v1065_v59 = vsel %vm1001_vm9, %v969_v32, %v1033_v44  ;;  %v1036_v60 = vmul.f32 0.01, %v972_v45 }
 0x22c   : > { %3818 = vst [vmem:[%s5277_s16 + $0x88] sm:$0xff] %v1278_v50  ;;  %3817 = vst [vmem:[%s5277_s16 + $0x80] sm:$0xff] %v1277_v52  ;;  %v936_v50 = vmul.f32 %v5280_v57, %v3799_v23  ;;  %v3802_v52 = vld [vmem:[%s5277_s16 + $0x118] sm:$0xff]  ;;  %vm1004_vm10 = vcmp.gt.f32.partialorder %v972_v45, 0.0 }
 0x22d   : > { %v1183_v41 = vpop.permute.xlu1 %1182  ;;  %v1178_v0 = vpop.permute.xlu0 %1177  ;;  %v1068_v1 = vsel %vm1004_vm10, %v972_v45, %v1036_v60 }
 0x22e   : > { %v1280_v6 = vmul.f32 %v1183_v41, %v1056_v43  ;;  %v1279_v7 = vmul.f32 %v1178_v0, %v1055_v55 }
 0x230   : > { %3820 = vst [vmem:[%s5277_s16 + $0x98] sm:$0xff] %v1280_v6  ;;  %3819 = vst [vmem:[%s5277_s16 + $0x90] sm:$0xff] %v1279_v7  ;;  %v939_v6 = vmul.f32 %v5280_v57, %v3802_v52  ;;  %v938_v7 = vmul.f32 %v5280_v57, %v3801_v54 }
 0x231   : > { %v1193_v15 = vpop.permute.xlu1 %1192  ;;  %v1188_v16 = vpop.permute.xlu0 %1187 }
 0x232   : > { %v1282_v19 = vmul.f32 %v1193_v15, %v1058_v3  ;;  %v1281_v20 = vmul.f32 %v1188_v16, %v1057_v5  ;;  %v974_v3 = vadd.f32 %v5287_v53, %v937_v31  ;;  %v973_v5 = vadd.f32 %v5287_v53, %v936_v50 }
 0x233   : > { %v976_v15 = vadd.f32 %v5287_v53, %v939_v6  ;;  %v975_v16 = vadd.f32 %v5287_v53, %v938_v7 }
 0x234   : > { %3822 = vst [vmem:[%s5277_s16 + $0xa8] sm:$0xff] %v1282_v19  ;;  %3821 = vst [vmem:[%s5277_s16 + $0xa0] sm:$0xff] %v1281_v20  ;;  %v1038_v63 = vmul.f32 0.01, %v974_v3  ;;  %v1037_v14 = vmul.f32 0.01, %v973_v5 }
 0x235   : > { %v1203_v29 = vpop.permute.xlu1 %1202  ;;  %v1198_v4 = vpop.permute.xlu0 %1197  ;;  %vm1006_vm12 = vcmp.gt.f32.partialorder %v974_v3, 0.0  ;;  %vm1005_vm13 = vcmp.gt.f32.partialorder %v973_v5, 0.0  ;;  %v1040_v24 = vmul.f32 0.01, %v976_v15  ;;  %v1039_v25 = vmul.f32 0.01, %v975_v16 }
 0x236   : > { %v1284_v35 = vmul.f32 %v1203_v29, %v1060_v22  ;;  %v1283_v13 = vmul.f32 %v1198_v4, %v1059_v26  ;;  %v1070_v20 = vsel %vm1006_vm12, %v974_v3, %v1038_v63  ;;  %v1069_v22 = vsel %vm1005_vm13, %v973_v5, %v1037_v14 }
 0x237   : > { %vm1008_vm14 = vcmp.gt.f32.partialorder %v976_v15, 0.0  ;;  %vm1007_vm15 = vcmp.gt.f32.partialorder %v975_v16, 0.0 }
 0x238   : > { %3824 = vst [vmem:[%s5277_s16 + $0xb8] sm:$0xff] %v1284_v35  ;;  %3823 = vst [vmem:[%s5277_s16 + $0xb0] sm:$0xff] %v1283_v13  ;;  %v1072_v58 = vsel %vm1008_vm14, %v976_v15, %v1040_v24  ;;  %v1071_v28 = vsel %vm1007_vm15, %v975_v16, %v1039_v25 }
 0x239   : > { %v1213_v40 = vpop.permute.xlu1 %1212  ;;  %v1208_v42 = vpop.permute.xlu0 %1207 }
 0x23a   : > { %v1286_v46 = vmul.f32 %v1213_v40, %v1062_v36  ;;  %v1285_v47 = vmul.f32 %v1208_v42, %v1061_v37 }
 0x23c   : > { %3826 = vst [vmem:[%s5277_s16 + $0xc8] sm:$0xff] %v1286_v46  ;;  %3825 = vst [vmem:[%s5277_s16 + $0xc0] sm:$0xff] %v1285_v47 }
 0x23d   : > { %v1223_v43 = vpop.permute.xlu1 %1222  ;;  %v1218_v55 = vpop.permute.xlu0 %1217 }
 0x23e   : > { %v1288_v41 = vmul.f32 %v1223_v43, %v1064_v48  ;;  %v1287_v0 = vmul.f32 %v1218_v55, %v1063_v49 }
 0x240   : > { %3828 = vst [vmem:[%s5277_s16 + $0xd8] sm:$0xff] %v1288_v41  ;;  %3827 = vst [vmem:[%s5277_s16 + $0xd0] sm:$0xff] %v1287_v0 }
 0x241   : > { %v1233_v8 = vpop.permute.xlu1 %1232  ;;  %v1228_v9 = vpop.permute.xlu0 %1227 }
 0x242   : > { %v1290_v51 = vmul.f32 %v1233_v8, %v1066_v56  ;;  %v1289_v10 = vmul.f32 %v1228_v9, %v1065_v59 }
 0x244   : > { %3830 = vst [vmem:[%s5277_s16 + $0xe8] sm:$0xff] %v1290_v51  ;;  %3829 = vst [vmem:[%s5277_s16 + $0xe0] sm:$0xff] %v1289_v10 }
 0x245   : > { %v1243_v57 = vpop.permute.xlu1 %1242  ;;  %v1238_v17 = vpop.permute.xlu0 %1237 }
 0x246   : > { %v1292_v18 = vmul.f32 %v1243_v57, %v1068_v1  ;;  %v1291_v19 = vmul.f32 %v1238_v17, %v1067_v12 }
 0x248   : > { %3832 = vst [vmem:[%s5277_s16 + $0xf8] sm:$0xff] %v1292_v18  ;;  %3831 = vst [vmem:[%s5277_s16 + $0xf0] sm:$0xff] %v1291_v19 }
 0x249   : > { %v1253_v53 = vpop.permute.xlu1 %1252  ;;  %v1248_v61 = vpop.permute.xlu0 %1247 }
 0x24a   : > { %v1294_v26 = vmul.f32 %v1253_v53, %v1070_v20  ;;  %v1293_v27 = vmul.f32 %v1248_v61, %v1069_v22 }
 0x24c   : > { %3834 = vst [vmem:[%s5277_s16 + $0x108] sm:$0xff] %v1294_v26  ;;  %3833 = vst [vmem:[%s5277_s16 + $0x100] sm:$0xff] %v1293_v27 }
 0x24d   : > { %v1263_v29 = vpop.permute.xlu1 %1262  ;;  %v1258_v4 = vpop.permute.xlu0 %1257 }
 0x24e   : > { %v1296_v30 = vmul.f32 %v1263_v29, %v1072_v58  ;;  %v1295_v32 = vmul.f32 %v1258_v4, %v1071_v28 }
 0x250   : > { %3836 = vst [vmem:[%s5277_s16 + $0x118] sm:$0xff] %v1296_v30  ;;  %3835 = vst [vmem:[%s5277_s16 + $0x110] sm:$0xff] %v1295_v32 }
 0x251 PF: > { %p3837_p1 = scmp.ne.s32.totalorder %s4915_s28, 2 }
 0x253   : > { %1332 = sbr.rel (%p3837_p1) target bundleno = 1269 (0x4f5), region = 72 }
 0x25a   : > { %v1638_v2 = vld [vmem:[%s7195_s3] sm:$0xff]  ;;  %v1639_v34 = vld [vmem:[%s7195_s3 + $0x8] sm:$0xff]  ;;  %v7201_v13 = vmov 0.0|0.0   ;;  %v1640_v11 = vld [vmem:[%s7195_s3 + $0x10] sm:$0xff]  ;;  %s5515_s13 = scalar_lea.vmem [#allocation2], %s5015_s12  ;;  %p4135_p2 = scmp.ne.s32.totalorder %s4911_s27, 3 }
 0x25b   : > { %v1670_v35 = vld [vmem:[%s7195_s3 + $0x100] sm:$0xff]  ;;  %4429 = vmatprep.subr.bf16.mxu1 %v7201_v13  ;;  %4477 = vmatprep.subr.bf16.mxu0 %v7201_v13  ;;  %v4430_v36 = vpack.c.bf16 %v1639_v34, %v1638_v2  ;;  %v1671_v37 = vld [vmem:[%s7195_s3 + $0x108] sm:$0xff]  ;;  %v1641_v38 = vld [vmem:[%s7195_s3 + $0x18] sm:$0xff] }
 0x25c   : > { %v4478_v39 = vpack.c.bf16 %v1671_v37, %v1670_v35  ;;  %v1672_v23 = vld [vmem:[%s7195_s3 + $0x110] sm:$0xff]  ;;  %v1673_v40 = vld [vmem:[%s7195_s3 + $0x118] sm:$0xff]  ;;  %v4433_v42 = vpack.c.bf16 %v1641_v38, %v1640_v11  ;;  %v1642_v44 = vld [vmem:[%s7195_s3 + $0x20] sm:$0xff] }
 0x25d   : > { %4431 = vmatpush1.bf16.msra.mxu1 %v4430_v36  ;;  %v4481_v21 = vpack.c.bf16 %v1673_v40, %v1672_v23  ;;  %v1643_v45 = vld [vmem:[%s7195_s3 + $0x28] sm:$0xff]  ;;  %v1674_v33 = vld [vmem:[%s7195_s3 + $0x120] sm:$0xff]  ;;  %v1644_v49 = vld [vmem:[%s7195_s3 + $0x30] sm:$0xff] }
 0x25e   : > { %4479 = vmatpush1.bf16.msra.mxu0 %v4478_v39  ;;  %4432 = vmatprep.subr.bf16.mxu1 %v7201_v13  ;;  %v1675_v46 = vld [vmem:[%s7195_s3 + $0x128] sm:$0xff]  ;;  %v4436_v47 = vpack.c.bf16 %v1643_v45, %v1642_v44  ;;  %v1645_v31 = vld [vmem:[%s7195_s3 + $0x38] sm:$0xff]  ;;  %v1676_v50 = vld [vmem:[%s7195_s3 + $0x130] sm:$0xff] }
 0x25f   : > { %4480 = vmatprep.subr.bf16.mxu0 %v7201_v13  ;;  %v4484_v48 = vpack.c.bf16 %v1675_v46, %v1674_v33  ;;  %v1677_v52 = vld [vmem:[%s7195_s3 + $0x138] sm:$0xff]  ;;  %v4439_v54 = vpack.c.bf16 %v1645_v31, %v1644_v49  ;;  %v1646_v55 = vld [vmem:[%s7195_s3 + $0x40] sm:$0xff]  ;;  %v1647_v56 = vld [vmem:[%s7195_s3 + $0x48] sm:$0xff] }
 0x260   : > { %v4487_v43 = vpack.c.bf16 %v1677_v52, %v1676_v50  ;;  %v1678_v59 = vld [vmem:[%s7195_s3 + $0x140] sm:$0xff]  ;;  %v1679_v60 = vld [vmem:[%s7195_s3 + $0x148] sm:$0xff]  ;;  %v4442_v62 = vpack.c.bf16 %v1647_v56, %v1646_v55  ;;  %v1648_v0 = vld [vmem:[%s7195_s3 + $0x50] sm:$0xff] }
 0x261   : > { %4434 = vmatpush1.bf16.msra.mxu1 %v4433_v42  ;;  %v4490_v41 = vpack.c.bf16 %v1679_v60, %v1678_v59  ;;  %v1649_v3 = vld [vmem:[%s7195_s3 + $0x58] sm:$0xff]  ;;  %v1680_v5 = vld [vmem:[%s7195_s3 + $0x150] sm:$0xff]  ;;  %v1650_v9 = vld [vmem:[%s7195_s3 + $0x60] sm:$0xff] }
 0x262   : > { %4482 = vmatpush1.bf16.msra.mxu0 %v4481_v21  ;;  %4435 = vmatprep.subr.bf16.mxu1 %v7201_v13  ;;  %v1681_v6 = vld [vmem:[%s7195_s3 + $0x158] sm:$0xff]  ;;  %v4445_v7 = vpack.c.bf16 %v1649_v3, %v1648_v0  ;;  %v1651_v51 = vld [vmem:[%s7195_s3 + $0x68] sm:$0xff]  ;;  %v1682_v10 = vld [vmem:[%s7195_s3 + $0x160] sm:$0xff] }
 0x263   : > { %4483 = vmatprep.subr.bf16.mxu0 %v7201_v13  ;;  %v4493_v8 = vpack.c.bf16 %v1681_v6, %v1680_v5  ;;  %v1683_v1 = vld [vmem:[%s7195_s3 + $0x168] sm:$0xff]  ;;  %v5519_v63 = vld [vmem:[%s5515_s13 + $0x1f] sm:$0xff]  ;;  %v4448_v14 = vpack.c.bf16 %v1651_v51, %v1650_v9  ;;  %v1652_v16 = vld [vmem:[%s7195_s3 + $0x70] sm:$0xff] }
 0x264   : > { %v3872_v12 = vld [vmem:[%s5515_s13 + $0x8] sm:$0xff]  ;;  %2071 = vmatprep.mubr.f32.mxu0 %v5519_v63  ;;  %v4496_v15 = vpack.c.bf16 %v1683_v1, %v1682_v10  ;;  %v1653_v57 = vld [vmem:[%s7195_s3 + $0x78] sm:$0xff]  ;;  %v1684_v17 = vld [vmem:[%s7195_s3 + $0x170] sm:$0xff] }
 0x265   : > { %4437 = vmatpush1.bf16.msra.mxu1 %v4436_v47  ;;  %1846 = vmatprep.mubr.f32.mxu1 %v3872_v12  ;;  %v1685_v18 = vld [vmem:[%s7195_s3 + $0x178] sm:$0xff]  ;;  %v4451_v19 = vpack.c.bf16 %v1653_v57, %v1652_v16  ;;  %v1654_v22 = vld [vmem:[%s7195_s3 + $0x80] sm:$0xff]  ;;  %v1655_v24 = vld [vmem:[%s7195_s3 + $0x88] sm:$0xff] }
 0x266   : > { %4485 = vmatpush1.bf16.msra.mxu0 %v4484_v48  ;;  %4438 = vmatprep.subr.bf16.mxu1 %v7201_v13  ;;  %v4499_v20 = vpack.c.bf16 %v1685_v18, %v1684_v17  ;;  %v1686_v25 = vld [vmem:[%s7195_s3 + $0x180] sm:$0xff]  ;;  %v1687_v53 = vld [vmem:[%s7195_s3 + $0x188] sm:$0xff]  ;;  %v4454_v61 = vpack.c.bf16 %v1655_v24, %v1654_v22  ;;  %v1656_v27 = vld [vmem:[%s7195_s3 + $0x90] sm:$0xff] }
 0x267   : > { %4486 = vmatprep.subr.bf16.mxu0 %v7201_v13  ;;  %v4502_v26 = vpack.c.bf16 %v1687_v53, %v1686_v25  ;;  %v1657_v58 = vld [vmem:[%s7195_s3 + $0x98] sm:$0xff]  ;;  %v1688_v28 = vld [vmem:[%s7195_s3 + $0x190] sm:$0xff]  ;;  %v1658_v32 = vld [vmem:[%s7195_s3 + $0xa0] sm:$0xff] }
 0x268   : > { %v1689_v29 = vld [vmem:[%s7195_s3 + $0x198] sm:$0xff]  ;;  %v4457_v4 = vpack.c.bf16 %v1657_v58, %v1656_v27  ;;  %v1659_v2 = vld [vmem:[%s7195_s3 + $0xa8] sm:$0xff]  ;;  %v1690_v34 = vld [vmem:[%s7195_s3 + $0x1a0] sm:$0xff] }
 0x269   : > { %4440 = vmatpush1.bf16.msra.mxu1 %v4439_v54  ;;  %v4505_v30 = vpack.c.bf16 %v1689_v29, %v1688_v28  ;;  %v1691_v35 = vld [vmem:[%s7195_s3 + $0x1a8] sm:$0xff]  ;;  %v4460_v36 = vpack.c.bf16 %v1659_v2, %v1658_v32  ;;  %v1660_v11 = vld [vmem:[%s7195_s3 + $0xb0] sm:$0xff]  ;;  %v1661_v38 = vld [vmem:[%s7195_s3 + $0xb8] sm:$0xff] }
 0x26a   : > { %4488 = vmatpush1.bf16.msra.mxu0 %v4487_v43  ;;  %4441 = vmatprep.subr.bf16.mxu1 %v7201_v13  ;;  %v4508_v37 = vpack.c.bf16 %v1691_v35, %v1690_v34  ;;  %v1692_v39 = vld [vmem:[%s7195_s3 + $0x1b0] sm:$0xff]  ;;  %v1693_v23 = vld [vmem:[%s7195_s3 + $0x1b8] sm:$0xff]  ;;  %v4463_v40 = vpack.c.bf16 %v1661_v38, %v1660_v11  ;;  %v1662_v21 = vld [vmem:[%s7195_s3 + $0xc0] sm:$0xff] }
 0x26b   : > { %4489 = vmatprep.subr.bf16.mxu0 %v7201_v13  ;;  %v4511_v42 = vpack.c.bf16 %v1693_v23, %v1692_v39  ;;  %v1663_v44 = vld [vmem:[%s7195_s3 + $0xc8] sm:$0xff]  ;;  %v1694_v45 = vld [vmem:[%s7195_s3 + $0x1c0] sm:$0xff]  ;;  %v1664_v48 = vld [vmem:[%s7195_s3 + $0xd0] sm:$0xff] }
 0x26c   : > { %v1695_v33 = vld [vmem:[%s7195_s3 + $0x1c8] sm:$0xff]  ;;  %v4466_v46 = vpack.c.bf16 %v1663_v44, %v1662_v21  ;;  %v1665_v49 = vld [vmem:[%s7195_s3 + $0xd8] sm:$0xff]  ;;  %v1696_v31 = vld [vmem:[%s7195_s3 + $0x1d0] sm:$0xff] }
 0x26d   : > { %4443 = vmatpush1.bf16.msra.mxu1 %v4442_v62  ;;  %v4514_v47 = vpack.c.bf16 %v1695_v33, %v1694_v45  ;;  %v1697_v50 = vld [vmem:[%s7195_s3 + $0x1d8] sm:$0xff]  ;;  %v4469_v52 = vpack.c.bf16 %v1665_v49, %v1664_v48  ;;  %v1666_v43 = vld [vmem:[%s7195_s3 + $0xe0] sm:$0xff]  ;;  %v1667_v55 = vld [vmem:[%s7195_s3 + $0xe8] sm:$0xff] }
 0x26e   : > { %4491 = vmatpush1.bf16.msra.mxu0 %v4490_v41  ;;  %4444 = vmatprep.subr.bf16.mxu1 %v7201_v13  ;;  %v4517_v54 = vpack.c.bf16 %v1697_v50, %v1696_v31  ;;  %v1698_v56 = vld [vmem:[%s7195_s3 + $0x1e0] sm:$0xff]  ;;  %v1699_v59 = vld [vmem:[%s7195_s3 + $0x1e8] sm:$0xff]  ;;  %v4472_v60 = vpack.c.bf16 %v1667_v55, %v1666_v43  ;;  %v1668_v41 = vld [vmem:[%s7195_s3 + $0xf0] sm:$0xff] }
 0x26f   : > { %4492 = vmatprep.subr.bf16.mxu0 %v7201_v13  ;;  %v4520_v62 = vpack.c.bf16 %v1699_v59, %v1698_v56  ;;  %v1669_v0 = vld [vmem:[%s7195_s3 + $0xf8] sm:$0xff]  ;;  %v1700_v3 = vld [vmem:[%s7195_s3 + $0x1f0] sm:$0xff]  ;;  %v1703_v9 = vld [vmem:[%s7195_s3 + $0x208] sm:$0xff] }
 0x270   : > { %v1701_v5 = vld [vmem:[%s7195_s3 + $0x1f8] sm:$0xff]  ;;  %v4475_v6 = vpack.c.bf16 %v1669_v0, %v1668_v41  ;;  %v1734_v51 = vld [vmem:[%s7195_s3 + $0x300] sm:$0xff]  ;;  %v1735_v10 = vld [vmem:[%s7195_s3 + $0x308] sm:$0xff] }
 0x271   : > { %4446 = vmatpush1.bf16.msra.mxu1 %v4445_v7  ;;  %v4523_v7 = vpack.c.bf16 %v1701_v5, %v1700_v3  ;;  %v3839_v1 = vld [vmem:[%s5515_s13 + $0x7] sm:$0xff]  ;;  %v1704_v57 = vld [vmem:[%s7195_s3 + $0x210] sm:$0xff]  ;;  %v1705_v17 = vld [vmem:[%s7195_s3 + $0x218] sm:$0xff]  ;;  %v5676_v18 = vpack.c.bf16 %v1735_v10, %v1734_v51 }
 0x272   : > { %4494 = vmatpush1.bf16.msra.mxu0 %v4493_v8  ;;  %4447 = vmatprep.subr.bf16.mxu1 %v7201_v13  ;;  %v1702_v8 = vld [vmem:[%s7195_s3 + $0x200] sm:$0xff]  ;;  %v3905_v12 = vld [vmem:[%s5515_s13 + $0x9] sm:$0xff]  ;;  %v3906_v24 = vld [vmem:[%s5515_s13 + $0x11] sm:$0xff]  ;;  %v4529_v53 = vpack.c.bf16 %v1705_v17, %v1704_v57 }
 0x273   : > { %4495 = vmatprep.subr.bf16.mxu0 %v7201_v13  ;;  %v5668_v16 = vld [vmem:[%s5515_s13 + $0x27] sm:$0xff]  ;;  %v3840_v22 = vld [vmem:[%s5515_s13 + $0xf] sm:$0xff]  ;;  %v3874_v25 = vld [vmem:[%s5515_s13 + $0x18] sm:$0xff] }
 0x274   : > { %v1707_v27 = vld [vmem:[%s7195_s3 + $0x228] sm:$0xff]  ;;  %v1738_v28 = vld [vmem:[%s7195_s3 + $0x320] sm:$0xff]  ;;  %v5715_v34 = vld [vmem:[%s5515_s13 + $0x37] sm:$0xff] }
 0x275   : > { %4449 = vmatpush1.bf16.msra.mxu1 %v4448_v14  ;;  %v4526_v14 = vpack.c.bf16 %v1703_v9, %v1702_v8  ;;  %v1739_v29 = vld [vmem:[%s7195_s3 + $0x328] sm:$0xff]  ;;  %v5712_v32 = vld [vmem:[%s5515_s13 + $0x20] sm:$0xff]  ;;  %v1708_v35 = vld [vmem:[%s7195_s3 + $0x230] sm:$0xff] }
 0x276   : > { %4497 = vmatpush1.bf16.msra.mxu0 %v4496_v15  ;;  %4450 = vmatprep.subr.bf16.mxu1 %v7201_v13  ;;  %v3873_v15 = vld [vmem:[%s5515_s13 + $0x10] sm:$0xff]  ;;  %v1741_v38 = vld [vmem:[%s7195_s3 + $0x338] sm:$0xff]  ;;  %v5737_v39 = vld [vmem:[%s5515_s13 + $0x21] sm:$0xff] }
 0x277   : > { %4498 = vmatprep.subr.bf16.mxu0 %v7201_v13  ;;  %v1740_v11 = vld [vmem:[%s7195_s3 + $0x330] sm:$0xff]  ;;  %v5740_v23 = vld [vmem:[%s5515_s13 + $0x28] sm:$0xff]  ;;  %v1710_v21 = vld [vmem:[%s7195_s3 + $0x240] sm:$0xff] }
 0x278   : > { %v1711_v44 = vld [vmem:[%s7195_s3 + $0x248] sm:$0xff]  ;;  %v5753_v45 = vpack.c.bf16 %v1741_v38, %v1740_v11  ;;  %v1742_v33 = vld [vmem:[%s7195_s3 + $0x340] sm:$0xff]  ;;  %v5770_v48 = vld [vmem:[%s5515_s13 + $0x30] sm:$0xff] }
 0x279   : > { %4452 = vmatpush1.bf16.msra.mxu1 %v4451_v19  ;;  %v1736_v19 = vld [vmem:[%s7195_s3 + $0x310] sm:$0xff]  ;;  %v5773_v49 = vld [vmem:[%s5515_s13 + $0x47] sm:$0xff]  ;;  %v1713_v50 = vld [vmem:[%s7195_s3 + $0x258] sm:$0xff] }
 0x27a   : > { %4500 = vmatpush1.bf16.msra.mxu0 %v4499_v20  ;;  %4453 = vmatprep.subr.bf16.mxu1 %v7201_v13  ;;  %v1737_v20 = vld [vmem:[%s7195_s3 + $0x318] sm:$0xff]  ;;  %v1712_v31 = vld [vmem:[%s7195_s3 + $0x250] sm:$0xff]  ;;  %v1715_v41 = vld [vmem:[%s7195_s3 + $0x268] sm:$0xff] }
 0x27b   : > { %4501 = vmatprep.subr.bf16.mxu0 %v7201_v13  ;;  %v5699_v58 = vpack.c.bf16 %v1737_v20, %v1736_v19  ;;  %v1745_v43 = vld [vmem:[%s7195_s3 + $0x358] sm:$0xff]  ;;  %v4541_v59 = vpack.c.bf16 %v1713_v50, %v1712_v31  ;;  %v1746_v3 = vld [vmem:[%s7195_s3 + $0x360] sm:$0xff]  ;;  %v1747_v5 = vld [vmem:[%s7195_s3 + $0x368] sm:$0xff] }
 0x27c   : > { %v5797_v55 = vld [vmem:[%s5515_s13 + $0x31] sm:$0xff]  ;;  %v5863_v17 = vld [vmem:[%s5515_s13 + $0x5f] sm:$0xff]  ;;  %v1719_v20 = vld [vmem:[%s7195_s3 + $0x288] sm:$0xff] }
 0x27d   : > { %4455 = vmatpush1.bf16.msra.mxu1 %v4454_v61  ;;  %v5689_v61 = vld [vmem:[%s5515_s13 + $0x2f] sm:$0xff]  ;;  %v5800_v56 = vld [vmem:[%s5515_s13 + $0x38] sm:$0xff]  ;;  %v1718_v19 = vld [vmem:[%s7195_s3 + $0x280] sm:$0xff] }
 0x27e   : > { %4503 = vmatpush1.bf16.msra.mxu0 %v4502_v26  ;;  %4456 = vmatprep.subr.bf16.mxu1 %v7201_v13  ;;  %v1706_v26 = vld [vmem:[%s7195_s3 + $0x220] sm:$0xff]  ;;  %v5833_v9 = vld [vmem:[%s5515_s13 + $0x57] sm:$0xff]  ;;  %v5923_v11 = vld [vmem:[%s5515_s13 + $0x6f] sm:$0xff] }
 0x27f   : > { %4504 = vmatprep.subr.bf16.mxu0 %v7201_v13  ;;  %v4532_v2 = vpack.c.bf16 %v1707_v27, %v1706_v26  ;;  %v1716_v51 = vld [vmem:[%s7195_s3 + $0x270] sm:$0xff]  ;;  %v1717_v10 = vld [vmem:[%s7195_s3 + $0x278] sm:$0xff]  ;;  %v4550_v26 = vpack.c.bf16 %v1719_v20, %v1718_v19  ;;  %v5893_v27 = vld [vmem:[%s5515_s13 + $0x67] sm:$0xff] }
 0x280   : > { %v4547_v57 = vpack.c.bf16 %v1717_v10, %v1716_v51  ;;  %v1722_v38 = vld [vmem:[%s7195_s3 + $0x2a0] sm:$0xff]  ;;  %v1724_v31 = vld [vmem:[%s7195_s3 + $0x2b0] sm:$0xff]  ;;  %v1725_v50 = vld [vmem:[%s7195_s3 + $0x2b8] sm:$0xff] }
 0x281   : > { %4458 = vmatpush1.bf16.msra.mxu1 %v4457_v4  ;;  %v3841_v4 = vld [vmem:[%s5515_s13 + $0x17] sm:$0xff]  ;;  %v1758_v51 = vld [vmem:[%s7195_s3 + $0x3c0] sm:$0xff]  ;;  %v1759_v10 = vld [vmem:[%s7195_s3 + $0x3c8] sm:$0xff] }
 0x282   : > { %4506 = vmatpush1.bf16.msra.mxu0 %v4505_v30  ;;  %4459 = vmatprep.subr.bf16.mxu1 %v7201_v13  ;;  %v3907_v30 = vld [vmem:[%s5515_s13 + $0x19] sm:$0xff]  ;;  %v1728_v19 = vld [vmem:[%s7195_s3 + $0x2d0] sm:$0xff] }
 0x283   : > { %4507 = vmatprep.subr.bf16.mxu0 %v7201_v13  ;;  %v1729_v20 = vld [vmem:[%s7195_s3 + $0x2d8] sm:$0xff] }
 0x285   : > { %4461 = vmatpush1.bf16.msra.mxu1 %v4460_v36  ;;  %v1709_v36 = vld [vmem:[%s7195_s3 + $0x238] sm:$0xff] }
 0x286   : > { %4509 = vmatpush1.bf16.msra.mxu0 %v4508_v37  ;;  %4462 = vmatprep.subr.bf16.mxu1 %v7201_v13  ;;  %v5725_v37 = vpack.c.bf16 %v1739_v29, %v1738_v28  ;;  %v1720_v28 = vld [vmem:[%s7195_s3 + $0x290] sm:$0xff]  ;;  %v1721_v29 = vld [vmem:[%s7195_s3 + $0x298] sm:$0xff] }
 0x287   : > { %4510 = vmatprep.subr.bf16.mxu0 %v7201_v13 }
 0x289   : > { %4464 = vmatpush1.bf16.msra.mxu1 %v4463_v40  ;;  %v4535_v40 = vpack.c.bf16 %v1709_v36, %v1708_v35  ;;  %v5920_v35 = vld [vmem:[%s5515_s13 + $0x58] sm:$0xff]  ;;  %v4553_v36 = vpack.c.bf16 %v1721_v29, %v1720_v28 }
 0x28a   : > { %4512 = vmatpush1.bf16.msra.mxu0 %v4511_v42  ;;  %4465 = vmatprep.subr.bf16.mxu1 %v7201_v13  ;;  %v5743_v42 = vld [vmem:[%s5515_s13 + $0x3f] sm:$0xff]  ;;  %v6037_v28 = vld [vmem:[%s5515_s13 + $0x71] sm:$0xff] }
 0x28b   : > { %4513 = vmatprep.subr.bf16.mxu0 %v7201_v13  ;;  %v6040_v29 = vld [vmem:[%s5515_s13 + $0x78] sm:$0xff] }
 0x28d   : > { %4467 = vmatpush1.bf16.msra.mxu1 %v4466_v46  ;;  %v1743_v46 = vld [vmem:[%s7195_s3 + $0x348] sm:$0xff] }
 0x28e   : > { %4515 = vmatpush1.bf16.msra.mxu0 %v4514_v47  ;;  %4468 = vmatprep.subr.bf16.mxu1 %v7201_v13  ;;  %v5767_v47 = vld [vmem:[%s5515_s13 + $0x29] sm:$0xff] }
 0x28f   : > { %4516 = vmatprep.subr.bf16.mxu0 %v7201_v13 }
 0x291   : > { %4470 = vmatpush1.bf16.msra.mxu1 %v4469_v52  ;;  %v5783_v52 = vpack.c.bf16 %v1743_v46, %v1742_v33  ;;  %v5947_v33 = vld [vmem:[%s5515_s13 + $0x59] sm:$0xff] }
 0x292   : > { %4518 = vmatpush1.bf16.msra.mxu0 %v4517_v54  ;;  %4471 = vmatprep.subr.bf16.mxu1 %v7201_v13  ;;  %v1744_v54 = vld [vmem:[%s7195_s3 + $0x350] sm:$0xff]  ;;  %v5950_v46 = vld [vmem:[%s5515_s13 + $0x60] sm:$0xff] }
 0x293   : > { %4519 = vmatprep.subr.bf16.mxu0 %v7201_v13  ;;  %v5813_v0 = vpack.c.bf16 %v1745_v43, %v1744_v54  ;;  %v1756_v43 = vld [vmem:[%s7195_s3 + $0x3b0] sm:$0xff] }
 0x295   : > { %4473 = vmatpush1.bf16.msra.mxu1 %v4472_v60  ;;  %v5803_v60 = vld [vmem:[%s5515_s13 + $0x4f] sm:$0xff] }
 0x296   : > { %4521 = vmatpush1.bf16.msra.mxu0 %v4520_v62  ;;  %4474 = vmatprep.subr.bf16.mxu1 %v7201_v13  ;;  %v1714_v62 = vld [vmem:[%s7195_s3 + $0x260] sm:$0xff] }
 0x297   : > { %4522 = vmatprep.subr.bf16.mxu0 %v7201_v13  ;;  %v4544_v8 = vpack.c.bf16 %v1715_v41, %v1714_v62  ;;  %v5980_v62 = vld [vmem:[%s5515_s13 + $0x68] sm:$0xff]  ;;  %v4559_v41 = vpack.c.bf16 %v1725_v50, %v1724_v31  ;;  %v6073_v31 = vld [vmem:[%s5515_s13 + $0x97] sm:$0xff] }
 0x298   : > { %v1732_v50 = vld [vmem:[%s7195_s3 + $0x2f0] sm:$0xff] }
 0x299   : > { %4476 = vmatpush1.bf16.msra.mxu1 %v4475_v6  ;;  %v5827_v6 = vld [vmem:[%s5515_s13 + $0x39] sm:$0xff] }
 0x29a   : > { %4524 = vmatpush1.bf16.msra.mxu0 %v4523_v7  ;;  %4669 = vmatprep.subr.bf16.mxu1 %v7201_v13  ;;  %v5830_v7 = vld [vmem:[%s5515_s13 + $0x40] sm:$0xff] }
 0x29b   : > { %4525 = vmatprep.subr.bf16.mxu0 %v7201_v13 }
 0x29c   : > { %1847 = vmatmul.mubr.f32.vlgmr.msra.gmra.mrb[0].mxu1 %v3839_v1  ;;  %v5843_v1 = vpack.c.bf16 %v1747_v5, %v1746_v3  ;;  %v5983_v3 = vld [vmem:[%s5515_s13 + $0x7f] sm:$0xff] }
 0x29d   : > { %2072 = vmatmul.mubr.f32.vlgmr.msra.gmra.mrb[0].mxu0 %v3905_v12  ;;  %1851 = vmatprep.mubr.f32.mxu1 %v3873_v15  ;;  %v1748_v12 = vld [vmem:[%s7195_s3 + $0x370] sm:$0xff]  ;;  %v5857_v15 = vld [vmem:[%s5515_s13 + $0x41] sm:$0xff] }
 0x29e   : > { %4527 = vmatpush1.bf16.msra.mxu0 %v4526_v14  ;;  %2076 = vmatprep.mubr.f32.mxu0 %v5668_v16  ;;  %v1749_v14 = vld [vmem:[%s7195_s3 + $0x378] sm:$0xff]  ;;  %v1726_v5 = vld [vmem:[%s7195_s3 + $0x2c0] sm:$0xff] }
 0x29f   : > { %4528 = vmatprep.subr.bf16.mxu0 %v7201_v13  ;;  %4685 = vmatpush1.bf16.msra.mxu1 %v5676_v18 }
 0x2a0   : > { %1852 = vmatmul.mubr.f32.gmra.mrb[2].mxu1 %v3840_v22  ;;  %4670 = vmatprep.subr.bf16.mxu1 %v7201_v13  ;;  %v5873_v22 = vpack.c.bf16 %v1749_v14, %v1748_v12  ;;  %v6007_v12 = vld [vmem:[%s5515_s13 + $0x69] sm:$0xff] }
 0x2a1   : > { %2077 = vmatmul.mubr.f32.gmra.mrb[2].mxu0 %v3906_v24  ;;  %1856 = vmatprep.mubr.f32.mxu1 %v3874_v25  ;;  %v1750_v24 = vld [vmem:[%s7195_s3 + $0x380] sm:$0xff]  ;;  %v1751_v25 = vld [vmem:[%s7195_s3 + $0x388] sm:$0xff]  ;;  %v6010_v14 = vld [vmem:[%s5515_s13 + $0x70] sm:$0xff] }
 0x2a2   : > { %2081 = vmatprep.mubr.f32.mxu0 %v5689_v61  ;;  %4530 = vmatpush1.bf16.msra.mxu0 %v4529_v53  ;;  %v5887_v53 = vld [vmem:[%s5515_s13 + $0x49] sm:$0xff]  ;;  %7261 = vst [vmem:[#allocation9_spill] sm:$0xff] %v6010_v14 }
 0x2a3   : > { %4531 = vmatprep.subr.bf16.mxu0 %v7201_v13  ;;  %4686 = vmatpush1.bf16.msra.mxu1 %v5699_v58 }
 0x2a4   : > { %1857 = vmatmul.mubr.f32.gmra.mrb[4].mxu1 %v3841_v4  ;;  %4671 = vmatprep.subr.bf16.mxu1 %v7201_v13  ;;  %v5903_v4 = vpack.c.bf16 %v1751_v25, %v1750_v24  ;;  %v6023_v24 = vpack.c.bf16 %v1759_v10, %v1758_v51  ;;  %v1760_v25 = vld [vmem:[%s7195_s3 + $0x3d0] sm:$0xff]  ;;  %v1767_v51 = vld [vmem:[%s7195_s3 + $0x408] sm:$0xff] }
 0x2a5   : > { %2082 = vmatmul.mubr.f32.gmra.mrb[4].mxu0 %v3907_v30  ;;  %1861 = vmatprep.mubr.f32.mxu1 %v5712_v32  ;;  %v1752_v30 = vld [vmem:[%s7195_s3 + $0x390] sm:$0xff]  ;;  %v6103_v10 = vld [vmem:[%s5515_s13 + $0x81] sm:$0xff] }
 0x2a6   : > { %2086 = vmatprep.mubr.f32.mxu0 %v5715_v34  ;;  %4533 = vmatpush1.bf16.msra.mxu0 %v4532_v2  ;;  %v1753_v2 = vld [vmem:[%s7195_s3 + $0x398] sm:$0xff]  ;;  %7262 = vst [vmem:[#allocation10_spill] sm:$0xff] %v6023_v24  ;;  %7266 = vst [vmem:[#allocation14_spill] sm:$0xff] %v6103_v10 }
 0x2a7   : > { %4534 = vmatprep.subr.bf16.mxu0 %v7201_v13  ;;  %4687 = vmatpush1.bf16.msra.mxu1 %v5725_v37 }
 0x2a8   : > { %1862 = vmatmul.mubr.f32.gmra.mrb[6].mxu1 %v5519_v63  ;;  %4672 = vmatprep.subr.bf16.mxu1 %v7201_v13  ;;  %v4538_v63 = vpack.c.bf16 %v1711_v44, %v1710_v21  ;;  %v1754_v21 = vld [vmem:[%s7195_s3 + $0x3a0] sm:$0xff]  ;;  %v1755_v44 = vld [vmem:[%s7195_s3 + $0x3a8] sm:$0xff] }
 0x2a9   : > { %2087 = vmatmul.mubr.f32.gmra.mrb[6].mxu0 %v5737_v39  ;;  %1866 = vmatprep.mubr.f32.mxu1 %v5740_v23  ;;  %v5963_v54 = vpack.c.bf16 %v1755_v44, %v1754_v21  ;;  %v1763_v21 = vld [vmem:[%s7195_s3 + $0x3e8] sm:$0xff]  ;;  %v6067_v44 = vld [vmem:[%s5515_s13 + $0x79] sm:$0xff] }
 0x2aa   : > { %2091 = vmatprep.mubr.f32.mxu0 %v5743_v42  ;;  %4536 = vmatpush1.bf16.msra.mxu0 %v4535_v40  ;;  %v1723_v40 = vld [vmem:[%s7195_s3 + $0x2a8] sm:$0xff]  ;;  %7264 = vst [vmem:[#allocation12_spill] sm:$0xff] %v6067_v44 }
 0x2ab   : > { %4537 = vmatprep.subr.bf16.mxu0 %v7201_v13  ;;  %4688 = vmatpush1.bf16.msra.mxu1 %v5753_v45  ;;  %7259 = vst [vmem:[#allocation7_spill] sm:$0xff] %v5963_v54 }
 0x2ac   : > { %1867 = vmatmul.mubr.f32.gmra.mrb[8].mxu1 %v5668_v16  ;;  %4673 = vmatprep.subr.bf16.mxu1 %v7201_v13  ;;  %v5860_v16 = vld [vmem:[%s5515_s13 + $0x48] sm:$0xff] }
 0x2ad   : > { %2092 = vmatmul.mubr.f32.gmra.mrb[8].mxu0 %v5767_v47  ;;  %1871 = vmatprep.mubr.f32.mxu1 %v5770_v48 }
 0x2ae   : > { %2096 = vmatprep.mubr.f32.mxu0 %v5773_v49  ;;  %4539 = vmatpush1.bf16.msra.mxu0 %v4538_v63  ;;  %v4556_v63 = vpack.c.bf16 %v1723_v40, %v1722_v38  ;;  %v1762_v40 = vld [vmem:[%s7195_s3 + $0x3e0] sm:$0xff] }
 0x2af   : > { %4540 = vmatprep.subr.bf16.mxu0 %v7201_v13  ;;  %4689 = vmatpush1.bf16.msra.mxu1 %v5783_v52 }
 0x2b0   : > { %1872 = vmatmul.mubr.f32.gmra.mrb[10].mxu1 %v5689_v61  ;;  %4674 = vmatprep.subr.bf16.mxu1 %v7201_v13  ;;  %v5890_v61 = vld [vmem:[%s5515_s13 + $0x50] sm:$0xff] }
 0x2b1   : > { %2097 = vmatmul.mubr.f32.gmra.mrb[10].mxu0 %v5797_v55  ;;  %1876 = vmatprep.mubr.f32.mxu1 %v5800_v56 }
 0x2b2   : > { %2101 = vmatprep.mubr.f32.mxu0 %v5803_v60  ;;  %4542 = vmatpush1.bf16.msra.mxu0 %v4541_v59  ;;  %v1757_v59 = vld [vmem:[%s7195_s3 + $0x3b8] sm:$0xff] }
 0x2b3   : > { %4543 = vmatprep.subr.bf16.mxu0 %v7201_v13  ;;  %4690 = vmatpush1.bf16.msra.mxu1 %v5813_v0 }
 0x2b4   : > { %1877 = vmatmul.mubr.f32.gmra.mrb[12].mxu1 %v5715_v34  ;;  %4675 = vmatprep.subr.bf16.mxu1 %v7201_v13  ;;  %v5917_v34 = vld [vmem:[%s5515_s13 + $0x51] sm:$0xff] }
 0x2b5   : > { %2102 = vmatmul.mubr.f32.gmra.mrb[12].mxu0 %v5827_v6  ;;  %1881 = vmatprep.mubr.f32.mxu1 %v5830_v7 }
 0x2b6   : > { %2106 = vmatprep.mubr.f32.mxu0 %v5833_v9  ;;  %4545 = vmatpush1.bf16.msra.mxu0 %v4544_v8  ;;  %v1727_v8 = vld [vmem:[%s7195_s3 + $0x2c8] sm:$0xff] }
 0x2b7   : > { %4546 = vmatprep.subr.bf16.mxu0 %v7201_v13  ;;  %4691 = vmatpush1.bf16.msra.mxu1 %v5843_v1 }
 0x2b8   : > { %1882 = vmatmul.mubr.f32.gmra.mrb[14].mxu1 %v5743_v42  ;;  %4676 = vmatprep.subr.bf16.mxu1 %v7201_v13  ;;  %v5933_v42 = vpack.c.bf16 %v1753_v2, %v1752_v30  ;;  %v6043_v30 = vld [vmem:[%s5515_s13 + $0x8f] sm:$0xff]  ;;  %v1730_v2 = vld [vmem:[%s7195_s3 + $0x2e0] sm:$0xff] }
 0x2b9   : > { %2107 = vmatmul.mubr.f32.gmra.mrb[14].mxu0 %v5857_v15  ;;  %1886 = vmatprep.mubr.f32.mxu1 %v5860_v16 }
 0x2ba   : > { %2111 = vmatprep.mubr.f32.mxu0 %v5863_v17  ;;  %4548 = vmatpush1.bf16.msra.mxu0 %v4547_v57  ;;  %v4562_v57 = vpack.c.bf16 %v1727_v8, %v1726_v5  ;;  %v1765_v5 = vld [vmem:[%s7195_s3 + $0x3f8] sm:$0xff]  ;;  %v1766_v8 = vld [vmem:[%s7195_s3 + $0x400] sm:$0xff] }
 0x2bb   : > { %4549 = vmatprep.subr.bf16.mxu0 %v7201_v13  ;;  %4692 = vmatpush1.bf16.msra.mxu1 %v5873_v22 }
 0x2bc   : > { %1887 = vmatmul.mubr.f32.gmra.mrb[16].mxu1 %v5773_v49  ;;  %4677 = vmatprep.subr.bf16.mxu1 %v7201_v13  ;;  %v5953_v49 = vld [vmem:[%s5515_s13 + $0x77] sm:$0xff] }
 0x2bd   : > { %2112 = vmatmul.mubr.f32.gmra.mrb[16].mxu0 %v5887_v53  ;;  %1891 = vmatprep.mubr.f32.mxu1 %v5890_v61 }
 0x2be   : > { %2116 = vmatprep.mubr.f32.mxu0 %v5893_v27  ;;  %4551 = vmatpush1.bf16.msra.mxu0 %v4550_v26  ;;  %v1761_v26 = vld [vmem:[%s7195_s3 + $0x3d8] sm:$0xff] }
 0x2bf   : > { %4552 = vmatprep.subr.bf16.mxu0 %v7201_v13  ;;  %4693 = vmatpush1.bf16.msra.mxu1 %v5903_v4  ;;  %v6053_v38 = vpack.c.bf16 %v1761_v26, %v1760_v25  ;;  %v6117_v26 = vpack.c.bf16 %v1767_v51, %v1766_v8  ;;  %v6168_v8 = vld [vmem:[%s5515_s13 + $0xa8] sm:$0xff]  ;;  %v6171_v51 = vld [vmem:[%s5515_s13 + $0xbf] sm:$0xff] }
 0x2c0   : > { %1892 = vmatmul.mubr.f32.gmra.mrb[18].mxu1 %v5803_v60  ;;  %4678 = vmatprep.subr.bf16.mxu1 %v7201_v13  ;;  %v5977_v60 = vld [vmem:[%s5515_s13 + $0x61] sm:$0xff] }
 0x2c1   : > { %2117 = vmatmul.mubr.f32.gmra.mrb[18].mxu0 %v5917_v34  ;;  %1896 = vmatprep.mubr.f32.mxu1 %v5920_v35  ;;  %7263 = vst [vmem:[#allocation11_spill] sm:$0xff] %v6053_v38 }
 0x2c2   : > { %2121 = vmatprep.mubr.f32.mxu0 %v5923_v11  ;;  %4554 = vmatpush1.bf16.msra.mxu0 %v4553_v36  ;;  %v1731_v36 = vld [vmem:[%s7195_s3 + $0x2e8] sm:$0xff] }
 0x2c3   : > { %4555 = vmatprep.subr.bf16.mxu0 %v7201_v13  ;;  %4694 = vmatpush1.bf16.msra.mxu1 %v5933_v42 }
 0x2c4   : > { %1897 = vmatmul.mubr.f32.gmra.mrb[20].mxu1 %v5833_v9  ;;  %4679 = vmatprep.subr.bf16.mxu1 %v7201_v13  ;;  %v5993_v9 = vpack.c.bf16 %v1757_v59, %v1756_v43  ;;  %v1733_v43 = vld [vmem:[%s7195_s3 + $0x2f8] sm:$0xff]  ;;  %v6083_v59 = vpack.c.bf16 %v1763_v21, %v1762_v40 }
 0x2c5   : > { %2122 = vmatmul.mubr.f32.gmra.mrb[20].mxu0 %v5947_v33  ;;  %1901 = vmatprep.mubr.f32.mxu1 %v5950_v46  ;;  %v6139_v40 = vld [vmem:[%s5515_s13 + $0x91] sm:$0xff] }
 0x2c6   : > { %2126 = vmatprep.mubr.f32.mxu0 %v5953_v49  ;;  %4557 = vmatpush1.bf16.msra.mxu0 %v4556_v63  ;;  %7260 = vst [vmem:[#allocation8_spill] sm:$0xff] %v5993_v9  ;;  %v6070_v63 = vld [vmem:[%s5515_s13 + $0x80] sm:$0xff]  ;;  %7265 = vst [vmem:[#allocation13_spill] sm:$0xff] %v6083_v59  ;;  %v6142_v21 = vld [vmem:[%s5515_s13 + $0x98] sm:$0xff] }
 0x2c7   : > { %4558 = vmatprep.subr.bf16.mxu0 %v7201_v13  ;;  %4695 = vmatpush1.bf16.msra.mxu1 %v5963_v54  ;;  %7269 = vst [vmem:[#allocation17_spill] sm:$0xff] %v6139_v40  ;;  %v6246_v54 = vld [vmem:[%s5515_s13 + $0xd8] sm:$0xff] }
 0x2c8   : > { %1902 = vmatmul.mubr.f32.gmra.mrb[22].mxu1 %v5863_v17  ;;  %4680 = vmatprep.subr.bf16.mxu1 %v7201_v13  ;;  %v6013_v17 = vld [vmem:[%s5515_s13 + $0x87] sm:$0xff]  ;;  %7283 = vst [vmem:[#allocation31_spill] sm:$0xff] %v6246_v54 }
 0x2c9   : > { %2127 = vmatmul.mubr.f32.gmra.mrb[22].mxu0 %v5977_v60  ;;  %1906 = vmatprep.mubr.f32.mxu1 %v5980_v62 }
 0x2ca   : > { %2131 = vmatprep.mubr.f32.mxu0 %v5983_v3  ;;  %4560 = vmatpush1.bf16.msra.mxu0 %v4559_v41  ;;  %v1764_v41 = vld [vmem:[%s7195_s3 + $0x3f0] sm:$0xff] }
 0x2cb   : > { %4561 = vmatprep.subr.bf16.mxu0 %v7201_v13  ;;  %4696 = vmatpush1.bf16.msra.mxu1 %v5993_v9  ;;  %v6113_v25 = vpack.c.bf16 %v1765_v5, %v1764_v41  ;;  %v6158_v41 = vld [vmem:[%s5515_s13 + $0xb7] sm:$0xff]  ;;  %v6165_v5 = vld [vmem:[%s5515_s13 + $0xa1] sm:$0xff] }
 0x2cc   : > { %1907 = vmatmul.mubr.f32.gmra.mrb[24].mxu1 %v5893_v27  ;;  %4681 = vmatprep.subr.bf16.mxu1 %v7201_v13  ;;  %v4565_v27 = vpack.c.bf16 %v1729_v20, %v1728_v19  ;;  %v4571_v19 = vpack.c.bf16 %v1733_v43, %v1732_v50  ;;  %v6109_v20 = vld [vmem:[%s5515_s13 + $0x9f] sm:$0xff]  ;;  %7271 = vst [vmem:[#allocation19_spill] sm:$0xff] %v6165_v5  ;;  %v6233_v9 = vld [vmem:[%s5515_s13 + $0xd0] sm:$0xff] }
 0x2cd   : > { %2132 = vmatmul.mubr.f32.gmra.mrb[24].mxu0 %v6007_v12  ;;  %1911 = vmatprep.mubr.f32.mxu1 %v6010_v14  ;;  %7267 = vst [vmem:[#allocation15_spill] sm:$0xff] %v6113_v25  ;;  %v6152_v50 = vld [vmem:[%s5515_s13 + $0x99] sm:$0xff]  ;;  %7280 = vst [vmem:[#allocation28_spill] sm:$0xff] %v6233_v9 }
 0x2ce   : > { %2136 = vmatprep.mubr.f32.mxu0 %v6013_v17  ;;  %4563 = vmatpush1.bf16.msra.mxu0 %v4562_v57  ;;  %v6106_v57 = vld [vmem:[%s5515_s13 + $0x88] sm:$0xff]  ;;  %7270 = vst [vmem:[#allocation18_spill] sm:$0xff] %v6152_v50  ;;  %v6155_v43 = vld [vmem:[%s5515_s13 + $0xa0] sm:$0xff]  ;;  %v6262_v14 = vld [vmem:[%s5515_s13 + $0xf7] sm:$0xff] }
 0x2cf   : > { %4564 = vmatprep.subr.bf16.mxu0 %v7201_v13  ;;  %4697 = vmatpush1.bf16.msra.mxu1 %v6023_v24  ;;  %v6220_v24 = vld [vmem:[%s5515_s13 + $0xc8] sm:$0xff] }
 0x2d0   : > { %1912 = vmatmul.mubr.f32.gmra.mrb[26].mxu1 %v5923_v11  ;;  %4682 = vmatprep.subr.bf16.mxu1 %v7201_v13  ;;  %v4568_v11 = vpack.c.bf16 %v1731_v36, %v1730_v2  ;;  %v6126_v2 = vld [vmem:[%s5515_s13 + $0x90] sm:$0xff]  ;;  %v6129_v36 = vld [vmem:[%s5515_s13 + $0xa7] sm:$0xff] }
 0x2d1   : > { %2137 = vmatmul.mubr.f32.gmra.mrb[26].mxu0 %v6037_v28  ;;  %1916 = vmatprep.mubr.f32.mxu1 %v6040_v29 }
 0x2d2   : > { %2141 = vmatprep.mubr.f32.mxu0 %v6043_v30  ;;  %4566 = vmatpush1.bf16.msra.mxu0 %v4565_v27  ;;  %v6123_v27 = vld [vmem:[%s5515_s13 + $0x89] sm:$0xff] }
 0x2d3   : > { %4567 = vmatprep.subr.bf16.mxu0 %v7201_v13  ;;  %4698 = vmatpush1.bf16.msra.mxu1 %v6053_v38  ;;  %7268 = vst [vmem:[#allocation16_spill] sm:$0xff] %v6123_v27  ;;  %v6207_v38 = vld [vmem:[%s5515_s13 + $0xc0] sm:$0xff] }
 0x2d4   : > { %1917 = vmatmul.mubr.f32.gmra.mrb[28].mxu1 %v5953_v49  ;;  %4683 = vmatprep.subr.bf16.mxu1 %v7201_v13 }
 0x2d5   : > { %2142 = vmatmul.mubr.f32.gmra.mrb[28].mxu0 %v6067_v44  ;;  %1921 = vmatprep.mubr.f32.mxu1 %v6070_v63  ;;  %v6249_v44 = vld [vmem:[%s5515_s13 + $0xef] sm:$0xff] }
 0x2d6   : > { %2146 = vmatprep.mubr.f32.mxu0 %v6073_v31  ;;  %4569 = vmatpush1.bf16.msra.mxu0 %v4568_v11  ;;  %v6145_v11 = vld [vmem:[%s5515_s13 + $0xaf] sm:$0xff] }
 0x2d7   : > { %4570 = vmatprep.subr.bf16.mxu0 %v7201_v13  ;;  %4699 = vmatpush1.bf16.msra.mxu1 %v6083_v59  ;;  %v6194_v59 = vld [vmem:[%s5515_s13 + $0xb8] sm:$0xff] }
 0x2d8   : > { %1922 = vmatmul.mubr.f32.gmra.mrb[30].mxu1 %v5983_v3  ;;  %4684 = vmatprep.subr.bf16.mxu1 %v7201_v13 }
 0x2d9   : > { %2147 = vmatmul.mubr.f32.gmra.mrb[30].mxu0 %v6103_v10  ;;  %1926 = vmatprep.mubr.f32.mxu1 %v6106_v57  ;;  %v6236_v10 = vld [vmem:[%s5515_s13 + $0xe7] sm:$0xff] }
 0x2da   : > { %2151 = vmatprep.mubr.f32.mxu0 %v6109_v20  ;;  %4572 = vmatpush1.bf16.msra.mxu0 %v4571_v19  ;;  %v6178_v19 = vld [vmem:[%s5515_s13 + $0xa9] sm:$0xff]  ;;  %7281 = vst [vmem:[#allocation29_spill] sm:$0xff] %v6236_v10 }
 0x2db   : > { %4700 = vmatpush1.bf16.msra.mxu1 %v6113_v25  ;;  %4573 = vmatprep.subr.bf16.mxu0 %v7201_v13  ;;  %7272 = vst [vmem:[#allocation20_spill] sm:$0xff] %v6178_v19  ;;  %v6181_v13 = vld [vmem:[%s5515_s13 + $0xb0] sm:$0xff]  ;;  %v6184_v25 = vld [vmem:[%s5515_s13 + $0xc7] sm:$0xff] }
 0x2dc   : > { %1927 = vmatmul.mubr.f32.gmra.mrb[32].mxu1 %v6013_v17  ;;  %4622 = vmatprep.subr.bf16.mxu1 %v6117_v26 }
 0x2dd   : > { %2152 = vmatmul.mubr.f32.gmra.mrb[32].mxu0 %v6123_v27  ;;  %1931 = vmatprep.mubr.f32.mxu1 %v6126_v2  ;;  %v6223_v27 = vld [vmem:[%s5515_s13 + $0xdf] sm:$0xff] }
 0x2de   : > { %2156 = vmatprep.mubr.f32.mxu0 %v6129_v36  ;;  %7278 = vst [vmem:[#allocation26_spill] sm:$0xff] %v6223_v27 }
 0x2e0   : > { %1932 = vmatmul.mubr.f32.gmra.mrb[34].mxu1 %v6043_v30 }
 0x2e1   : > { %2157 = vmatmul.mubr.f32.gmra.mrb[34].mxu0 %v6139_v40  ;;  %1936 = vmatprep.mubr.f32.mxu1 %v6142_v21  ;;  %v6210_v40 = vld [vmem:[%s5515_s13 + $0xd7] sm:$0xff] }
 0x2e2   : > { %2161 = vmatprep.mubr.f32.mxu0 %v6145_v11  ;;  %7276 = vst [vmem:[#allocation24_spill] sm:$0xff] %v6210_v40 }
 0x2e4   : > { %1937 = vmatmul.mubr.f32.gmra.mrb[36].mxu1 %v6073_v31 }
 0x2e5   : > { %2162 = vmatmul.mubr.f32.gmra.mrb[36].mxu0 %v6152_v50  ;;  %1941 = vmatprep.mubr.f32.mxu1 %v6155_v43  ;;  %v6197_v50 = vld [vmem:[%s5515_s13 + $0xcf] sm:$0xff] }
 0x2e6   : > { %2166 = vmatprep.mubr.f32.mxu0 %v6158_v41  ;;  %7274 = vst [vmem:[#allocation22_spill] sm:$0xff] %v6197_v50 }
 0x2e8   : > { %1942 = vmatmul.mubr.f32.gmra.mrb[38].mxu1 %v6109_v20 }
 0x2e9   : > { %2167 = vmatmul.mubr.f32.gmra.mrb[38].mxu0 %v6165_v5  ;;  %1946 = vmatprep.mubr.f32.mxu1 %v6168_v8  ;;  %v6191_v5 = vld [vmem:[%s5515_s13 + $0xb1] sm:$0xff] }
 0x2ea   : > { %2171 = vmatprep.mubr.f32.mxu0 %v6171_v51  ;;  %7273 = vst [vmem:[#allocation21_spill] sm:$0xff] %v6191_v5 }
 0x2ec   : > { %1947 = vmatmul.mubr.f32.gmra.mrb[40].mxu1 %v6129_v36 }
 0x2ed   : > { %2172 = vmatmul.mubr.f32.gmra.mrb[40].mxu0 %v6178_v19  ;;  %1951 = vmatprep.mubr.f32.mxu1 %v6181_v13  ;;  %v6204_v19 = vld [vmem:[%s5515_s13 + $0xb9] sm:$0xff] }
 0x2ee   : > { %2176 = vmatprep.mubr.f32.mxu0 %v6184_v25  ;;  %7275 = vst [vmem:[#allocation23_spill] sm:$0xff] %v6204_v19 }
 0x2f0   : > { %1952 = vmatmul.mubr.f32.gmra.mrb[42].mxu1 %v6145_v11 }
 0x2f1   : > { %2177 = vmatmul.mubr.f32.gmra.mrb[42].mxu0 %v6191_v5  ;;  %1956 = vmatprep.mubr.f32.mxu1 %v6194_v59  ;;  %v6217_v5 = vld [vmem:[%s5515_s13 + $0xc1] sm:$0xff] }
 0x2f2   : > { %2181 = vmatprep.mubr.f32.mxu0 %v6197_v50  ;;  %7277 = vst [vmem:[#allocation25_spill] sm:$0xff] %v6217_v5 }
 0x2f4   : > { %1957 = vmatmul.mubr.f32.gmra.mrb[44].mxu1 %v6158_v41 }
 0x2f5   : > { %2182 = vmatmul.mubr.f32.gmra.mrb[44].mxu0 %v6204_v19  ;;  %1961 = vmatprep.mubr.f32.mxu1 %v6207_v38  ;;  %v6230_v19 = vld [vmem:[%s5515_s13 + $0xc9] sm:$0xff] }
 0x2f6   : > { %2186 = vmatprep.mubr.f32.mxu0 %v6210_v40  ;;  %7279 = vst [vmem:[#allocation27_spill] sm:$0xff] %v6230_v19 }
 0x2f8   : > { %1962 = vmatmul.mubr.f32.gmra.mrb[46].mxu1 %v6171_v51 }
 0x2f9   : > { %2187 = vmatmul.mubr.f32.gmra.mrb[46].mxu0 %v6217_v5  ;;  %1966 = vmatprep.mubr.f32.mxu1 %v6220_v24  ;;  %v6243_v5 = vld [vmem:[%s5515_s13 + $0xd1] sm:$0xff] }
 0x2fa   : > { %2191 = vmatprep.mubr.f32.mxu0 %v6223_v27  ;;  %7282 = vst [vmem:[#allocation30_spill] sm:$0xff] %v6243_v5 }
 0x2fc   : > { %1967 = vmatmul.mubr.f32.gmra.mrb[48].mxu1 %v6184_v25 }
 0x2fd   : > { %2192 = vmatmul.mubr.f32.gmra.mrb[48].mxu0 %v6230_v19  ;;  %1971 = vmatprep.mubr.f32.mxu1 %v6233_v9  ;;  %v6256_v19 = vld [vmem:[%s5515_s13 + $0xd9] sm:$0xff] }
 0x2fe   : > { %2196 = vmatprep.mubr.f32.mxu0 %v6236_v10  ;;  %7284 = vst [vmem:[#allocation32_spill] sm:$0xff] %v6256_v19  ;;  %v6259_v9 = vld [vmem:[%s5515_s13 + $0xe0] sm:$0xff] }
 0x2ff   : > { %7285 = vst [vmem:[#allocation33_spill] sm:$0xff] %v6259_v9 }
 0x300   : > { %1972 = vmatmul.mubr.f32.gmra.mrb[50].mxu1 %v6197_v50  ;;  %v6275_v50 = vld [vmem:[%s5515_s13 + $0xff] sm:$0xff] }
 0x301   : > { %2197 = vmatmul.mubr.f32.gmra.mrb[50].mxu0 %v6243_v5  ;;  %1976 = vmatprep.mubr.f32.mxu1 %v6246_v54  ;;  %v6269_v5 = vld [vmem:[%s5515_s13 + $0xe1] sm:$0xff] }
 0x302   : > { %2201 = vmatprep.mubr.f32.mxu0 %v6249_v44  ;;  %7286 = vst [vmem:[#allocation34_spill] sm:$0xff] %v6269_v5  ;;  %v6272_v54 = vld [vmem:[%s5515_s13 + $0xe8] sm:$0xff] }
 0x303   : > { %7287 = vst [vmem:[#allocation35_spill] sm:$0xff] %v6272_v54 }
 0x304   : > { %1977 = vmatmul.mubr.f32.gmra.mrb[52].mxu1 %v6210_v40  ;;  %v6288_v40 = vld [vmem:[%s5515_s13 + $0x107] sm:$0xff] }
 0x305   : > { %2202 = vmatmul.mubr.f32.gmra.mrb[52].mxu0 %v6256_v19  ;;  %1981 = vmatprep.mubr.f32.mxu1 %v6259_v9  ;;  %v6282_v19 = vld [vmem:[%s5515_s13 + $0xe9] sm:$0xff]  ;;  %7290 = vst [vmem:[#allocation38_spill] sm:$0xff] %v6288_v40 }
 0x306   : > { %2206 = vmatprep.mubr.f32.mxu0 %v6262_v14  ;;  %7288 = vst [vmem:[#allocation36_spill] sm:$0xff] %v6282_v19  ;;  %v6285_v9 = vld [vmem:[%s5515_s13 + $0xf0] sm:$0xff] }
 0x307   : > { %7289 = vst [vmem:[#allocation37_spill] sm:$0xff] %v6285_v9 }
 0x308   : > { %1982 = vmatmul.mubr.f32.gmra.mrb[54].mxu1 %v6223_v27  ;;  %v6301_v27 = vld [vmem:[%s5515_s13 + $0x10f] sm:$0xff] }
 0x309   : > { %2207 = vmatmul.mubr.f32.gmra.mrb[54].mxu0 %v6269_v5  ;;  %1986 = vmatprep.mubr.f32.mxu1 %v6272_v54  ;;  %v6295_v5 = vld [vmem:[%s5515_s13 + $0xf1] sm:$0xff]  ;;  %7292 = vst [vmem:[#allocation40_spill] sm:$0xff] %v6301_v27 }
 0x30a   : > { %2211 = vmatprep.mubr.f32.mxu0 %v6275_v50  ;;  %7291 = vst [vmem:[#allocation39_spill] sm:$0xff] %v6295_v5  ;;  %v6298_v54 = vld [vmem:[%s5515_s13 + $0xf8] sm:$0xff] }
 0x30c   : > { %1987 = vmatmul.mubr.f32.gmra.mrb[56].mxu1 %v6236_v10  ;;  %v6314_v10 = vld [vmem:[%s5515_s13 + $0x117] sm:$0xff] }
 0x30d   : > { %2212 = vmatmul.mubr.f32.gmra.mrb[56].mxu0 %v6282_v19  ;;  %1991 = vmatprep.mubr.f32.mxu1 %v6285_v9  ;;  %v6308_v19 = vld [vmem:[%s5515_s13 + $0xf9] sm:$0xff]  ;;  %7294 = vst [vmem:[#allocation42_spill] sm:$0xff] %v6314_v10 }
 0x30e   : > { %2216 = vmatprep.mubr.f32.mxu0 %v6288_v40  ;;  %7293 = vst [vmem:[#allocation41_spill] sm:$0xff] %v6308_v19  ;;  %v6311_v9 = vld [vmem:[%s5515_s13 + $0x100] sm:$0xff] }
 0x30f   : > { %v6321_v40 = vld [vmem:[%s5515_s13 + $0x101] sm:$0xff] }
 0x310   : > { %1992 = vmatmul.mubr.f32.gmra.mrb[58].mxu1 %v6249_v44  ;;  %7295 = vst [vmem:[#allocation43_spill] sm:$0xff] %v6321_v40 }
 0x311   : > { %2217 = vmatmul.mubr.f32.gmra.mrb[58].mxu0 %v6295_v5  ;;  %1996 = vmatprep.mubr.f32.mxu1 %v6298_v54  ;;  %v1768_v5 = vld [vmem:[%s7195_s3 + $0x410] sm:$0xff] }
 0x312   : > { %2221 = vmatprep.mubr.f32.mxu0 %v6301_v27  ;;  %v1771_v27 = vld [vmem:[%s7195_s3 + $0x428] sm:$0xff] }
 0x314   : > { %1997 = vmatmul.mubr.f32.gmra.mrb[60].mxu1 %v6262_v14 }
 0x315   : > { %2222 = vmatmul.mubr.f32.gmra.mrb[60].mxu0 %v6308_v19  ;;  %2001 = vmatprep.mubr.f32.mxu1 %v6311_v9  ;;  %v1769_v19 = vld [vmem:[%s7195_s3 + $0x418] sm:$0xff] }
 0x316   : > { %2226 = vmatprep.mubr.f32.mxu0 %v6314_v10  ;;  %v4625_v10 = vpack.c.bf16 %v1769_v19, %v1768_v5  ;;  %v7314_v5 = vld [vmem:[#allocation37_spill] sm:$0xff] }
 0x317   : > { %v7316_v19 = vld [vmem:[#allocation13_spill] sm:$0xff] }
 0x318   : > { %2002 = vmatmul.mubr.f32.gmra.mrb[62].mxu1 %v6275_v50 }
 0x319   : > { %2227 = vmatmul.mubr.f32.gmra.mrb[62].mxu0 %v6321_v40  ;;  %2561 = vmatprep.mubr.f32.mxu1 %v6040_v29  ;;  %v1770_v40 = vld [vmem:[%s7195_s3 + $0x420] sm:$0xff] }
 0x31a   : > { %2296 = vmatprep.mubr.f32.mxu0 %v5737_v39  ;;  %v7296_v39 = vmov 0.0|0.0  }
 0x31c   : > { %2562 = vmatmul.mubr.f32.vlgmr.msra.gmra.mrb[64].mxu1 %v5953_v49  ;;  %v1772_v49 = vld [vmem:[%s7195_s3 + $0x430] sm:$0xff] }
 0x31d   : > { %2297 = vmatmul.mubr.f32.vlgmr.msra.gmra.mrb[0].mxu0 %v5712_v32  ;;  %2566 = vmatprep.mubr.f32.mxu1 %v6070_v63  ;;  %v4629_v32 = vpack.c.bf16 %v1771_v27, %v1770_v40  ;;  %v7310_v27 = vld [vmem:[#allocation35_spill] sm:$0xff] }
 0x31e   : > { %4575 = vmatpush1.bf16.msra.mxu0 %v5676_v18  ;;  %2301 = vmatprep.mubr.f32.mxu0 %v5767_v47  ;;  %v1773_v18 = vld [vmem:[%s7195_s3 + $0x438] sm:$0xff]  ;;  %v1774_v47 = vld [vmem:[%s7195_s3 + $0x440] sm:$0xff]  ;;  %v7312_v40 = vld [vmem:[#allocation11_spill] sm:$0xff] }
 0x31f   : > { %4576 = vmatprep.subr.bf16.mxu0 %v7296_v39  ;;  %4624 = vmatpush3.bf16.msra.mxu1 %v6117_v26  ;;  %v2916_v26 = vld [vmem:[%s5031_s24 + $0x48] sm:$0xff] }
 0x320   : > { %2567 = vmatmul.mubr.f32.gmra.mrb[66].mxu1 %v5983_v3  ;;  %4626 = vmatprep.subr.bf16.mxu1 %v4625_v10  ;;  %v2913_v3 = vld [vmem:[%s5031_s24 + $0x30] sm:$0xff] }
 0x321   : > { %2302 = vmatmul.mubr.f32.gmra.mrb[2].mxu0 %v5740_v23  ;;  %2571 = vmatprep.mubr.f32.mxu1 %v6106_v57  ;;  %v4633_v23 = vpack.c.bf16 %v1773_v18, %v1772_v49  ;;  %v7317_v49 = vld [vmem:[#allocation19_spill] sm:$0xff] }
 0x322   : > { %2306 = vmatprep.mubr.f32.mxu0 %v5797_v55  ;;  %4578 = vmatpush1.bf16.msra.mxu0 %v5699_v58  ;;  %v1775_v55 = vld [vmem:[%s7195_s3 + $0x448] sm:$0xff]  ;;  %v7318_v18 = vld [vmem:[#allocation15_spill] sm:$0xff] }
 0x323   : > { %4579 = vmatprep.subr.bf16.mxu0 %v7296_v39  ;;  %4628 = vmatpush3.bf16.msra.mxu1 %v4625_v10  ;;  %v4637_v58 = vpack.c.bf16 %v1775_v55, %v1774_v47  ;;  %v7307_v10 = vld [vmem:[#allocation16_spill] sm:$0xff]  ;;  %v7320_v47 = vld [vmem:[#allocation21_spill] sm:$0xff]  ;;  %v6496_v55 = vld [vmem:[%s5515_s13 + $0x110] sm:$0xff] }
 0x324   : > { %2572 = vmatmul.mubr.f32.gmra.mrb[68].mxu1 %v6013_v17  ;;  %4630 = vmatprep.subr.bf16.mxu1 %v4629_v32  ;;  %v7304_v17 = vld [vmem:[#allocation8_spill] sm:$0xff] }
 0x325   : > { %2307 = vmatmul.mubr.f32.gmra.mrb[4].mxu0 %v5770_v48  ;;  %2576 = vmatprep.mubr.f32.mxu1 %v6126_v2  ;;  %v1776_v48 = vld [vmem:[%s7195_s3 + $0x450] sm:$0xff] }
 0x326   : > { %2311 = vmatprep.mubr.f32.mxu0 %v5827_v6  ;;  %4581 = vmatpush1.bf16.msra.mxu0 %v5725_v37  ;;  %v1777_v6 = vld [vmem:[%s7195_s3 + $0x458] sm:$0xff] }
 0x327   : > { %4582 = vmatprep.subr.bf16.mxu0 %v7296_v39  ;;  %4632 = vmatpush3.bf16.msra.mxu1 %v4629_v32  ;;  %v4641_v37 = vpack.c.bf16 %v1777_v6, %v1776_v48  ;;  %v2920_v32 = vld [vmem:[%s5031_s24 + $0x68] sm:$0xff]  ;;  %v7322_v48 = vld [vmem:[#allocation23_spill] sm:$0xff]  ;;  %v6505_v6 = vld [vmem:[%s5515_s13 + $0x118] sm:$0xff] }
 0x328   : > { %2577 = vmatmul.mubr.f32.gmra.mrb[70].mxu1 %v6043_v30  ;;  %4634 = vmatprep.subr.bf16.mxu1 %v4633_v23  ;;  %v2914_v30 = vld [vmem:[%s5031_s24 + $0x38] sm:$0xff] }
 0x329   : > { %2312 = vmatmul.mubr.f32.gmra.mrb[6].mxu0 %v5800_v56  ;;  %2581 = vmatprep.mubr.f32.mxu1 %v6142_v21  ;;  %v1778_v56 = vld [vmem:[%s7195_s3 + $0x460] sm:$0xff] }
 0x32a   : > { %2316 = vmatprep.mubr.f32.mxu0 %v5857_v15  ;;  %4584 = vmatpush1.bf16.msra.mxu0 %v5753_v45  ;;  %v1779_v15 = vld [vmem:[%s7195_s3 + $0x468] sm:$0xff] }
 0x32b   : > { %4585 = vmatprep.subr.bf16.mxu0 %v7296_v39  ;;  %4636 = vmatpush3.bf16.msra.mxu1 %v4633_v23  ;;  %v4645_v45 = vpack.c.bf16 %v1779_v15, %v1778_v56  ;;  %v6487_v23 = vld [vmem:[%s5515_s13 + $0x108] sm:$0xff]  ;;  %v7324_v15 = vld [vmem:[#allocation25_spill] sm:$0xff] }
 0x32c   : > { %2582 = vmatmul.mubr.f32.gmra.mrb[72].mxu1 %v6073_v31  ;;  %4638 = vmatprep.subr.bf16.mxu1 %v4637_v58  ;;  %v7306_v31 = vld [vmem:[#allocation33_spill] sm:$0xff]  ;;  %v2928_v56 = vld [vmem:[%s5031_s24 + $0xa8] sm:$0xff] }
 0x32d   : > { %2317 = vmatmul.mubr.f32.gmra.mrb[8].mxu0 %v5830_v7  ;;  %2586 = vmatprep.mubr.f32.mxu1 %v6155_v43  ;;  %v1780_v7 = vld [vmem:[%s7195_s3 + $0x470] sm:$0xff] }
 0x32e   : > { %2321 = vmatprep.mubr.f32.mxu0 %v5887_v53  ;;  %4587 = vmatpush1.bf16.msra.mxu0 %v5783_v52  ;;  %v1781_v53 = vld [vmem:[%s7195_s3 + $0x478] sm:$0xff] }
 0x32f   : > { %4588 = vmatprep.subr.bf16.mxu0 %v7296_v39  ;;  %4640 = vmatpush3.bf16.msra.mxu1 %v4637_v58  ;;  %v4649_v52 = vpack.c.bf16 %v1781_v53, %v1780_v7  ;;  %v7321_v58 = vld [vmem:[#allocation38_spill] sm:$0xff]  ;;  %v2930_v53 = vld [vmem:[%s5031_s24 + $0xb8] sm:$0xff] }
 0x330   : > { %2587 = vmatmul.mubr.f32.gmra.mrb[74].mxu1 %v6109_v20  ;;  %4642 = vmatprep.subr.bf16.mxu1 %v4641_v37  ;;  %v7308_v20 = vld [vmem:[#allocation10_spill] sm:$0xff] }
 0x331   : > { %2322 = vmatmul.mubr.f32.gmra.mrb[10].mxu0 %v5860_v16  ;;  %2591 = vmatprep.mubr.f32.mxu1 %v6168_v8  ;;  %v2909_v16 = vld [vmem:[%s5031_s24 + $0x10] sm:$0xff]  ;;  %v7325_v7 = vld [vmem:[#allocation42_spill] sm:$0xff] }
 0x332   : > { %2326 = vmatprep.mubr.f32.mxu0 %v5917_v34  ;;  %4590 = vmatpush1.bf16.msra.mxu0 %v5813_v0  ;;  %v4932_v0 = vmov 0   ;;  %v7298_v34 = vld [vmem:[#allocation28_spill] sm:$0xff] }
 0x333   : > { %4591 = vmatprep.subr.bf16.mxu0 %v7296_v39  ;;  %4644 = vmatpush3.bf16.msra.mxu1 %v4641_v37  ;;  %v7323_v37 = vld [vmem:[#allocation40_spill] sm:$0xff] }
 0x334   : > { %2592 = vmatmul.mubr.f32.gmra.mrb[76].mxu1 %v6129_v36  ;;  %4646 = vmatprep.subr.bf16.mxu1 %v4645_v45  ;;  %v7311_v36 = vld [vmem:[#allocation17_spill] sm:$0xff] }
 0x335   : > { %2327 = vmatmul.mubr.f32.gmra.mrb[12].mxu0 %v5890_v61  ;;  %2596 = vmatprep.mubr.f32.mxu1 %v6181_v13  ;;  %v2910_v61 = vld [vmem:[%s5031_s24 + $0x18] sm:$0xff] }
 0x336   : > { %2331 = vmatprep.mubr.f32.mxu0 %v5947_v33  ;;  %4593 = vmatpush1.bf16.msra.mxu0 %v5843_v1  ;;  %v2907_v1 = vld [vmem:[%s5031_s24] sm:$0xff]  ;;  %v7299_v33 = vld [vmem:[#allocation12_spill] sm:$0xff] }
 0x337   : > { %4594 = vmatprep.subr.bf16.mxu0 %v7296_v39  ;;  %4648 = vmatpush3.bf16.msra.mxu1 %v4645_v45  ;;  %v4099_v45 = vld [vmem:[%s5515_s13 + $0x120] sm:$0xff] }
 0x338   : > { %2597 = vmatmul.mubr.f32.gmra.mrb[78].mxu1 %v6145_v11  ;;  %4650 = vmatprep.subr.bf16.mxu1 %v4649_v52  ;;  %v7313_v11 = vld [vmem:[#allocation29_spill] sm:$0xff] }
 0x339   : > { %2332 = vmatmul.mubr.f32.gmra.mrb[14].mxu0 %v5920_v35  ;;  %2601 = vmatprep.mubr.f32.mxu1 %v6194_v59  ;;  %v2911_v35 = vld [vmem:[%s5031_s24 + $0x20] sm:$0xff] }
 0x33a   : > { %2336 = vmatprep.mubr.f32.mxu0 %v5977_v60  ;;  %4596 = vmatpush1.bf16.msra.mxu0 %v5873_v22  ;;  %v2908_v22 = vld [vmem:[%s5031_s24 + $0x8] sm:$0xff] }
 0x33b   : > { %4597 = vmatprep.subr.bf16.mxu0 %v7296_v39  ;;  %4652 = vmatpush3.bf16.msra.mxu1 %v4649_v52  ;;  %v2912_v60 = vld [vmem:[%s5031_s24 + $0x28] sm:$0xff]  ;;  %v4066_v52 = vld [vmem:[%s5515_s13 + $0x11f] sm:$0xff] }
 0x33c   : > { %2602 = vmatmul.mubr.f32.gmra.mrb[80].mxu1 %v6158_v41  ;;  %4885 = vset.pattern.permute.xlu0 %v4932_v0  ;;  %v2918_v41 = vld [vmem:[%s5031_s24 + $0x58] sm:$0xff] }
 0x33d   : > { %2337 = vmatmul.mubr.f32.gmra.mrb[16].mxu0 %v5950_v46  ;;  %2606 = vmatprep.mubr.f32.mxu1 %v6207_v38  ;;  %v7300_v46 = vld [vmem:[#allocation7_spill] sm:$0xff] }
 0x33e   : > { %2341 = vmatprep.mubr.f32.mxu0 %v6007_v12  ;;  %4599 = vmatpush1.bf16.msra.mxu0 %v5903_v4  ;;  %v7297_v4 = vld [vmem:[#allocation9_spill] sm:$0xff]  ;;  %v7303_v12 = vld [vmem:[#allocation14_spill] sm:$0xff] }
 0x33f   : > { %4600 = vmatprep.subr.bf16.mxu0 %v7296_v39  ;;  %2941 = vperm.xlu0 %4885, %v2907_v1   ;;  %v4100_v1 = vld [vmem:[%s5515_s13 + $0x128] sm:$0xff] }
 0x340   : > { %2607 = vmatmul.mubr.f32.gmra.mrb[82].mxu1 %v6171_v51  ;;  %4886 = vset.pattern.permute.xlu1 %v4932_v0  ;;  %v7315_v51 = vld [vmem:[#allocation18_spill] sm:$0xff]  ;;  %v7326_v0 = vld [vmem:[#allocation27_spill] sm:$0xff] }
 0x341   : > { %2342 = vmatmul.mubr.f32.gmra.mrb[18].mxu0 %v5980_v62  ;;  %2611 = vmatprep.mubr.f32.mxu1 %v6220_v24  ;;  %v7302_v62 = vld [vmem:[#allocation31_spill] sm:$0xff] }
 0x342   : > { %2346 = vmatprep.mubr.f32.mxu0 %v6037_v28  ;;  %4602 = vmatpush1.bf16.msra.mxu0 %v5933_v42  ;;  %v7301_v42 = vld [vmem:[#allocation22_spill] sm:$0xff]  ;;  %v7305_v28 = vld [vmem:[#allocation24_spill] sm:$0xff] }
 0x343   : > { %4603 = vmatprep.subr.bf16.mxu0 %v7296_v39  ;;  %2951 = vperm.xlu1 %4886, %v2909_v16  }
 0x344   : > { %2612 = vmatmul.mubr.f32.gmra.mrb[84].mxu1 %v6184_v25  ;;  %2946 = vperm.xlu0 %4885, %v2908_v22   ;;  %v7309_v25 = vld [vmem:[#allocation26_spill] sm:$0xff] }
 0x345   : > { %2347 = vmatmul.mubr.f32.gmra.mrb[20].mxu0 %v7297_v4  ;;  %2616 = vmatprep.mubr.f32.mxu1 %v7298_v34  ;;  %v2933_v4 = vld [vmem:[%s5031_s24 + $0xd0] sm:$0xff] }
 0x346   : > { %2351 = vmatprep.mubr.f32.mxu0 %v7299_v33  ;;  %4605 = vmatpush1.bf16.msra.mxu0 %v7300_v46  ;;  %v4101_v33 = vld [vmem:[%s5515_s13 + $0x130] sm:$0xff] }
 0x347   : > { %4606 = vmatprep.subr.bf16.mxu0 %v7296_v39  ;;  %2956 = vperm.xlu1 %4886, %v2910_v61   ;;  %v2932_v61 = vld [vmem:[%s5031_s24 + $0xc8] sm:$0xff] }
 0x348   : > { %2617 = vmatmul.mubr.f32.gmra.mrb[86].mxu1 %v7301_v42  ;;  %2961 = vperm.xlu0 %4885, %v2911_v35   ;;  %v7327_v35 = vld [vmem:[#allocation30_spill] sm:$0xff] }
 0x349   : > { %2352 = vmatmul.mubr.f32.gmra.mrb[22].mxu0 %v6040_v29  ;;  %2621 = vmatprep.mubr.f32.mxu1 %v7302_v62  ;;  %v2915_v29 = vld [vmem:[%s5031_s24 + $0x40] sm:$0xff] }
 0x34a   : > { %2356 = vmatprep.mubr.f32.mxu0 %v7303_v12  ;;  %4608 = vmatpush1.bf16.msra.mxu0 %v7304_v17  ;;  %v7328_v12 = vld [vmem:[#allocation32_spill] sm:$0xff] }
 0x34b   : > { %4609 = vmatprep.subr.bf16.mxu0 %v7296_v39  ;;  %2966 = vperm.xlu1 %4886, %v2912_v60   ;;  %v2934_v60 = vld [vmem:[%s5031_s24 + $0xd8] sm:$0xff] }
 0x34c   : > { %2622 = vmatmul.mubr.f32.gmra.mrb[88].mxu1 %v7305_v28  ;;  %2971 = vperm.xlu0 %4885, %v2913_v3   ;;  %v2935_v3 = vld [vmem:[%s5031_s24 + $0xe0] sm:$0xff] }
 0x34d   : > { %2357 = vmatmul.mubr.f32.gmra.mrb[24].mxu0 %v6070_v63  ;;  %2626 = vmatprep.mubr.f32.mxu1 %v7306_v31  ;;  %v2917_v63 = vld [vmem:[%s5031_s24 + $0x50] sm:$0xff]  ;;  %v4103_v17 = vld [vmem:[%s5515_s13 + $0x39] sm:$0xff] }
 0x34e   : > { %2361 = vmatprep.mubr.f32.mxu0 %v7307_v10  ;;  %4611 = vmatpush1.bf16.msra.mxu0 %v7308_v20  ;;  %v2937_v10 = vld [vmem:[%s5031_s24 + $0xf0] sm:$0xff]  ;;  %v7329_v20 = vld [vmem:[#allocation34_spill] sm:$0xff] }
 0x34f   : > { %4612 = vmatprep.subr.bf16.mxu0 %v7296_v39  ;;  %2976 = vperm.xlu1 %4886, %v2914_v30  }
 0x350   : > { %2627 = vmatmul.mubr.f32.gmra.mrb[90].mxu1 %v7309_v25  ;;  %2981 = vperm.xlu0 %4885, %v2915_v29   ;;  %v2936_v29 = vld [vmem:[%s5031_s24 + $0xe8] sm:$0xff] }
 0x351   : > { %2362 = vmatmul.mubr.f32.gmra.mrb[26].mxu0 %v6106_v57  ;;  %2631 = vmatprep.mubr.f32.mxu1 %v7310_v27  ;;  %v2919_v57 = vld [vmem:[%s5031_s24 + $0x60] sm:$0xff]  ;;  %v4105_v25 = vld [vmem:[%s5515_s13 + $0x49] sm:$0xff] }
 0x352   : > { %2366 = vmatprep.mubr.f32.mxu0 %v7311_v36  ;;  %4614 = vmatpush1.bf16.msra.mxu0 %v7312_v40  ;;  %v2938_v36 = vld [vmem:[%s5031_s24 + $0xf8] sm:$0xff] }
 0x353   : > { %4615 = vmatprep.subr.bf16.mxu0 %v7296_v39  ;;  %2986 = vperm.xlu1 %4886, %v2916_v26   ;;  %v7330_v40 = vld [vmem:[#allocation36_spill] sm:$0xff] }
 0x354   : > { %2632 = vmatmul.mubr.f32.gmra.mrb[92].mxu1 %v7313_v11  ;;  %2991 = vperm.xlu0 %4885, %v2917_v63   ;;  %v4107_v11 = vld [vmem:[%s5515_s13 + $0x59] sm:$0xff] }
 0x355   : > { %2367 = vmatmul.mubr.f32.gmra.mrb[28].mxu0 %v6126_v2  ;;  %2636 = vmatprep.mubr.f32.mxu1 %v7314_v5  ;;  %v2921_v2 = vld [vmem:[%s5031_s24 + $0x70] sm:$0xff] }
 0x356   : > { %2371 = vmatprep.mubr.f32.mxu0 %v7315_v51  ;;  %4617 = vmatpush1.bf16.msra.mxu0 %v7316_v19  ;;  %v4108_v51 = vld [vmem:[%s5515_s13 + $0x61] sm:$0xff]  ;;  %v7331_v19 = vld [vmem:[#allocation39_spill] sm:$0xff] }
 0x357   : > { %4618 = vmatprep.subr.bf16.mxu0 %v7296_v39  ;;  %2996 = vperm.xlu1 %4886, %v2918_v41   ;;  %v7319_v39 = vld [vmem:[#allocation20_spill] sm:$0xff] }
 0x358   : > { %2637 = vmatmul.mubr.f32.gmra.mrb[94].mxu1 %v6249_v44  ;;  %3001 = vperm.xlu0 %4885, %v2919_v57   ;;  %v2922_v44 = vld [vmem:[%s5031_s24 + $0x78] sm:$0xff] }
 0x359   : > { %2372 = vmatmul.mubr.f32.gmra.mrb[30].mxu0 %v6142_v21  ;;  %2641 = vmatprep.mubr.f32.mxu1 %v6298_v54  ;;  %v2923_v21 = vld [vmem:[%s5031_s24 + $0x80] sm:$0xff] }
 0x35a   : > { %2376 = vmatprep.mubr.f32.mxu0 %v7317_v49  ;;  %4620 = vmatpush1.bf16.msra.mxu0 %v7318_v18  ;;  %v4110_v18 = vld [vmem:[%s5515_s13 + $0x71] sm:$0xff] }
 0x35b   : > { %3006 = vperm.xlu1 %4886, %v2920_v32  }
 0x35c   : > { %2642 = vmatmul.mubr.f32.gmra.mrb[96].mxu1 %v6262_v14  ;;  %3011 = vperm.xlu0 %4885, %v2921_v2   ;;  %v2924_v14 = vld [vmem:[%s5031_s24 + $0x88] sm:$0xff] }
 0x35d   : > { %2377 = vmatmul.mubr.f32.gmra.mrb[32].mxu0 %v6155_v43  ;;  %2646 = vmatprep.mubr.f32.mxu1 %v6311_v9  ;;  %v2925_v43 = vld [vmem:[%s5031_s24 + $0x90] sm:$0xff] }
 0x35e   : > { %2381 = vmatprep.mubr.f32.mxu0 %v7319_v39 }
 0x35f   : > { %3016 = vperm.xlu1 %4886, %v2922_v44   ;;  %v7332_v44 = vld [vmem:[#allocation41_spill] sm:$0xff] }
 0x360   : > { %2647 = vmatmul.mubr.f32.gmra.mrb[98].mxu1 %v6275_v50  ;;  %3021 = vperm.xlu0 %4885, %v2923_v21   ;;  %v2926_v50 = vld [vmem:[%s5031_s24 + $0x98] sm:$0xff] }
 0x361   : > { %2382 = vmatmul.mubr.f32.gmra.mrb[34].mxu0 %v6168_v8  ;;  %2651 = vmatprep.mubr.f32.mxu1 %v6487_v23  ;;  %v2927_v8 = vld [vmem:[%s5031_s24 + $0xa0] sm:$0xff] }
 0x362   : > { %2386 = vmatprep.mubr.f32.mxu0 %v7320_v47 }
 0x363   : > { %3026 = vperm.xlu1 %4886, %v2924_v14  }
 0x364   : > { %2652 = vmatmul.mubr.f32.gmra.mrb[100].mxu1 %v7321_v58  ;;  %3031 = vperm.xlu0 %4885, %v2925_v43   ;;  %v4112_v43 = vld [vmem:[%s5515_s13 + $0x81] sm:$0xff]  ;;  %v7333_v58 = vld [vmem:[#allocation43_spill] sm:$0xff] }
 0x365   : > { %2387 = vmatmul.mubr.f32.gmra.mrb[36].mxu0 %v6181_v13  ;;  %2656 = vmatprep.mubr.f32.mxu1 %v6496_v55  ;;  %v2929_v13 = vld [vmem:[%s5031_s24 + $0xb0] sm:$0xff] }
 0x366   : > { %2391 = vmatprep.mubr.f32.mxu0 %v7322_v48 }
 0x367   : > { %3036 = vperm.xlu1 %4886, %v2926_v50   ;;  %v4113_v50 = vld [vmem:[%s5515_s13 + $0x89] sm:$0xff] }
 0x368   : > { %2657 = vmatmul.mubr.f32.gmra.mrb[102].mxu1 %v7323_v37  ;;  %3041 = vperm.xlu0 %4885, %v2927_v8  }
 0x369   : > { %2392 = vmatmul.mubr.f32.gmra.mrb[38].mxu0 %v6194_v59  ;;  %2661 = vmatprep.mubr.f32.mxu1 %v6505_v6  ;;  %v2931_v59 = vld [vmem:[%s5031_s24 + $0xc0] sm:$0xff]  ;;  %s6761_s24 = scalar_lea.vmem [#allocation3], %s5015_s12 }
 0x36a   : > { %2396 = vmatprep.mubr.f32.mxu0 %v7324_v15 }
 0x36b   : > { %3046 = vperm.xlu1 %4886, %v2928_v56   ;;  %v4114_v56 = vld [vmem:[%s5515_s13 + $0x91] sm:$0xff] }
 0x36c   : > { %2662 = vmatmul.mubr.f32.gmra.mrb[104].mxu1 %v7325_v7  ;;  %3051 = vperm.xlu0 %4885, %v2929_v13   ;;  %v6580_v13 = vld [vmem:[%s5515_s13 + $0x111] sm:$0xff] }
 0x36d   : > { %2397 = vmatmul.mubr.f32.gmra.mrb[40].mxu0 %v6207_v38  ;;  %2666 = vmatprep.mubr.f32.mxu1 %v4099_v45  ;;  %v4067_v38 = vld [vmem:[%s5515_s13 + $0x127] sm:$0xff] }
 0x36e   : > { %2401 = vmatprep.mubr.f32.mxu0 %v7326_v0 }
 0x36f   : > { %v6521_v16 = vpop.f32.mrb[0].mxu1  ;;  %3056 = vperm.xlu1 %4886, %v2930_v53  }
 0x370   : > { %2667 = vmatmul.mubr.f32.gmra.mrb[106].mxu1 %v4066_v52  ;;  %v1850_v22 = vpop.f32.mrb[1].mxu1  ;;  %3061 = vperm.xlu0 %4885, %v2931_v59   ;;  %v4070_v59 = vld [vmem:[%s5515_s13 + $0x38] sm:$0xff] }
 0x371   : > { %2402 = vmatmul.mubr.f32.gmra.mrb[42].mxu0 %v6220_v24  ;;  %2671 = vmatprep.mubr.f32.mxu1 %v4100_v1  ;;  %v4068_v24 = vld [vmem:[%s5515_s13 + $0x12f] sm:$0xff]  ;;  %v4071_v22 = vld [vmem:[%s5515_s13 + $0x40] sm:$0xff] }
 0x372   : > { %2406 = vmatprep.mubr.f32.mxu0 %v7327_v35 }
 0x373   : > { %v6529_v46 = vpop.f32.mrb[2].mxu1  ;;  %3066 = vperm.xlu1 %4886, %v2932_v61   ;;  %v4072_v61 = vld [vmem:[%s5515_s13 + $0x48] sm:$0xff] }
 0x374   : > { %2672 = vmatmul.mubr.f32.gmra.mrb[108].mxu1 %v4067_v38  ;;  %v1855_v42 = vpop.f32.mrb[3].mxu1  ;;  %3071 = vperm.xlu0 %4885, %v2933_v4   ;;  %v4039_v38 = vld [vmem:[%s5515_s13 + $0x47] sm:$0xff] }
 0x375   : > { %2407 = vmatmul.mubr.f32.gmra.mrb[44].mxu0 %v7298_v34  ;;  %2676 = vmatprep.mubr.f32.mxu1 %v4101_v33  ;;  %v4104_v34 = vld [vmem:[%s5515_s13 + $0x41] sm:$0xff]  ;;  %v4040_v33 = vld [vmem:[%s5515_s13 + $0x4f] sm:$0xff] }
 0x376   : > { %2411 = vmatprep.mubr.f32.mxu0 %v7328_v12 }
 0x377   : > { %v6537_v28 = vpop.f32.mrb[4].mxu1  ;;  %3076 = vperm.xlu1 %4886, %v2934_v60  }
 0x378   : > { %2677 = vmatmul.mubr.f32.gmra.mrb[110].mxu1 %v4068_v24  ;;  %v1860_v30 = vpop.f32.mrb[5].mxu1  ;;  %3081 = vperm.xlu0 %4885, %v2935_v3   ;;  %v4041_v24 = vld [vmem:[%s5515_s13 + $0x57] sm:$0xff]  ;;  %v4075_v3 = vld [vmem:[%s5515_s13 + $0x60] sm:$0xff] }
 0x379   : > { %2412 = vmatmul.mubr.f32.gmra.mrb[46].mxu0 %v7302_v62  ;;  %4349 = vmatprep.mubr.f32.mxu1 %v4103_v17  ;;  %v4106_v62 = vld [vmem:[%s5515_s13 + $0x51] sm:$0xff]  ;;  %v4042_v30 = vld [vmem:[%s5515_s13 + $0x5f] sm:$0xff] }
 0x37a   : > { %2416 = vmatprep.mubr.f32.mxu0 %v7329_v20 }
 0x37b   : > { %v6545_v26 = vpop.f32.mrb[6].mxu1  ;;  %3086 = vperm.xlu1 %4886, %v2936_v29   ;;  %v4076_v29 = vld [vmem:[%s5515_s13 + $0x68] sm:$0xff] }
 0x37c   : > { %4350 = vmatmul.mubr.f32.vlgmr.msra.gmra.mrb[112].mxu1 %v4104_v34  ;;  %v1865_v63 = vpop.f32.mrb[7].mxu1  ;;  %3091 = vperm.xlu0 %4885, %v2937_v10  }
 0x37d   : > { %2417 = vmatmul.mubr.f32.gmra.mrb[48].mxu0 %v7306_v31  ;;  %4352 = vmatprep.mubr.f32.mxu1 %v4105_v25  ;;  %v4109_v31 = vld [vmem:[%s5515_s13 + $0x69] sm:$0xff] }
 0x37e   : > { %2421 = vmatprep.mubr.f32.mxu0 %v7330_v40  ;;  %v4043_v25 = vld [vmem:[%s5515_s13 + $0x67] sm:$0xff] }
 0x37f   : > { %v6552_v41 = vpop.f32.mrb[8].mxu1  ;;  %3096 = vperm.xlu1 %4886, %v2938_v36   ;;  %v4133_v63 = vld [vmem:[%s5515_s13 + $0x129] sm:$0xff] }
 0x380   : > { %4353 = vmatmul.mubr.f32.gmra.mrb[114].mxu1 %v4106_v62  ;;  %v1870_v57 = vpop.f32.mrb[9].mxu1  ;;  %v4077_v36 = vld [vmem:[%s5515_s13 + $0x70] sm:$0xff] }
 0x381   : > { %2422 = vmatmul.mubr.f32.gmra.mrb[50].mxu0 %v7310_v27  ;;  %4355 = vmatprep.mubr.f32.mxu1 %v4107_v11  ;;  %v4111_v27 = vld [vmem:[%s5515_s13 + $0x79] sm:$0xff]  ;;  %v4134_v11 = vld [vmem:[%s5515_s13 + $0x131] sm:$0xff] }
 0x382   : > { %2426 = vmatprep.mubr.f32.mxu0 %v7331_v19  ;;  %v4044_v57 = vld [vmem:[%s5515_s13 + $0x6f] sm:$0xff] }
 0x383   : > { %v6558_v32 = vpop.f32.mrb[10].mxu1 }
 0x384   : > { %4356 = vmatmul.mubr.f32.gmra.mrb[116].mxu1 %v4108_v51  ;;  %v1875_v2 = vpop.f32.mrb[11].mxu1 }
 0x385   : > { %2427 = vmatmul.mubr.f32.gmra.mrb[52].mxu0 %v7314_v5  ;;  %4358 = vmatprep.mubr.f32.mxu1 %v4109_v31  ;;  %v6571_v5 = vld [vmem:[%s5515_s13 + $0x109] sm:$0xff] }
 0x386   : > { %2431 = vmatprep.mubr.f32.mxu0 %v7332_v44 }
 0x387   : > { %v6564_v21 = vpop.f32.mrb[12].mxu1 }
 0x388   : > { %4359 = vmatmul.mubr.f32.gmra.mrb[118].mxu1 %v4110_v18  ;;  %v1880_v14 = vpop.f32.mrb[13].mxu1 }
 0x389   : > { %2432 = vmatmul.mubr.f32.gmra.mrb[54].mxu0 %v6298_v54  ;;  %4361 = vmatprep.mubr.f32.mxu1 %v4111_v27  ;;  %v4115_v54 = vld [vmem:[%s5515_s13 + $0x99] sm:$0xff] }
 0x38a   : > { %2436 = vmatprep.mubr.f32.mxu0 %v7333_v58 }
 0x38b   : > { %v6573_v8 = vpop.f32.mrb[14].mxu1 }
 0x38c   : > { %4362 = vmatmul.mubr.f32.gmra.mrb[120].mxu1 %v4112_v43  ;;  %v1885_v37 = vpop.f32.mrb[15].mxu1 }
 0x38d   : > { %2437 = vmatmul.mubr.f32.gmra.mrb[56].mxu0 %v6311_v9  ;;  %4364 = vmatprep.mubr.f32.mxu1 %v4113_v50  ;;  %v4035_v9 = vld [vmem:[%s5515_s13 + $0x119] sm:$0xff] }
 0x38e   : > { %2441 = vmatprep.mubr.f32.mxu0 %v6571_v5 }
 0x38f   : > { %v6582_v45 = vpop.f32.mrb[16].mxu1 }
 0x390   : > { %4365 = vmatmul.mubr.f32.gmra.mrb[122].mxu1 %v4114_v56  ;;  %v1890_v7 = vpop.f32.mrb[17].mxu1 }
 0x391   : > { %2442 = vmatmul.mubr.f32.gmra.mrb[58].mxu0 %v6487_v23  ;;  %4367 = vmatprep.mubr.f32.mxu1 %v4115_v54 }
 0x392   : > { %2446 = vmatprep.mubr.f32.mxu0 %v6580_v13 }
 0x393   : > { %v6587_v53 = vpop.f32.mrb[18].mxu1 }
 0x394   : > { %4368 = vmatmul.mubr.f32.gmra.mrb[124].mxu1 %v7317_v49  ;;  %v1895_v52 = vpop.f32.mrb[19].mxu1  ;;  %v4037_v49 = vld [vmem:[%s5515_s13 + $0x37] sm:$0xff] }
 0x395   : > { %2447 = vmatmul.mubr.f32.gmra.mrb[60].mxu0 %v6496_v55  ;;  %4370 = vmatprep.mubr.f32.mxu1 %v7319_v39 }
 0x396   : > { %2451 = vmatprep.mubr.f32.mxu0 %v4035_v9 }
 0x397   : > { %v6593_v23 = vpop.f32.mrb[20].mxu1 }
 0x398   : > { %4371 = vmatmul.mubr.f32.gmra.mrb[126].mxu1 %v7320_v47  ;;  %v1900_v1 = vpop.f32.mrb[21].mxu1  ;;  %v4038_v47 = vld [vmem:[%s5515_s13 + $0x3f] sm:$0xff] }
 0x399   : > { %2452 = vmatmul.mubr.f32.gmra.mrb[62].mxu0 %v6505_v6  ;;  %4373 = vmatprep.mubr.f32.mxu1 %v7322_v48 }
 0x39a   : > { %2521 = vmatprep.mubr.f32.mxu0 %v4070_v59 }
 0x39b   : > { %v6600_v55 = vpop.f32.mrb[22].mxu1 }
 0x39c   : > { %4374 = vmatmul.mubr.f32.gmra.mrb[128].mxu1 %v7324_v15  ;;  %v1905_v39 = vpop.f32.mrb[23].mxu1  ;;  %v4073_v15 = vld [vmem:[%s5515_s13 + $0x50] sm:$0xff] }
 0x39d   : > { %2522 = vmatmul.mubr.f32.vlgmr.msra.gmra.mrb[0].mxu0 %v4037_v49  ;;  %4376 = vmatprep.mubr.f32.mxu1 %v7326_v0 }
 0x39e   : > { %2526 = vmatprep.mubr.f32.mxu0 %v4071_v22 }
 0x39f   : > { %v6606_v6 = vpop.f32.mrb[24].mxu1 }
 0x3a0   : > { %4377 = vmatmul.mubr.f32.gmra.mrb[130].mxu1 %v7327_v35  ;;  %v1910_v48 = vpop.f32.mrb[25].mxu1  ;;  %v4074_v35 = vld [vmem:[%s5515_s13 + $0x58] sm:$0xff] }
 0x3a1   : > { %2527 = vmatmul.mubr.f32.gmra.mrb[2].mxu0 %v4038_v47  ;;  %4379 = vmatprep.mubr.f32.mxu1 %v7328_v12 }
 0x3a2   : > { %2531 = vmatprep.mubr.f32.mxu0 %v4072_v61 }
 0x3a3   : > { %v6612_v4 = vpop.f32.mrb[26].mxu1 }
 0x3a4   : > { %4380 = vmatmul.mubr.f32.gmra.mrb[132].mxu1 %v7329_v20  ;;  %v1915_v0 = vpop.f32.mrb[27].mxu1  ;;  %v4132_v20 = vld [vmem:[%s5515_s13 + $0x121] sm:$0xff] }
 0x3a5   : > { %2532 = vmatmul.mubr.f32.gmra.mrb[4].mxu0 %v4039_v38  ;;  %4382 = vmatprep.mubr.f32.mxu1 %v7330_v40 }
 0x3a6   : > { %2536 = vmatprep.mubr.f32.mxu0 %v4073_v15 }
 0x3a7   : > { %v6618_v42 = vpop.f32.mrb[28].mxu1 }
 0x3a8   : > { %4383 = vmatmul.mubr.f32.gmra.mrb[134].mxu1 %v7331_v19  ;;  %v1920_v60 = vpop.f32.mrb[29].mxu1 }
 0x3a9   : > { %2537 = vmatmul.mubr.f32.gmra.mrb[6].mxu0 %v4040_v33  ;;  %4385 = vmatprep.mubr.f32.mxu1 %v7332_v44 }
 0x3aa   : > { %2541 = vmatprep.mubr.f32.mxu0 %v4074_v35 }
 0x3ab   : > { %v6624_v12 = vpop.f32.mrb[30].mxu1 }
 0x3ac   : > { %4386 = vmatmul.mubr.f32.gmra.mrb[136].mxu1 %v7333_v58  ;;  %v1925_v17 = vpop.f32.mrb[31].mxu1 }
 0x3ad   : > { %2542 = vmatmul.mubr.f32.gmra.mrb[8].mxu0 %v4041_v24  ;;  %4388 = vmatprep.mubr.f32.mxu1 %v6571_v5 }
 0x3ae   : > { %2546 = vmatprep.mubr.f32.mxu0 %v4075_v3 }
 0x3af   : > { %v6630_v34 = vpop.f32.mrb[32].mxu1 }
 0x3b0   : > { %4389 = vmatmul.mubr.f32.gmra.mrb[138].mxu1 %v6580_v13  ;;  %v1930_v10 = vpop.f32.mrb[33].mxu1 }
 0x3b1   : > { %2547 = vmatmul.mubr.f32.gmra.mrb[10].mxu0 %v4042_v30  ;;  %4391 = vmatprep.mubr.f32.mxu1 %v4035_v9 }
 0x3b2   : > { %2551 = vmatprep.mubr.f32.mxu0 %v4076_v29 }
 0x3b3   : > { %v6637_v62 = vpop.f32.mrb[34].mxu1 }
 0x3b4   : > { %4392 = vmatmul.mubr.f32.gmra.mrb[140].mxu1 %v4132_v20  ;;  %v1935_v40 = vpop.f32.mrb[35].mxu1 }
 0x3b5   : > { %2552 = vmatmul.mubr.f32.gmra.mrb[12].mxu0 %v4043_v25  ;;  %4394 = vmatprep.mubr.f32.mxu1 %v4133_v63 }
 0x3b6   : > { %2556 = vmatprep.mubr.f32.mxu0 %v4077_v36 }
 0x3b7   : > { %v6641_v51 = vpop.f32.mrb[36].mxu1 }
 0x3b8   : > { %4395 = vmatmul.mubr.f32.gmra.mrb[142].mxu1 %v4134_v11  ;;  %v1940_v19 = vpop.f32.mrb[37].mxu1 }
 0x3b9   : > { %2557 = vmatmul.mubr.f32.gmra.mrb[14].mxu0 %v4044_v57 }
 0x3bb   : > { %v6643_v31 = vpop.f32.mrb[38].mxu1 }
 0x3bc   : > { %v1945_v2 = vpop.f32.mrb[39].mxu1 }
 0x3bf   : > { %v6645_v18 = vpop.f32.mrb[40].mxu1 }
 0x3c0   : > { %v1950_v44 = vpop.f32.mrb[41].mxu1 }
 0x3c3   : > { %v6647_v27 = vpop.f32.mrb[42].mxu1 }
 0x3c4   : > { %v1955_v14 = vpop.f32.mrb[43].mxu1 }
 0x3c7   : > { %v6649_v43 = vpop.f32.mrb[44].mxu1 }
 0x3c8   : > { %v1960_v58 = vpop.f32.mrb[45].mxu1 }
 0x3cb   : > { %v6651_v50 = vpop.f32.mrb[46].mxu1 }
 0x3cc   : > { %v1965_v5 = vpop.f32.mrb[47].mxu1 }
 0x3cf   : > { %v6653_v37 = vpop.f32.mrb[48].mxu1 }
 0x3d0   : > { %v1970_v56 = vpop.f32.mrb[49].mxu1 }
 0x3d3   : > { %v6655_v54 = vpop.f32.mrb[50].mxu1 }
 0x3d4   : > { %v1975_v13 = vpop.f32.mrb[51].mxu1 }
 0x3d7   : > { %v6657_v7 = vpop.f32.mrb[52].mxu1 }
 0x3d8   : > { %v1980_v9 = vpop.f32.mrb[53].mxu1 }
 0x3db   : > { %v6659_v52 = vpop.f32.mrb[54].mxu1 }
 0x3dc   : > { %v1985_v59 = vpop.f32.mrb[55].mxu1 }
 0x3df   : > { %v6661_v1 = vpop.f32.mrb[56].mxu1 }
 0x3e0   : > { %v1990_v49 = vpop.f32.mrb[57].mxu1 }
 0x3e3   : > { %v6663_v22 = vpop.f32.mrb[58].mxu1 }
 0x3e4   : > { %v1995_v39 = vpop.f32.mrb[59].mxu1 }
 0x3e7   : > { %v6665_v47 = vpop.f32.mrb[60].mxu1 }
 0x3e8   : > { %v2000_v61 = vpop.f32.mrb[61].mxu1 }
 0x3eb   : > { %v6667_v48 = vpop.f32.mrb[62].mxu1 }
 0x3ec   : > { %v2005_v38 = vpop.f32.mrb[63].mxu1 }
 0x3ef   : > { %v2563_v15 = vpop.f32.mrb[64].mxu1 }
 0x3f0   : > { %v2565_v0 = vpop.f32.mrb[65].mxu1 }
 0x3f3   : > { %v2568_v33 = vpop.f32.mrb[66].mxu1 }
 0x3f4   : > { %v2570_v35 = vpop.f32.mrb[67].mxu1 }
 0x3f7   : > { %v2573_v60 = vpop.f32.mrb[68].mxu1 }
 0x3f8   : > { %v2575_v24 = vpop.f32.mrb[69].mxu1 }
 0x3fb   : > { %v2578_v3 = vpop.f32.mrb[70].mxu1 }
 0x3fc   : > { %v2580_v17 = vpop.f32.mrb[71].mxu1 }
 0x3ff   : > { %v2583_v30 = vpop.f32.mrb[72].mxu1 }
 0x400   : > { %v2585_v29 = vpop.f32.mrb[73].mxu1 }
 0x403   : > { %v2588_v10 = vpop.f32.mrb[74].mxu1 }
 0x404   : > { %v2590_v20 = vpop.f32.mrb[75].mxu1 }
 0x407   : > { %v2593_v25 = vpop.f32.mrb[76].mxu1 }
 0x408   : > { %v2595_v63 = vpop.f32.mrb[77].mxu1 }
 0x40b   : > { %v2598_v36 = vpop.f32.mrb[78].mxu1 }
 0x40c   : > { %v2600_v40 = vpop.f32.mrb[79].mxu1 }
 0x40f   : > { %v2603_v11 = vpop.f32.mrb[80].mxu1 }
 0x410   : > { %v2338_v57 = vpop.f32.mrb[16].mxu0  ;;  %v2605_v19 = vpop.f32.mrb[81].mxu1 }
 0x411   : > { %v4709_v2 = vadd.f32 %v2338_v57, %v6582_v45  ;;  %v2340_v44 = vpop.f32.mrb[17].mxu0 }
 0x413   : > { %v6670_v14 = vadd.f32 %v4709_v2, %v2563_v15  ;;  %v2608_v58 = vpop.f32.mrb[82].mxu1 }
 0x414   : > { %v2343_v5 = vpop.f32.mrb[18].mxu0  ;;  %v2610_v56 = vpop.f32.mrb[83].mxu1 }
 0x415   : > { %v4711_v13 = vadd.f32 %v2343_v5, %v6587_v53  ;;  %v2345_v9 = vpop.f32.mrb[19].mxu0 }
 0x417   : > { %v6673_v59 = vadd.f32 %v4711_v13, %v2568_v33  ;;  %v2613_v49 = vpop.f32.mrb[84].mxu1 }
 0x418   : > { %v2348_v39 = vpop.f32.mrb[20].mxu0  ;;  %v2615_v61 = vpop.f32.mrb[85].mxu1 }
 0x419   : > { %v4713_v38 = vadd.f32 %v2348_v39, %v6593_v23  ;;  %v2350_v0 = vpop.f32.mrb[21].mxu0 }
 0x41b   : > { %v6676_v35 = vadd.f32 %v4713_v38, %v2573_v60  ;;  %v2618_v45 = vpop.f32.mrb[86].mxu1 }
 0x41c   : > { %v2353_v24 = vpop.f32.mrb[22].mxu0  ;;  %v2620_v15 = vpop.f32.mrb[87].mxu1 }
 0x41d   : > { %v4715_v17 = vadd.f32 %v2353_v24, %v6600_v55  ;;  %v2355_v29 = vpop.f32.mrb[23].mxu0 }
 0x41f   : > { %v6679_v20 = vadd.f32 %v4715_v17, %v2578_v3  ;;  %v2623_v53 = vpop.f32.mrb[88].mxu1 }
 0x420   : > { %v2358_v63 = vpop.f32.mrb[24].mxu0  ;;  %v2625_v33 = vpop.f32.mrb[89].mxu1 }
 0x421   : > { %v4717_v40 = vadd.f32 %v2358_v63, %v6606_v6  ;;  %v2360_v57 = vpop.f32.mrb[25].mxu0 }
 0x423   : > { %v6682_v19 = vadd.f32 %v4717_v40, %v2583_v30  ;;  %v2628_v23 = vpop.f32.mrb[90].mxu1 }
 0x424   : > { %v2363_v2 = vpop.f32.mrb[26].mxu0  ;;  %v2630_v60 = vpop.f32.mrb[91].mxu1 }
 0x425   : > { %v4719_v44 = vadd.f32 %v2363_v2, %v6612_v4  ;;  %v2365_v5 = vpop.f32.mrb[27].mxu0 }
 0x427   : > { %v6685_v56 = vadd.f32 %v4719_v44, %v2588_v10  ;;  %v2633_v55 = vpop.f32.mrb[92].mxu1 }
 0x428   : > { %v2368_v13 = vpop.f32.mrb[28].mxu0  ;;  %v2635_v3 = vpop.f32.mrb[93].mxu1 }
 0x429   : > { %v4721_v9 = vadd.f32 %v2368_v13, %v6618_v42  ;;  %v2370_v39 = vpop.f32.mrb[29].mxu0 }
 0x42b   : > { %v6688_v61 = vadd.f32 %v4721_v9, %v2593_v25  ;;  %v2638_v6 = vpop.f32.mrb[94].mxu1 }
 0x42c   : > { %v2373_v38 = vpop.f32.mrb[30].mxu0  ;;  %v2640_v30 = vpop.f32.mrb[95].mxu1 }
 0x42d   : > { %v4723_v0 = vadd.f32 %v2373_v38, %v6624_v12  ;;  %v2375_v24 = vpop.f32.mrb[31].mxu0 }
 0x42f   : > { %v6691_v15 = vadd.f32 %v4723_v0, %v2598_v36  ;;  %v2643_v4 = vpop.f32.mrb[96].mxu1 }
 0x430   : > { %v2378_v17 = vpop.f32.mrb[32].mxu0  ;;  %v2645_v10 = vpop.f32.mrb[97].mxu1 }
 0x431   : > { %v4725_v29 = vadd.f32 %v2378_v17, %v6630_v34  ;;  %v2380_v63 = vpop.f32.mrb[33].mxu0 }
 0x433   : > { %v6694_v33 = vadd.f32 %v4725_v29, %v2603_v11  ;;  %v2648_v42 = vpop.f32.mrb[98].mxu1 }
 0x434   : > { %v2383_v40 = vpop.f32.mrb[34].mxu0  ;;  %v2650_v25 = vpop.f32.mrb[99].mxu1 }
 0x435   : > { %v4727_v57 = vadd.f32 %v2383_v40, %v6637_v62  ;;  %v2385_v2 = vpop.f32.mrb[35].mxu0 }
 0x437   : > { %v6697_v60 = vadd.f32 %v4727_v57, %v2608_v58  ;;  %v2653_v12 = vpop.f32.mrb[100].mxu1 }
 0x438   : > { %v2388_v44 = vpop.f32.mrb[36].mxu0  ;;  %v2655_v36 = vpop.f32.mrb[101].mxu1 }
 0x439   : > { %v4729_v5 = vadd.f32 %v2388_v44, %v6641_v51  ;;  %v2390_v13 = vpop.f32.mrb[37].mxu0 }
 0x43b   : > { %v6700_v3 = vadd.f32 %v4729_v5, %v2613_v49  ;;  %v2658_v34 = vpop.f32.mrb[102].mxu1 }
 0x43c   : > { %v2393_v9 = vpop.f32.mrb[38].mxu0  ;;  %v2660_v11 = vpop.f32.mrb[103].mxu1 }
 0x43d   : > { %v4731_v39 = vadd.f32 %v2393_v9, %v6643_v31  ;;  %v2395_v38 = vpop.f32.mrb[39].mxu0 }
 0x43f   : > { %v6703_v30 = vadd.f32 %v4731_v39, %v2618_v45  ;;  %v2663_v62 = vpop.f32.mrb[104].mxu1 }
 0x440   : > { %v2398_v0 = vpop.f32.mrb[40].mxu0  ;;  %v2665_v58 = vpop.f32.mrb[105].mxu1 }
 0x441   : > { %v4733_v24 = vadd.f32 %v2398_v0, %v6645_v18  ;;  %v2400_v17 = vpop.f32.mrb[41].mxu0 }
 0x443   : > { %v6706_v10 = vadd.f32 %v4733_v24, %v2623_v53  ;;  %v6708_v51 = vpop.f32.mrb[106].mxu1 }
 0x444   : > { %v2403_v49 = vpop.f32.mrb[42].mxu0  ;;  %v2670_v29 = vpop.f32.mrb[107].mxu1 }
 0x445   : > { %v4735_v63 = vadd.f32 %v2403_v49, %v6647_v27  ;;  %v2405_v40 = vpop.f32.mrb[43].mxu0 }
 0x447   : > { %v6711_v25 = vpop.f32.mrb[108].mxu1  ;;  %v6713_v31 = vadd.f32 %v4735_v63, %v2628_v23 }
 0x448   : > { %v2408_v45 = vpop.f32.mrb[44].mxu0  ;;  %v2675_v57 = vpop.f32.mrb[109].mxu1 }
 0x449   : > { %v4737_v2 = vadd.f32 %v2408_v45, %v6649_v43  ;;  %v2410_v44 = vpop.f32.mrb[45].mxu0 }
 0x44b   : > { %v6716_v18 = vpop.f32.mrb[110].mxu1  ;;  %v6718_v53 = vadd.f32 %v4737_v2, %v2633_v55 }
 0x44c   : > { %v2413_v36 = vpop.f32.mrb[46].mxu0  ;;  %v2680_v5 = vpop.f32.mrb[111].mxu1 }
 0x44d   : > { %v4739_v13 = vadd.f32 %v2413_v36, %v6651_v50  ;;  %v2415_v9 = vpop.f32.mrb[47].mxu0 }
 0x44e   : > { %v6754_v9 = vpop.permute.xlu0 %2941 }
 0x44f   : > { %v6721_v27 = vpop.f32.mrb[112].mxu1  ;;  %v6723_v11 = vadd.f32 %v4739_v13, %v2638_v6 }
 0x450   : > { %v2418_v23 = vpop.f32.mrb[48].mxu0  ;;  %v6725_v39 = vpop.f32.mrb[113].mxu1 }
 0x451   : > { %v4741_v38 = vadd.f32 %v2418_v23, %v6653_v37  ;;  %v2420_v43 = vpop.f32.mrb[49].mxu0 }
 0x453   : > { %v6728_v0 = vpop.f32.mrb[114].mxu1  ;;  %v6730_v58 = vadd.f32 %v4741_v38, %v2643_v4 }
 0x454   : > { %v2423_v55 = vpop.f32.mrb[50].mxu0  ;;  %v6732_v24 = vpop.f32.mrb[115].mxu1 }
 0x455   : > { %v4743_v50 = vadd.f32 %v2423_v55, %v6655_v54  ;;  %v2425_v17 = vpop.f32.mrb[51].mxu0 }
 0x457   : > { %v6735_v49 = vpop.f32.mrb[116].mxu1  ;;  %v6737_v6 = vadd.f32 %v4743_v50, %v2648_v42 }
 0x458   : > { %v2428_v29 = vpop.f32.mrb[52].mxu0  ;;  %v6739_v63 = vpop.f32.mrb[117].mxu1 }
 0x459   : > { %v4745_v37 = vadd.f32 %v2428_v29, %v6657_v7  ;;  %v2430_v40 = vpop.f32.mrb[53].mxu0  ;;  %v2947_v29 = vpop.permute.xlu0 %2946 }
 0x45b   : > { %v6742_v45 = vpop.f32.mrb[118].mxu1  ;;  %v6744_v4 = vadd.f32 %v4745_v37, %v2653_v12 }
 0x45c   : > { %v2433_v57 = vpop.f32.mrb[54].mxu0  ;;  %v6746_v2 = vpop.f32.mrb[119].mxu1 }
 0x45d   : > { %v4747_v54 = vadd.f32 %v2433_v57, %v6659_v52  ;;  %v2435_v44 = vpop.f32.mrb[55].mxu0  ;;  %v6765_v52 = vpop.permute.xlu1 %2951 }
 0x45f   : > { %v4363_v36 = vpop.f32.mrb[120].mxu1  ;;  %v6749_v42 = vadd.f32 %v4747_v54, %v2658_v34 }
 0x460   : > { %v2438_v5 = vpop.f32.mrb[56].mxu0  ;;  %v6752_v13 = vadd.f32 %v6673_v59, %v4363_v36  ;;  %v2788_v7 = vpop.f32.mrb[121].mxu1 }
 0x461   : > { %v4749_v23 = vadd.f32 %v2438_v5, %v6661_v1  ;;  %v2440_v12 = vpop.f32.mrb[57].mxu0  ;;  %v6758_v38 = vadd.f32 %v6670_v14, %v2788_v7 }
 0x462   : > { %3253 = vst [vmem:[%s6761_s24 + $0x48] sm:$0xff] %v6752_v13 }
 0x463   : > { %3252 = vst [vmem:[%s6761_s24 + $0x40] sm:$0xff] %v6758_v38  ;;  %v4366_v59 = vpop.f32.mrb[122].mxu1  ;;  %v6769_v34 = vadd.f32 %v4749_v23, %v2663_v62 }
 0x464   : > { %v2443_v1 = vpop.f32.mrb[58].mxu0  ;;  %v6772_v43 = vadd.f32 %v6679_v20, %v4366_v59  ;;  %v2798_v14 = vpop.f32.mrb[123].mxu1 }
 0x465   : > { %v4751_v55 = vadd.f32 %v2443_v1, %v6663_v22  ;;  %v2445_v50 = vpop.f32.mrb[59].mxu0  ;;  %v6776_v17 = vadd.f32 %v6676_v35, %v2798_v14  ;;  %v6788_v22 = vpop.permute.xlu1 %2956 }
 0x466   : > { %3255 = vst [vmem:[%s6761_s24 + $0x58] sm:$0xff] %v6772_v43 }
 0x467   : > { %3254 = vst [vmem:[%s6761_s24 + $0x50] sm:$0xff] %v6776_v17  ;;  %v4369_v62 = vpop.f32.mrb[124].mxu1  ;;  %v6783_v37 = vadd.f32 %v4751_v55, %v6708_v51 }
 0x468   : > { %v2448_v20 = vpop.f32.mrb[60].mxu0  ;;  %v6786_v40 = vadd.f32 %v6685_v56, %v4369_v62  ;;  %v2808_v57 = vpop.f32.mrb[125].mxu1 }
 0x469   : > { %v4753_v35 = vadd.f32 %v2448_v20, %v6665_v47  ;;  %v2450_v54 = vpop.f32.mrb[61].mxu0  ;;  %v6792_v44 = vadd.f32 %v6682_v19, %v2808_v57  ;;  %v6804_v47 = vpop.permute.xlu0 %2961 }
 0x46a   : > { %3257 = vst [vmem:[%s6761_s24 + $0x68] sm:$0xff] %v6786_v40  ;;  %v6812_v59 = vpop.permute.xlu1 %2966 }
 0x46b   : > { %3256 = vst [vmem:[%s6761_s24 + $0x60] sm:$0xff] %v6792_v44  ;;  %v4372_v51 = vpop.f32.mrb[126].mxu1  ;;  %v6799_v36 = vadd.f32 %v4753_v35, %v6711_v25 }
 0x46c   : > { %v2453_v56 = vpop.f32.mrb[62].mxu0  ;;  %v6802_v5 = vadd.f32 %v6691_v15, %v4372_v51  ;;  %v2818_v7 = vpop.f32.mrb[127].mxu1 }
 0x46d   : > { %v4755_v23 = vadd.f32 %v2453_v56, %v6667_v48  ;;  %v2455_v19 = vpop.f32.mrb[63].mxu0  ;;  %v6808_v12 = vadd.f32 %v6688_v61, %v2818_v7  ;;  %v6828_v62 = vpop.permute.xlu0 %2971 }
 0x46e   : > { %3259 = vst [vmem:[%s6761_s24 + $0x78] sm:$0xff] %v6802_v5  ;;  %v6836_v35 = vpop.permute.xlu1 %2976 }
 0x46f   : > { %3258 = vst [vmem:[%s6761_s24 + $0x70] sm:$0xff] %v6808_v12  ;;  %v4375_v25 = vpop.f32.mrb[128].mxu1  ;;  %v6817_v15 = vadd.f32 %v4755_v23, %v6716_v18 }
 0x470   : > { %v2523_v1 = vpop.f32.mrb[0].mxu0  ;;  %v6820_v14 = vadd.f32 %v6697_v60, %v4375_v25  ;;  %v2828_v48 = vpop.f32.mrb[129].mxu1 }
 0x471   : > { %v4701_v55 = vadd.f32 %v2523_v1, %v6521_v16  ;;  %v2525_v61 = vpop.f32.mrb[1].mxu0  ;;  %v6824_v50 = vadd.f32 %v6694_v33, %v2828_v48  ;;  %v6852_v19 = vpop.permute.xlu0 %2981 }
 0x472   : > { %3261 = vst [vmem:[%s6761_s24 + $0x88] sm:$0xff] %v6820_v14 }
 0x473   : > { %v2749_v18 = vadd.f32 %v4701_v55, %v6725_v39  ;;  %3260 = vst [vmem:[%s6761_s24 + $0x80] sm:$0xff] %v6824_v50  ;;  %v4378_v20 = vpop.f32.mrb[130].mxu1 }
 0x474   : > { %v2528_v60 = vpop.f32.mrb[2].mxu0  ;;  %v6834_v57 = vadd.f32 %v6703_v30, %v4378_v20  ;;  %v2838_v16 = vpop.f32.mrb[131].mxu1 }
 0x475   : > { %3244 = vst [vmem:[%s6761_s24] sm:$0xff] %v2749_v18  ;;  %v4702_v33 = vadd.f32 %v2528_v60, %v6529_v46  ;;  %v2530_v54 = vpop.f32.mrb[3].mxu0  ;;  %v6841_v51 = vadd.f32 %v6700_v3, %v2838_v16  ;;  %v3099_v39 = vmul.f32 %v6754_v9, %v2749_v18 }
 0x476   : > { %3263 = vst [vmem:[%s6761_s24 + $0x98] sm:$0xff] %v6834_v57  ;;  %v6877_v54 = vpop.permute.xlu0 %2991 }
 0x477   : > { %v2754_v56 = vadd.f32 %v4702_v33, %v6721_v27  ;;  %3262 = vst [vmem:[%s6761_s24 + $0x90] sm:$0xff] %v6841_v51  ;;  %v4381_v30 = vpop.f32.mrb[132].mxu1  ;;  %v6861_v27 = vpop.permute.xlu1 %2986  ;;  %v3172_v48 = vmul.f32 %v3099_v39, %v2749_v18 }
 0x478   : > { %v2533_v7 = vpop.f32.mrb[4].mxu0  ;;  %v6850_v23 = vadd.f32 %v6713_v31, %v4381_v30  ;;  %v2848_v46 = vpop.f32.mrb[133].mxu1 }
 0x479   : > { %v3100_v25 = vmul.f32 %v2947_v29, %v2754_v56  ;;  %3245 = vst [vmem:[%s6761_s24 + $0x8] sm:$0xff] %v2754_v56  ;;  %v4703_v3 = vadd.f32 %v2533_v7, %v6537_v28  ;;  %v2535_v1 = vpop.f32.mrb[5].mxu0  ;;  %v6857_v9 = vadd.f32 %v6706_v10, %v2848_v46 }
 0x47a   : > { %3265 = vst [vmem:[%s6761_s24 + $0xa8] sm:$0xff] %v6850_v23 }
 0x47b   : > { %v3132_v31 = vadd.f32 %v3100_v25, %v3099_v39  ;;  %v3173_v55 = vmul.f32 %v3100_v25, %v2754_v56  ;;  %v2759_v61 = vadd.f32 %v4703_v3, %v6732_v24  ;;  %3264 = vst [vmem:[%s6761_s24 + $0xa0] sm:$0xff] %v6857_v9  ;;  %v4384_v29 = vpop.f32.mrb[134].mxu1  ;;  %v6885_v46 = vpop.permute.xlu1 %2996 }
 0x47c   : > { %v2538_v28 = vpop.f32.mrb[6].mxu0  ;;  %v6867_v20 = vadd.f32 %v6723_v11, %v4384_v29  ;;  %v2858_v10 = vpop.f32.mrb[135].mxu1 }
 0x47d   : > { %v3204_v60 = vadd.f32 %v3173_v55, %v3172_v48  ;;  %v3101_v16 = vmul.f32 %v6765_v52, %v2759_v61  ;;  %3246 = vst [vmem:[%s6761_s24 + $0x10] sm:$0xff] %v2759_v61  ;;  %v4704_v33 = vadd.f32 %v2538_v28, %v6545_v26  ;;  %v2540_v18 = vpop.f32.mrb[7].mxu0  ;;  %v6875_v24 = vadd.f32 %v6718_v53, %v2858_v10  ;;  %v6901_v29 = vpop.permute.xlu0 %3001 }
 0x47e   : > { %3267 = vst [vmem:[%s6761_s24 + $0xb8] sm:$0xff] %v6867_v20 }
 0x47f   : > { %v3133_v39 = vadd.f32 %v3132_v31, %v3101_v16  ;;  %v3174_v11 = vmul.f32 %v3101_v16, %v2759_v61  ;;  %v2764_v56 = vadd.f32 %v4704_v33, %v6728_v0  ;;  %v4387_v30 = vpop.f32.mrb[136].mxu1  ;;  %3266 = vst [vmem:[%s6761_s24 + $0xb0] sm:$0xff] %v6875_v24  ;;  %v3007_v16 = vpop.permute.xlu1 %3006 }
 0x480   : > { %v2543_v52 = vpop.f32.mrb[8].mxu0  ;;  %v6883_v26 = vadd.f32 %v6737_v6, %v4387_v30  ;;  %v2868_v7 = vpop.f32.mrb[137].mxu1 }
 0x481   : > { %v3205_v53 = vadd.f32 %v3204_v60, %v3174_v11  ;;  %v3102_v25 = vmul.f32 %v6788_v22, %v2764_v56  ;;  %3247 = vst [vmem:[%s6761_s24 + $0x18] sm:$0xff] %v2764_v56  ;;  %v4705_v3 = vadd.f32 %v2543_v52, %v6552_v41  ;;  %v2545_v1 = vpop.f32.mrb[9].mxu0  ;;  %v6891_v0 = vadd.f32 %v6730_v58, %v2868_v7 }
 0x482   : > { %3269 = vst [vmem:[%s6761_s24 + $0xc8] sm:$0xff] %v6883_v26 }
 0x483   : > { %v3134_v48 = vadd.f32 %v3133_v39, %v3102_v25  ;;  %v3175_v6 = vmul.f32 %v3102_v25, %v2764_v56  ;;  %v2769_v31 = vadd.f32 %v4705_v3, %v6739_v63  ;;  %3268 = vst [vmem:[%s6761_s24 + $0xc0] sm:$0xff] %v6891_v0  ;;  %v4390_v55 = vpop.f32.mrb[138].mxu1 }
 0x484   : > { %v2548_v61 = vpop.f32.mrb[10].mxu0  ;;  %v6899_v22 = vadd.f32 %v6749_v42, %v4390_v55  ;;  %v2878_v41 = vpop.f32.mrb[139].mxu1 }
 0x485   : > { %v3206_v58 = vadd.f32 %v3205_v53, %v3175_v6  ;;  %v3103_v28 = vmul.f32 %v6804_v47, %v2769_v31  ;;  %3248 = vst [vmem:[%s6761_s24 + $0x20] sm:$0xff] %v2769_v31  ;;  %v4706_v10 = vadd.f32 %v2548_v61, %v6558_v32  ;;  %v2550_v60 = vpop.f32.mrb[11].mxu0  ;;  %v6909_v63 = vadd.f32 %v6744_v4, %v2878_v41  ;;  %v3017_v55 = vpop.permute.xlu1 %3016 }
 0x486   : > { %3271 = vst [vmem:[%s6761_s24 + $0xd8] sm:$0xff] %v6899_v22 }
 0x487   : > { %v3135_v42 = vadd.f32 %v3134_v48, %v3103_v28  ;;  %v3176_v33 = vmul.f32 %v3103_v28, %v2769_v31  ;;  %v2774_v18 = vadd.f32 %v4706_v10, %v6735_v49  ;;  %v4393_v39 = vpop.f32.mrb[140].mxu1  ;;  %3270 = vst [vmem:[%s6761_s24 + $0xd0] sm:$0xff] %v6909_v63  ;;  %v3012_v49 = vpop.permute.xlu0 %3011  ;;  %v3108_v10 = vmul.f32 %v6861_v27, %v6752_v13 }
 0x488   : > { %v2553_v47 = vpop.f32.mrb[12].mxu0  ;;  %v6915_v11 = vadd.f32 %v6783_v37, %v4393_v39  ;;  %v2888_v32 = vpop.f32.mrb[141].mxu1 }
 0x489   : > { %v3207_v56 = vadd.f32 %v3206_v58, %v3176_v33  ;;  %v3104_v30 = vmul.f32 %v6812_v59, %v2774_v18  ;;  %3249 = vst [vmem:[%s6761_s24 + $0x28] sm:$0xff] %v2774_v18  ;;  %v4707_v4 = vadd.f32 %v2553_v47, %v6564_v21  ;;  %v2555_v52 = vpop.f32.mrb[13].mxu0  ;;  %v6921_v7 = vadd.f32 %v6769_v34, %v2888_v32 }
 0x48a   : > { %3273 = vst [vmem:[%s6761_s24 + $0xe8] sm:$0xff] %v6915_v11  ;;  %v3107_v58 = vmul.f32 %v6852_v19, %v6758_v38  ;;  %v3181_v19 = vmul.f32 %v3108_v10, %v6752_v13 }
 0x48b   : > { %v3136_v53 = vadd.f32 %v3135_v42, %v3104_v30  ;;  %v3177_v25 = vmul.f32 %v3104_v30, %v2774_v18  ;;  %v2779_v37 = vadd.f32 %v4707_v4, %v6746_v2  ;;  %3272 = vst [vmem:[%s6761_s24 + $0xe0] sm:$0xff] %v6921_v7  ;;  %v4396_v59 = vpop.f32.mrb[142].mxu1  ;;  %v3027_v42 = vpop.permute.xlu1 %3026  ;;  %v3111_v30 = vmul.f32 %v6901_v29, %v6792_v44 }
 0x48c   : > { %v2558_v3 = vpop.f32.mrb[14].mxu0  ;;  %v6929_v1 = vadd.f32 %v6817_v15, %v4396_v59  ;;  %v2898_v21 = vpop.f32.mrb[143].mxu1  ;;  %v3180_v33 = vmul.f32 %v3107_v58, %v6758_v38  ;;  %v3114_v29 = vmul.f32 %v3017_v55, %v6802_v5 }
 0x48d   : > { %v3208_v34 = vadd.f32 %v3207_v56, %v3177_v25  ;;  %v3105_v48 = vmul.f32 %v6828_v62, %v2779_v37  ;;  %3250 = vst [vmem:[%s6761_s24 + $0x30] sm:$0xff] %v2779_v37  ;;  %v4708_v6 = vadd.f32 %v2558_v3, %v6573_v8  ;;  %v2560_v31 = vpop.f32.mrb[15].mxu0  ;;  %v6937_v2 = vadd.f32 %v6799_v36, %v2898_v21  ;;  %v3022_v8 = vpop.permute.xlu0 %3021 }
 0x48e   : > { %3275 = vst [vmem:[%s6761_s24 + $0xf8] sm:$0xff] %v6929_v1 }
 0x48f   : > { %v3137_v61 = vadd.f32 %v3136_v53, %v3105_v48  ;;  %v3178_v41 = vmul.f32 %v3105_v48, %v2779_v37  ;;  %v2784_v15 = vadd.f32 %v4708_v6, %v6742_v45  ;;  %3274 = vst [vmem:[%s6761_s24 + $0xf0] sm:$0xff] %v6937_v2  ;;  %v3109_v45 = vmul.f32 %v6877_v54, %v6776_v17  ;;  %v3037_v52 = vpop.permute.xlu1 %3036 }
 0x490   : > { %v3112_v53 = vmul.f32 %v3007_v16, %v6786_v40  ;;  %v3184_v37 = vmul.f32 %v3111_v30, %v6792_v44  ;;  %v3115_v16 = vmul.f32 %v3022_v8, %v6824_v50  ;;  %v3187_v44 = vmul.f32 %v3114_v29, %v6802_v5 }
 0x491   : > { %v3209_v62 = vadd.f32 %v3208_v34, %v3178_v41  ;;  %v3106_v28 = vmul.f32 %v6836_v35, %v2784_v15  ;;  %3251 = vst [vmem:[%s6761_s24 + $0x38] sm:$0xff] %v2784_v15  ;;  %v3110_v35 = vmul.f32 %v6885_v46, %v6772_v43  ;;  %v3032_v56 = vpop.permute.xlu0 %3031  ;;  %v3182_v27 = vmul.f32 %v3109_v45, %v6776_v17 }
 0x492   : > { %v3113_v46 = vmul.f32 %v3012_v49, %v6808_v12  ;;  %v3185_v17 = vmul.f32 %v3112_v53, %v6786_v40  ;;  %v3116_v49 = vmul.f32 %v3027_v42, %v6820_v14  ;;  %v3188_v40 = vmul.f32 %v3115_v16, %v6824_v50 }
 0x493   : > { %v3138_v60 = vadd.f32 %v3137_v61, %v3106_v28  ;;  %v3179_v36 = vmul.f32 %v3106_v28, %v2784_v15  ;;  %v3183_v54 = vmul.f32 %v3110_v35, %v6772_v43  ;;  %v3047_v6 = vpop.permute.xlu1 %3046  ;;  %v3117_v55 = vmul.f32 %v3032_v56, %v6841_v51 }
 0x494   : > { %v3186_v43 = vmul.f32 %v3113_v46, %v6808_v12  ;;  %v3189_v12 = vmul.f32 %v3116_v49, %v6820_v14  ;;  %v3118_v8 = vmul.f32 %v3037_v52, %v6834_v57 }
 0x495   : > { %v3139_v18 = vadd.f32 %v3138_v60, %v3107_v58  ;;  %v3210_v39 = vadd.f32 %v3209_v62, %v3179_v36  ;;  %v3042_v21 = vpop.permute.xlu0 %3041  ;;  %v3190_v5 = vmul.f32 %v3117_v55, %v6841_v51 }
 0x496   : > { %v3119_v42 = vmul.f32 %v3042_v21, %v6857_v9  ;;  %v3191_v50 = vmul.f32 %v3118_v8, %v6834_v57 }
 0x497   : > { %v3140_v47 = vadd.f32 %v3139_v18, %v3108_v10  ;;  %v3211_v32 = vadd.f32 %v3210_v39, %v3180_v33  ;;  %v3057_v10 = vpop.permute.xlu1 %3056  ;;  %v3120_v39 = vmul.f32 %v3047_v6, %v6850_v23 }
 0x498   : > { %v3192_v14 = vmul.f32 %v3119_v42, %v6857_v9 }
 0x499   : > { %v3141_v4 = vadd.f32 %v3140_v47, %v3109_v45  ;;  %v3212_v38 = vadd.f32 %v3211_v32, %v3181_v19  ;;  %v3052_v58 = vpop.permute.xlu0 %3051  ;;  %v3193_v51 = vmul.f32 %v3120_v39, %v6850_v23 }
 0x49a   : > { %v3121_v32 = vmul.f32 %v3052_v58, %v6875_v24 }
 0x49b   : > { %v3142_v25 = vadd.f32 %v3141_v4, %v3110_v35  ;;  %v3213_v13 = vadd.f32 %v3212_v38, %v3182_v27  ;;  %v3067_v47 = vpop.permute.xlu1 %3066 }
 0x49c   : > { %v3194_v57 = vmul.f32 %v3121_v32, %v6875_v24 }
 0x49d   : > { %v3143_v59 = vadd.f32 %v3142_v25, %v3111_v30  ;;  %v3214_v3 = vadd.f32 %v3213_v13, %v3183_v54  ;;  %v3062_v18 = vpop.permute.xlu0 %3061  ;;  %v3122_v30 = vmul.f32 %v3057_v10, %v6867_v20 }
 0x49e   : > { %v3123_v54 = vmul.f32 %v3062_v18, %v6891_v0 }
 0x49f   : > { %v3144_v34 = vadd.f32 %v3143_v59, %v3112_v53  ;;  %v3215_v48 = vadd.f32 %v3214_v3, %v3184_v37  ;;  %v3077_v13 = vpop.permute.xlu1 %3076  ;;  %v3195_v9 = vmul.f32 %v3122_v30, %v6867_v20  ;;  %v3124_v37 = vmul.f32 %v3067_v47, %v6883_v26 }
 0x4a0   : > { %v3196_v23 = vmul.f32 %v3123_v54, %v6891_v0 }
 0x4a1   : > { %v3145_v31 = vadd.f32 %v3144_v34, %v3113_v46  ;;  %v3216_v61 = vadd.f32 %v3215_v48, %v3185_v17  ;;  %v3072_v52 = vpop.permute.xlu0 %3071  ;;  %v3197_v24 = vmul.f32 %v3124_v37, %v6883_v26  ;;  %v3126_v34 = vmul.f32 %v3077_v13, %v6899_v22 }
 0x4a2   : > { %v3125_v3 = vmul.f32 %v3072_v52, %v6909_v63 }
 0x4a3   : > { %v3146_v41 = vadd.f32 %v3145_v31, %v3114_v29  ;;  %v3217_v15 = vadd.f32 %v3216_v61, %v3186_v43  ;;  %v3087_v43 = vpop.permute.xlu1 %3086  ;;  %v3199_v0 = vmul.f32 %v3126_v34, %v6899_v22 }
 0x4a4   : > { %v3198_v20 = vmul.f32 %v3125_v3, %v6909_v63 }
 0x4a5   : > { %v3147_v62 = vadd.f32 %v3146_v41, %v3115_v16  ;;  %v3218_v28 = vadd.f32 %v3217_v15, %v3187_v44  ;;  %v3082_v29 = vpop.permute.xlu0 %3081  ;;  %v3128_v44 = vmul.f32 %v3087_v43, %v6915_v11 }
 0x4a6   : > { %v3127_v16 = vmul.f32 %v3082_v29, %v6921_v7 }
 0x4a7   : > { %v3148_v60 = vadd.f32 %v3147_v62, %v3116_v49  ;;  %v3219_v36 = vadd.f32 %v3218_v28, %v3188_v40  ;;  %v3097_v62 = vpop.permute.xlu1 %3096  ;;  %v3201_v63 = vmul.f32 %v3128_v44, %v6915_v11 }
 0x4a8   : > { %v3200_v26 = vmul.f32 %v3127_v16, %v6921_v7  ;;  %v3130_v28 = vmul.f32 %v3097_v62, %v6929_v1 }
 0x4a9   : > { %v3220_v33 = vadd.f32 %v3219_v36, %v3189_v12  ;;  %v3149_v45 = vadd.f32 %v3148_v60, %v3117_v55  ;;  %v3092_v15 = vpop.permute.xlu0 %3091 }
 0x4aa   : > { %v3129_v58 = vmul.f32 %v3092_v15, %v6937_v2  ;;  %v3203_v36 = vmul.f32 %v3130_v28, %v6929_v1 }
 0x4ab   : > { %v3150_v19 = vadd.f32 %v3149_v45, %v3118_v8  ;;  %v3221_v35 = vadd.f32 %v3220_v33, %v3190_v5 }
 0x4ac   : > { %v3202_v22 = vmul.f32 %v3129_v58, %v6937_v2 }
 0x4ad   : > { %v3151_v56 = vadd.f32 %v3150_v19, %v3119_v42  ;;  %v3222_v27 = vadd.f32 %v3221_v35, %v3191_v50 }
 0x4af   : > { %v3152_v4 = vadd.f32 %v3151_v56, %v3120_v39  ;;  %v3223_v38 = vadd.f32 %v3222_v27, %v3192_v14  ;;  %v3131_v14 = vld [vmem:[#allocation5] sm:$0x1]  ;;  %v3171_v27 = vld [vmem:[#allocation5 + $0x1] sm:$0x1] }
 0x4b1   : > { %v3153_v53 = vadd.f32 %v3152_v4, %v3121_v32  ;;  %v3224_v25 = vadd.f32 %v3223_v38, %v3193_v51 }
 0x4b3   : > { %v3154_v46 = vadd.f32 %v3153_v53, %v3122_v30  ;;  %v3225_v59 = vadd.f32 %v3224_v25, %v3194_v57  ;;  %v3286_v25 = vld [vmem:[%s7198_s6] sm:$0x1] (!%p4135_p2) }
 0x4b5   : > { %v3155_v21 = vadd.f32 %v3154_v46, %v3123_v54  ;;  %v3226_v17 = vadd.f32 %v3225_v59, %v3195_v9 }
 0x4b7   : > { %v3156_v48 = vadd.f32 %v3155_v21, %v3124_v37  ;;  %v3227_v6 = vadd.f32 %v3226_v17, %v3196_v23  ;;  %v3291_v37 = vld [vmem:[%s7199_s7] sm:$0x1] (!%p4135_p2) }
 0x4b9   : > { %v3157_v31 = vadd.f32 %v3156_v48, %v3125_v3  ;;  %v3228_v61 = vadd.f32 %v3227_v6, %v3197_v24 }
 0x4bb   : > { %v3158_v49 = vadd.f32 %v3157_v31, %v3126_v34  ;;  %v3229_v41 = vadd.f32 %v3228_v61, %v3198_v20 }
 0x4bd   : > { %v3159_v40 = vadd.f32 %v3158_v49, %v3127_v16  ;;  %v3230_v55 = vadd.f32 %v3229_v41, %v3199_v0 }
 0x4bf   : > { %v3160_v10 = vadd.f32 %v3159_v40, %v3128_v44  ;;  %v3231_v12 = vadd.f32 %v3230_v55, %v3200_v26 }
 0x4c1   : > { %v3161_v8 = vadd.f32 %v3160_v10, %v3129_v58  ;;  %v3232_v60 = vadd.f32 %v3231_v12, %v3201_v63 }
 0x4c3   : > { %v3162_v5 = vadd.f32 %v3161_v8, %v3130_v28  ;;  %v3233_v42 = vadd.f32 %v3232_v60, %v3202_v22 }
 0x4c5   : > { %v3163_v7 = vrot.slane %v3162_v5, 4  ;;  %v3234_v33 = vadd.f32 %v3233_v42, %v3203_v36 }
 0x4c7   : > { %v3164_v45 = vadd.f32 %v3163_v7, %v3162_v5  ;;  %v3235_v18 = vrot.slane %v3234_v33, 4 }
 0x4c9   : > { %v3165_v50 = vrot.slane %v3164_v45, 2  ;;  %v3236_v39 = vadd.f32 %v3235_v18, %v3234_v33 }
 0x4cb   : > { %v3166_v19 = vadd.f32 %v3165_v50, %v3164_v45  ;;  %v3237_v11 = vrot.slane %v3236_v39, 2 }
 0x4cd   : > { %v3167_v35 = vrot.slane %v3166_v19, 1  ;;  %v3238_v47 = vadd.f32 %v3237_v11, %v3236_v39 }
 0x4cf   : > { %v3168_v32 = vadd.f32 %v3167_v35, %v3166_v19  ;;  %v3239_v56 = vrot.slane %v3238_v47, 1  ;;  %3279 = sbr.rel (%p4135_p2) target bundleno = 1269 (0x4f5), region = 76 }
 0x4d1   : > { %v3169_v2 = vadd.f32 %v3168_v32, %v3131_v14  ;;  %v3240_v51 = vadd.f32 %v3239_v56, %v3238_v47 }
 0x4d3   : > { %3170 = vst [vmem:[#allocation5] sm:$0x1] %v3169_v2  ;;  %v3241_v1 = vadd.f32 %v3240_v51, %v3171_v27 }
 0x4d5   : > { %3242 = vst [vmem:[#allocation5 + $0x1] sm:$0x1] %v3241_v1 }
 0x4da   : > { %v3280_v30 = vld [vmem:[#allocation5] sm:$0x1] }
 0x4db   : > { %v3281_v38 = vmul.f32 0.001953125, %v3280_v30 }
 0x4dc   : > { %v3282_v4 = vld [vmem:[#allocation5 + $0x1] sm:$0x1] }
 0x4dd   : > { %v3283_v52 = vmul.f32 0.001953125, %v3282_v4  ;;  %v3284_v57 = vmul.f32 %v3281_v38, %v3281_v38 }
 0x4df   : > { %v3285_v54 = vsub.f32 %v3283_v52, %v3284_v57 }
 0x4e1   : > { %v3287_v53 = vadd.f32 1e-05, %v3285_v54 }
 0x4e3   : > { %4887 = vrsqrt.f32 %v3287_v53 }
 0x4ed   : > { %v4888_v13 = vpop.eup %4887 }
 0x4ee   : > { %v3289_v9 = vmul.f32 %v4888_v13, %v3286_v25 }
 0x4f0   : > { %3290 = vst [vmem:[#allocation5 + $0x2] sm:$0x1] %v3289_v9  ;;  %v3292_v46 = vmul.f32 %v3289_v9, %v3281_v38 }
 0x4f2   : > { %v3293_v59 = vsub.f32 %v3291_v37, %v3292_v46 }
 0x4f4   : > { %3294 = vst [vmem:[#allocation5 + $0x3] sm:$0x1] %v3293_v59 }
 0x4f5 PF: > { %p4136_p3 = scmp.ne.s32.totalorder %s4915_s28, 3 }
 0x4f6   : > { %s7008_s27 = scalar_lea.vmem (!%p4136_p3), [#allocation3], %s5015_s12  ;;  %v3502_v31 = vld [vmem:[%s5026_s20] sm:$0xff] (!%p4136_p3)  ;;  %v3503_v41 = vld [vmem:[%s5026_s20 + $0x8] sm:$0xff] (!%p4136_p3)  ;;  %v3504_v26 = vld [vmem:[%s5026_s20 + $0x10] sm:$0xff] (!%p4136_p3) }
 0x4f7   : > { %3298 = sbr.rel (%p4136_p3) target bundleno = 1326 (0x52e), region = 80  ;;  %v7005_v23 = vld [vmem:[#allocation5 + $0x2] ss:$0 sm:$0xff] (!%p4136_p3)  ;;  %v3300_v3 = vld [vmem:[%s7008_s27] sm:$0xff] (!%p4136_p3)  ;;  %v3302_v34 = vld [vmem:[%s7008_s27 + $0x10] sm:$0xff] (!%p4136_p3) }
 0x4f8   : > { %v3301_v17 = vld [vmem:[%s7008_s27 + $0x8] sm:$0xff] (!%p4136_p3)  ;;  %v3337_v29 = vmul.f32 (!%p4136_p3), %v7005_v23, %v3300_v3  ;;  %v3303_v48 = vld [vmem:[%s7008_s27 + $0x18] sm:$0xff] (!%p4136_p3)  ;;  %v3339_v6 = vmul.f32 (!%p4136_p3), %v7005_v23, %v3302_v34  ;;  %v3304_v20 = vld [vmem:[%s7008_s27 + $0x20] sm:$0xff] (!%p4136_p3) }
 0x4f9   : > { %v3338_v24 = vmul.f32 (!%p4136_p3), %v7005_v23, %v3301_v17  ;;  %v3340_v43 = vmul.f32 (!%p4136_p3), %v7005_v23, %v3303_v48  ;;  %v3341_v0 = vmul.f32 (!%p4136_p3), %v7005_v23, %v3304_v20  ;;  %v3305_v44 = vld [vmem:[%s7008_s27 + $0x28] sm:$0xff] (!%p4136_p3)  ;;  %v3306_v49 = vld [vmem:[%s7008_s27 + $0x30] sm:$0xff] (!%p4136_p3)  ;;  %v3505_v40 = vld [vmem:[%s5026_s20 + $0x18] sm:$0xff] (!%p4136_p3) }
 0x4fa   : > { %v3342_v55 = vmul.f32 (!%p4136_p3), %v7005_v23, %v3305_v44  ;;  %v3343_v62 = vmul.f32 (!%p4136_p3), %v7005_v23, %v3306_v49  ;;  %v3307_v5 = vld [vmem:[%s7008_s27 + $0x38] sm:$0xff] (!%p4136_p3)  ;;  %v3308_v18 = vld [vmem:[%s7008_s27 + $0x40] sm:$0xff] (!%p4136_p3)  ;;  %v3309_v50 = vld [vmem:[%s7008_s27 + $0x48] sm:$0xff] (!%p4136_p3) }
 0x4fb   : > { %v7011_v21 = vld [vmem:[#allocation5 + $0x3] ss:$0 sm:$0xff] (!%p4136_p3)  ;;  %v3310_v39 = vld [vmem:[%s7008_s27 + $0x50] sm:$0xff] (!%p4136_p3)  ;;  %v3506_v47 = vld [vmem:[%s5026_s20 + $0x20] sm:$0xff] (!%p4136_p3)  ;;  %v3344_v27 = vmul.f32 (!%p4136_p3), %v7005_v23, %v3307_v5  ;;  %v3345_v51 = vmul.f32 (!%p4136_p3), %v7005_v23, %v3308_v18  ;;  %v3346_v1 = vmul.f32 (!%p4136_p3), %v7005_v23, %v3309_v50 }
 0x4fc   : > { %v3374_v16 = vadd.f32 (!%p4136_p3), %v7011_v21, %v3337_v29  ;;  %v3375_v61 = vadd.f32 (!%p4136_p3), %v7011_v21, %v3338_v24  ;;  %v3376_v15 = vadd.f32 (!%p4136_p3), %v7011_v21, %v3339_v6  ;;  %v3377_v58 = vadd.f32 (!%p4136_p3), %v7011_v21, %v3340_v43  ;;  %v3507_v32 = vld [vmem:[%s5026_s20 + $0x28] sm:$0xff] (!%p4136_p3)  ;;  %v3311_v4 = vld [vmem:[%s7008_s27 + $0x58] sm:$0xff] (!%p4136_p3)  ;;  %v3312_v38 = vld [vmem:[%s7008_s27 + $0x60] sm:$0xff] (!%p4136_p3) }
 0x4fd   : > { %v3378_v60 = vadd.f32 (!%p4136_p3), %v7011_v21, %v3341_v0  ;;  %v3379_v36 = vadd.f32 (!%p4136_p3), %v7011_v21, %v3342_v55  ;;  %v3380_v56 = vadd.f32 (!%p4136_p3), %v7011_v21, %v3343_v62  ;;  %v3347_v30 = vmul.f32 (!%p4136_p3), %v7005_v23, %v3310_v39  ;;  %v3508_v53 = vld [vmem:[%s5026_s20 + $0x30] sm:$0xff] (!%p4136_p3)  ;;  %v3509_v59 = vld [vmem:[%s5026_s20 + $0x38] sm:$0xff] (!%p4136_p3)  ;;  %v3510_v3 = vld [vmem:[%s5026_s20 + $0x40] sm:$0xff] (!%p4136_p3) }
 0x4fe   : > { %vm3406_vm0 = vcmp.gt.f32.partialorder %v3374_v16, 0.0  ;;  %v3438_v63 = vmul.f32 0.01, %v3374_v16  ;;  %vm3407_vm1 = vcmp.gt.f32.partialorder %v3375_v61, 0.0  ;;  %v3439_v28 = vmul.f32 0.01, %v3375_v61 }
 0x4ff   : > { %vm3408_vm2 = vcmp.gt.f32.partialorder %v3376_v15, 0.0  ;;  %v3440_v10 = vmul.f32 0.01, %v3376_v15  ;;  %vm3409_vm3 = vcmp.gt.f32.partialorder %v3377_v58, 0.0  ;;  %v3441_v12 = vmul.f32 0.01, %v3377_v58 }
 0x500   : > { %v3470_v8 = vsel %vm3406_vm0, %v3374_v16, %v3438_v63  ;;  %v3471_v22 = vsel %vm3407_vm1, %v3375_v61, %v3439_v28  ;;  %vm3410_vm4 = vcmp.gt.f32.partialorder %v3378_v60, 0.0  ;;  %v3442_v35 = vmul.f32 0.01, %v3378_v60  ;;  %v3511_v6 = vld [vmem:[%s5026_s20 + $0x48] sm:$0xff]  ;;  %v3512_v0 = vld [vmem:[%s5026_s20 + $0x50] sm:$0xff]  ;;  %v3315_v55 = vld [vmem:[%s7008_s27 + $0x78] sm:$0xff] }
 0x501   : > { %v3534_v42 = vadd.f32 %v3502_v31, %v3470_v8  ;;  %v3535_v7 = vadd.f32 %v3503_v41, %v3471_v22  ;;  %v3472_v33 = vsel %vm3408_vm2, %v3376_v15, %v3440_v10  ;;  %v3473_v45 = vsel %vm3409_vm3, %v3377_v58, %v3441_v12  ;;  %v3313_v43 = vld [vmem:[%s7008_s27 + $0x68] sm:$0xff]  ;;  %v3316_v62 = vld [vmem:[%s7008_s27 + $0x80] sm:$0xff]  ;;  %v3513_v12 = vld [vmem:[%s5026_s20 + $0x58] sm:$0xff] }
 0x502   : > { %v3536_v19 = vadd.f32 %v3504_v26, %v3472_v33  ;;  %v3537_v11 = vadd.f32 %v3505_v40, %v3473_v45  ;;  %vm3411_vm5 = vcmp.gt.f32.partialorder %v3379_v36, 0.0  ;;  %v3443_v14 = vmul.f32 0.01, %v3379_v36  ;;  %v3314_v40 = vld [vmem:[%s7008_s27 + $0x70] sm:$0xff]  ;;  %v3317_v8 = vld [vmem:[%s7008_s27 + $0x88] sm:$0xff] }
 0x503   : > { %3566 = vst [vmem:[%s5039_s15] sm:$0xff] %v3534_v42  ;;  %3567 = vst [vmem:[%s5039_s15 + $0x8] sm:$0xff] %v3535_v7  ;;  %v3474_v2 = vsel %vm3410_vm4, %v3378_v60, %v3442_v35  ;;  %vm3412_vm6 = vcmp.gt.f32.partialorder %v3380_v56, 0.0  ;;  %v3444_v54 = vmul.f32 0.01, %v3380_v56  ;;  %v3381_v13 = vadd.f32 %v7011_v21, %v3344_v27  ;;  %v3318_v22 = vld [vmem:[%s7008_s27 + $0x90] sm:$0xff]  ;;  %v3514_v42 = vld [vmem:[%s5026_s20 + $0x60] sm:$0xff] }
 0x504   : > { %3568 = vst [vmem:[%s5039_s15 + $0x10] sm:$0xff] %v3536_v19  ;;  %3569 = vst [vmem:[%s5039_s15 + $0x18] sm:$0xff] %v3537_v11  ;;  %v3538_v52 = vadd.f32 %v3506_v47, %v3474_v2  ;;  %v3475_v57 = vsel %vm3411_vm5, %v3379_v36, %v3443_v14  ;;  %v3382_v9 = vadd.f32 %v7011_v21, %v3345_v51  ;;  %v3319_v35 = vld [vmem:[%s7008_s27 + $0x98] sm:$0xff]  ;;  %v3320_v47 = vld [vmem:[%s7008_s27 + $0xa0] sm:$0xff] }
 0x505   : > { %v3539_v25 = vadd.f32 %v3507_v32, %v3475_v57  ;;  %v3383_v37 = vadd.f32 %v7011_v21, %v3346_v1  ;;  %v3476_v46 = vsel %vm3412_vm6, %v3380_v56, %v3444_v54  ;;  %v3384_v17 = vadd.f32 %v7011_v21, %v3347_v30  ;;  %v3515_v27 = vld [vmem:[%s5026_s20 + $0x68] sm:$0xff] }
 0x506   : > { %3570 = vst [vmem:[%s5039_s15 + $0x20] sm:$0xff] %v3538_v52  ;;  %v3348_v29 = vmul.f32 %v7005_v23, %v3311_v4  ;;  %v3349_v24 = vmul.f32 %v7005_v23, %v3312_v38  ;;  %v3540_v34 = vadd.f32 %v3508_v53, %v3476_v46  ;;  %vm3413_vm7 = vcmp.gt.f32.partialorder %v3381_v13, 0.0  ;;  %v3516_v38 = vld [vmem:[%s5026_s20 + $0x70] sm:$0xff]  ;;  %v3517_v52 = vld [vmem:[%s5026_s20 + $0x78] sm:$0xff] }
 0x507   : > { %3571 = vst [vmem:[%s5039_s15 + $0x28] sm:$0xff] %v3539_v25  ;;  %v3445_v48 = vmul.f32 0.01, %v3381_v13  ;;  %vm3414_vm8 = vcmp.gt.f32.partialorder %v3382_v9, 0.0  ;;  %v3446_v20 = vmul.f32 0.01, %v3382_v9  ;;  %v3350_v58 = vmul.f32 %v7005_v23, %v3313_v43 }
 0x508   : > { %vm3415_vm9 = vcmp.gt.f32.partialorder %v3383_v37, 0.0  ;;  %v3447_v16 = vmul.f32 0.01, %v3383_v37  ;;  %vm3416_vm10 = vcmp.gt.f32.partialorder %v3384_v17, 0.0  ;;  %3572 = vst [vmem:[%s5039_s15 + $0x30] sm:$0xff] %v3540_v34  ;;  %v3385_v44 = vadd.f32 %v7011_v21, %v3348_v29 }
 0x509   : > { %v3477_v31 = vsel %vm3413_vm7, %v3381_v13, %v3445_v48  ;;  %v3448_v61 = vmul.f32 0.01, %v3384_v17  ;;  %v3386_v49 = vadd.f32 %v7011_v21, %v3349_v24  ;;  %v3478_v15 = vsel %vm3414_vm8, %v3382_v9, %v3446_v20  ;;  %v3518_v9 = vld [vmem:[%s5026_s20 + $0x80] sm:$0xff]  ;;  %v3520_v24 = vld [vmem:[%s5026_s20 + $0x90] sm:$0xff]  ;;  %v3321_v20 = vld [vmem:[%s7008_s27 + $0xa8] sm:$0xff] }
 0x50a   : > { %v3541_v41 = vadd.f32 %v3509_v59, %v3477_v31  ;;  %v3479_v26 = vsel %vm3415_vm9, %v3383_v37, %v3447_v16  ;;  %v3542_v63 = vadd.f32 %v3510_v3, %v3478_v15  ;;  %vm3417_vm11 = vcmp.gt.f32.partialorder %v3385_v44, 0.0  ;;  %v3519_v37 = vld [vmem:[%s5026_s20 + $0x88] sm:$0xff]  ;;  %v3322_v16 = vld [vmem:[%s7008_s27 + $0xb0] sm:$0xff]  ;;  %v3323_v31 = vld [vmem:[%s7008_s27 + $0xb8] sm:$0xff] }
 0x50b   : > { %v3543_v28 = vadd.f32 %v3511_v6, %v3479_v26  ;;  %v3480_v10 = vsel %vm3416_vm10, %v3384_v17, %v3448_v61  ;;  %v3449_v36 = vmul.f32 0.01, %v3385_v44  ;;  %vm3418_vm12 = vcmp.gt.f32.partialorder %v3386_v49, 0.0  ;;  %v3325_v15 = vld [vmem:[%s7008_s27 + $0xc8] sm:$0xff]  ;;  %v3326_v26 = vld [vmem:[%s7008_s27 + $0xd0] sm:$0xff] }
 0x50c   : > { %3573 = vst [vmem:[%s5039_s15 + $0x38] sm:$0xff] %v3541_v41  ;;  %v3544_v60 = vadd.f32 %v3512_v0, %v3480_v10  ;;  %v3450_v5 = vmul.f32 0.01, %v3386_v49  ;;  %3574 = vst [vmem:[%s5039_s15 + $0x40] sm:$0xff] %v3542_v63  ;;  %v3387_v7 = vadd.f32 %v7011_v21, %v3350_v58  ;;  %v3351_v33 = vmul.f32 %v7005_v23, %v3314_v40  ;;  %v3324_v41 = vld [vmem:[%s7008_s27 + $0xc0] sm:$0xff] }
 0x50d   : > { %3575 = vst [vmem:[%s5039_s15 + $0x48] sm:$0xff] %v3543_v28  ;;  %v3352_v45 = vmul.f32 %v7005_v23, %v3315_v55  ;;  %v3353_v18 = vmul.f32 %v7005_v23, %v3316_v62  ;;  %v3481_v50 = vsel %vm3417_vm11, %v3385_v44, %v3449_v36  ;;  %v3354_v19 = vmul.f32 %v7005_v23, %v3317_v8  ;;  %v3521_v62 = vld [vmem:[%s5026_s20 + $0x98] sm:$0xff] }
 0x50e   : > { %3576 = vst [vmem:[%s5039_s15 + $0x50] sm:$0xff] %v3544_v60  ;;  %v3482_v39 = vsel %vm3418_vm12, %v3386_v49, %v3450_v5  ;;  %v3355_v11 = vmul.f32 %v7005_v23, %v3318_v22  ;;  %v3545_v14 = vadd.f32 %v3513_v12, %v3481_v50  ;;  %vm3419_vm13 = vcmp.gt.f32.partialorder %v3387_v7, 0.0 }
 0x50f   : > { %v3546_v32 = vadd.f32 %v3514_v42, %v3482_v39  ;;  %v3451_v56 = vmul.f32 0.01, %v3387_v7  ;;  %v3388_v2 = vadd.f32 %v7011_v21, %v3351_v33  ;;  %v3389_v51 = vadd.f32 %v7011_v21, %v3352_v45 }
 0x510   : > { %v3390_v1 = vadd.f32 %v7011_v21, %v3353_v18  ;;  %v3391_v30 = vadd.f32 %v7011_v21, %v3354_v19  ;;  %3577 = vst [vmem:[%s5039_s15 + $0x58] sm:$0xff] %v3545_v14  ;;  %v3392_v57 = vadd.f32 %v7011_v21, %v3355_v11  ;;  %v3356_v54 = vmul.f32 %v7005_v23, %v3319_v35  ;;  %v3523_v35 = vld [vmem:[%s5026_s20 + $0xa8] sm:$0xff] }
 0x511   : > { %3578 = vst [vmem:[%s5039_s15 + $0x60] sm:$0xff] %v3546_v32  ;;  %v3483_v4 = vsel %vm3419_vm13, %v3387_v7, %v3451_v56  ;;  %v3357_v53 = vmul.f32 %v7005_v23, %v3320_v47  ;;  %vm3420_vm14 = vcmp.gt.f32.partialorder %v3388_v2, 0.0  ;;  %v3452_v13 = vmul.f32 0.01, %v3388_v2  ;;  %v3522_v7 = vld [vmem:[%s5026_s20 + $0xa0] sm:$0xff]  ;;  %v3524_v47 = vld [vmem:[%s5026_s20 + $0xb0] sm:$0xff] }
 0x512   : > { %v3547_v25 = vadd.f32 %v3515_v27, %v3483_v4  ;;  %vm3421_vm15 = vcmp.gt.f32.partialorder %v3389_v51, 0.0  ;;  %v3453_v46 = vmul.f32 0.01, %v3389_v51  ;;  %vm3422_vm0 = vcmp.gt.f32.partialorder %v3390_v1, 0.0  ;;  %v3525_v27 = vld [vmem:[%s5026_s20 + $0xb8] sm:$0xff]  ;;  %v3527_v4 = vld [vmem:[%s5026_s20 + $0xc8] sm:$0xff] }
 0x513   : > { %v3454_v59 = vmul.f32 0.01, %v3390_v1  ;;  %vm3423_vm1 = vcmp.gt.f32.partialorder %v3391_v30, 0.0  ;;  %v3484_v3 = vsel %vm3420_vm14, %v3388_v2, %v3452_v13  ;;  %v3455_v17 = vmul.f32 0.01, %v3391_v30  ;;  %v3526_v2 = vld [vmem:[%s5026_s20 + $0xc0] sm:$0xff] }
 0x514   : > { %3579 = vst [vmem:[%s5039_s15 + $0x68] sm:$0xff] %v3547_v25  ;;  %vm3424_vm2 = vcmp.gt.f32.partialorder %v3392_v57, 0.0  ;;  %v3456_v29 = vmul.f32 0.01, %v3392_v57  ;;  %v3548_v34 = vadd.f32 %v3516_v38, %v3484_v3  ;;  %v3485_v48 = vsel %vm3421_vm15, %v3389_v51, %v3453_v46  ;;  %v3329_v25 = vld [vmem:[%s7008_s27 + $0xe8] sm:$0xff]  ;;  %v3330_v46 = vld [vmem:[%s7008_s27 + $0xf0] sm:$0xff] }
 0x515   : > { %v3486_v6 = vsel %vm3422_vm0, %v3390_v1, %v3454_v59  ;;  %v3393_v43 = vadd.f32 %v7011_v21, %v3356_v54  ;;  %v3549_v61 = vadd.f32 %v3517_v52, %v3485_v48  ;;  %v3487_v44 = vsel %vm3423_vm1, %v3391_v30, %v3455_v17  ;;  %v3327_v54 = vld [vmem:[%s7008_s27 + $0xd8] sm:$0xff] }
 0x516   : > { %v3550_v0 = vadd.f32 %v3518_v9, %v3486_v6  ;;  %v3488_v49 = vsel %vm3424_vm2, %v3392_v57, %v3456_v29  ;;  %3580 = vst [vmem:[%s5039_s15 + $0x70] sm:$0xff] %v3548_v34  ;;  %v3551_v58 = vadd.f32 %v3519_v37, %v3487_v44  ;;  %v3394_v63 = vadd.f32 %v7011_v21, %v3357_v53  ;;  %v3328_v53 = vld [vmem:[%s7008_s27 + $0xe0] sm:$0xff]  ;;  %v3331_v59 = vld [vmem:[%s7008_s27 + $0xf8] sm:$0xff]  ;;  %v3528_v34 = vld [vmem:[%s5026_s20 + $0xd0] sm:$0xff] }
 0x517   : > { %v3552_v40 = vadd.f32 %v3520_v24, %v3488_v49  ;;  %vm3425_vm3 = vcmp.gt.f32.partialorder %v3393_v43, 0.0  ;;  %v3457_v55 = vmul.f32 0.01, %v3393_v43  ;;  %3581 = vst [vmem:[%s5039_s15 + $0x78] sm:$0xff] %v3549_v61  ;;  %v3358_v28 = vmul.f32 %v7005_v23, %v3321_v20  ;;  %v3529_v49 = vld [vmem:[%s5026_s20 + $0xd8] sm:$0xff] }
 0x518   : > { %3582 = vst [vmem:[%s5039_s15 + $0x80] sm:$0xff] %v3550_v0  ;;  %v3359_v10 = vmul.f32 %v7005_v23, %v3322_v16  ;;  %v3360_v12 = vmul.f32 %v7005_v23, %v3323_v31  ;;  %3583 = vst [vmem:[%s5039_s15 + $0x88] sm:$0xff] %v3551_v58  ;;  %v3361_v22 = vmul.f32 %v7005_v23, %v3324_v41  ;;  %vm3426_vm4 = vcmp.gt.f32.partialorder %v3394_v63, 0.0  ;;  %v3531_v58 = vld [vmem:[%s5026_s20 + $0xe8] sm:$0xff] }
 0x519   : > { %3584 = vst [vmem:[%s5039_s15 + $0x90] sm:$0xff] %v3552_v40  ;;  %v3489_v8 = vsel %vm3425_vm3, %v3393_v43, %v3457_v55  ;;  %v3362_v60 = vmul.f32 %v7005_v23, %v3325_v15  ;;  %v3363_v36 = vmul.f32 %v7005_v23, %v3326_v26  ;;  %v3458_v42 = vmul.f32 0.01, %v3394_v63  ;;  %v3530_v26 = vld [vmem:[%s5026_s20 + $0xe0] sm:$0xff]  ;;  %v3532_v55 = vld [vmem:[%s5026_s20 + $0xf0] sm:$0xff] }
 0x51a   : > { %v3553_v5 = vadd.f32 %v3521_v62, %v3489_v8  ;;  %v3395_v33 = vadd.f32 %v7011_v21, %v3358_v28  ;;  %v3396_v45 = vadd.f32 %v7011_v21, %v3359_v10  ;;  %v3397_v18 = vadd.f32 %v7011_v21, %v3360_v12 }
 0x51b   : > { %v3398_v50 = vadd.f32 %v7011_v21, %v3361_v22  ;;  %v3399_v39 = vadd.f32 %v7011_v21, %v3362_v60  ;;  %v3490_v19 = vsel %vm3426_vm4, %v3394_v63, %v3458_v42  ;;  %v3400_v14 = vadd.f32 %v7011_v21, %v3363_v36  ;;  %v3533_v60 = vld [vmem:[%s5026_s20 + $0xf8] sm:$0xff] }
 0x51c   : > { %3585 = vst [vmem:[%s5039_s15 + $0x98] sm:$0xff] %v3553_v5  ;;  %vm3427_vm5 = vcmp.gt.f32.partialorder %v3395_v33, 0.0  ;;  %v3459_v11 = vmul.f32 0.01, %v3395_v33  ;;  %v3554_v32 = vadd.f32 %v3522_v7, %v3490_v19  ;;  %vm3428_vm6 = vcmp.gt.f32.partialorder %v3396_v45, 0.0 }
 0x51d   : > { %v3460_v56 = vmul.f32 0.01, %v3396_v45  ;;  %vm3429_vm7 = vcmp.gt.f32.partialorder %v3397_v18, 0.0  ;;  %v3461_v1 = vmul.f32 0.01, %v3397_v18  ;;  %vm3430_vm8 = vcmp.gt.f32.partialorder %v3398_v50, 0.0 }
 0x51e   : > { %v3491_v51 = vsel %vm3427_vm5, %v3395_v33, %v3459_v11  ;;  %v3462_v30 = vmul.f32 0.01, %v3398_v50  ;;  %3586 = vst [vmem:[%s5039_s15 + $0xa0] sm:$0xff] %v3554_v32  ;;  %vm3431_vm9 = vcmp.gt.f32.partialorder %v3399_v39, 0.0  ;;  %v3463_v57 = vmul.f32 0.01, %v3399_v39 }
 0x51f   : > { %v3555_v38 = vadd.f32 %v3523_v35, %v3491_v51  ;;  %v3492_v52 = vsel %vm3428_vm6, %v3396_v45, %v3460_v56  ;;  %v3493_v9 = vsel %vm3429_vm7, %v3397_v18, %v3461_v1  ;;  %vm3432_vm10 = vcmp.gt.f32.partialorder %v3400_v14, 0.0 }
 0x520   : > { %v3556_v13 = vadd.f32 %v3524_v47, %v3492_v52  ;;  %v3494_v37 = vsel %vm3430_vm8, %v3398_v50, %v3462_v30  ;;  %v3557_v3 = vadd.f32 %v3525_v27, %v3493_v9  ;;  %v3495_v29 = vsel %vm3431_vm9, %v3399_v39, %v3463_v57 }
 0x521   : > { %3587 = vst [vmem:[%s5039_s15 + $0xa8] sm:$0xff] %v3555_v38  ;;  %v3558_v17 = vadd.f32 %v3526_v2, %v3494_v37  ;;  %v3464_v24 = vmul.f32 0.01, %v3400_v14  ;;  %v3559_v48 = vadd.f32 %v3527_v4, %v3495_v29  ;;  %v3364_v6 = vmul.f32 %v7005_v23, %v3327_v54 }
 0x522   : > { %3588 = vst [vmem:[%s5039_s15 + $0xb0] sm:$0xff] %v3556_v13  ;;  %v3365_v43 = vmul.f32 %v7005_v23, %v3328_v53  ;;  %v3366_v20 = vmul.f32 %v7005_v23, %v3329_v25  ;;  %3589 = vst [vmem:[%s5039_s15 + $0xb8] sm:$0xff] %v3557_v3  ;;  %v3367_v31 = vmul.f32 %v7005_v23, %v3330_v46 }
 0x523   : > { %3590 = vst [vmem:[%s5039_s15 + $0xc0] sm:$0xff] %v3558_v17  ;;  %v3496_v16 = vsel %vm3432_vm10, %v3400_v14, %v3464_v24  ;;  %v3368_v61 = vmul.f32 %v7005_v23, %v3331_v59  ;;  %3591 = vst [vmem:[%s5039_s15 + $0xc8] sm:$0xff] %v3559_v48  ;;  %v3401_v44 = vadd.f32 %v7011_v21, %v3364_v6 }
 0x524   : > { %v3560_v0 = vadd.f32 %v3528_v34, %v3496_v16  ;;  %v3402_v41 = vadd.f32 %v7011_v21, %v3365_v43  ;;  %v3403_v15 = vadd.f32 %v7011_v21, %v3366_v20  ;;  %v3404_v40 = vadd.f32 %v7011_v21, %v3367_v31 }
 0x525   : > { %v3405_v62 = vadd.f32 %v7011_v21, %v3368_v61  ;;  %vm3433_vm11 = vcmp.gt.f32.partialorder %v3401_v44, 0.0  ;;  %v3465_v23 = vmul.f32 0.01, %v3401_v44 }
 0x526   : > { %3592 = vst [vmem:[%s5039_s15 + $0xd0] sm:$0xff] %v3560_v0  ;;  %vm3434_vm12 = vcmp.gt.f32.partialorder %v3402_v41, 0.0  ;;  %v3466_v63 = vmul.f32 0.01, %v3402_v41  ;;  %vm3435_vm13 = vcmp.gt.f32.partialorder %v3403_v15, 0.0  ;;  %vm3436_vm14 = vcmp.gt.f32.partialorder %v3404_v40, 0.0 }
 0x527   : > { %v3467_v28 = vmul.f32 0.01, %v3403_v15  ;;  %v3468_v10 = vmul.f32 0.01, %v3404_v40  ;;  %v3497_v12 = vsel %vm3433_vm11, %v3401_v44, %v3465_v23  ;;  %vm3437_vm15 = vcmp.gt.f32.partialorder %v3405_v62, 0.0 }
 0x528   : > { %v3498_v8 = vsel %vm3434_vm12, %v3402_v41, %v3466_v63  ;;  %v3469_v22 = vmul.f32 0.01, %v3405_v62  ;;  %v3561_v21 = vadd.f32 %v3529_v49, %v3497_v12 }
 0x529   : > { %v3562_v36 = vadd.f32 %v3530_v26, %v3498_v8  ;;  %v3499_v5 = vsel %vm3435_vm13, %v3403_v15, %v3467_v28  ;;  %v3500_v42 = vsel %vm3436_vm14, %v3404_v40, %v3468_v10 }
 0x52a   : > { %v3563_v7 = vadd.f32 %v3531_v58, %v3499_v5  ;;  %v3564_v33 = vadd.f32 %v3532_v55, %v3500_v42  ;;  %v3501_v45 = vsel %vm3437_vm15, %v3405_v62, %v3469_v22  ;;  %3593 = vst [vmem:[%s5039_s15 + $0xd8] sm:$0xff] %v3561_v21 }
 0x52b   : > { %3594 = vst [vmem:[%s5039_s15 + $0xe0] sm:$0xff] %v3562_v36  ;;  %v3565_v18 = vadd.f32 %v3533_v60, %v3501_v45 }
 0x52c   : > { %3595 = vst [vmem:[%s5039_s15 + $0xe8] sm:$0xff] %v3563_v7  ;;  %3596 = vst [vmem:[%s5039_s15 + $0xf0] sm:$0xff] %v3564_v33 }
 0x52d   : > { %3597 = vst [vmem:[%s5039_s15 + $0xf8] sm:$0xff] %v3565_v18 }
 0x52e PF: > { %s18_s9 = sadd.s32 1, %s4927_s9   ;;  %s7334_s12 = sld [smem:[#allocation6_spill]] }
 0x52f   : > { %p15_p4 = scmp.ge.s32.totalorder %s18_s9, 18   ;;  %s7335_s27 = smov %s4919_s29 }
 0x530   : > { %s7336_s28 = smov %s4923_s30  ;;  %s7337_s29 = smov %s7340_s10 }
 0x531   :  { %17 = sbr.rel (!%p15_p4) target bundleno = 3 (0x3), region = 126 }
 0x534   : > { %s7338_s30 = smov %s7334_s12 }

</bundles_post_ra>
